<compile_context>
chip_gen: v5e
topology: v5e:2x2
jax: 0.10.0
libtpu: 0.0.40
codegen_flags: <defaults>
</compile_context>

<pallas_src>
import jax
import jax.numpy as jnp
from jax import lax
from jax.experimental import pallas as pl
from jax.experimental.pallas import tpu as pltpu


def _round_up(n, m):
    return ((n + m - 1) // m) * m


def cbow_kernel(x_ref, emb_ref, wt_ref, b_ref, out_ref):
    idx = x_ref[...]                                   # (TB, C) int32 token ids
    TB, C = idx.shape
    V = wt_ref.shape[1]

    # 2-D counts build: single hoisted (TB, V) iota of vocab column ids, reused
    # for all C compares (fully packed (8,128) vregs, no 3-D intermediates).
    col_ids = lax.broadcasted_iota(jnp.int32, (TB, V), 1)        # hoisted, once
    counts = jnp.zeros((TB, V), jnp.float32)
    for c in range(C):                                 # static unroll, C small
        counts = counts + (idx[:, c:c + 1] == col_ids).astype(jnp.float32)
    counts = counts.astype(jnp.bfloat16)               # exact for counts <= 256

    # Sum of context embeddings == counts @ embedding_table  -> (TB, E)
    # bf16 operands, f32 accumulation on the MXU.
    summed = jnp.dot(counts, emb_ref[...],
                     preferred_element_type=jnp.float32)          # (TB, E) f32

    # Linear layer: weight pre-transposed to (E, V) in the wrapper, so the MXU
    # gets its native (K=E, N=V) feed; bias added in f32.
    logits = jnp.dot(summed.astype(jnp.bfloat16), wt_ref[...],
                     preferred_element_type=jnp.float32) + b_ref[...]  # (TB, V)

    # log_softmax along dim=1 (vocab axis), numerically stable, f32.
    m = jnp.max(logits, axis=-1, keepdims=True)
    shifted = logits - m
    lse = jnp.log(jnp.sum(jnp.exp(shifted), axis=-1, keepdims=True))
    out_ref[...] = shifted - lse


def _pick_tb(B):
    """Batch tile: 128 on v5e; 256 on v6e/v7x only if it keeps >= 2 grid steps."""
    kind = jax.devices()[0].device_kind.lower()
    if "v5" in kind:
        return 128
    return 256 if B >= 512 else 128


def cbow_forward(x, emb_table, w, b, *, tb=None):
    """x: (B, C) int32; emb_table: (V, E) f32; w: (V, E) f32 (out, in); b: (V,) f32."""
    B, C = x.shape
    V, E = emb_table.shape
    assert C <= 256, "bf16 counts are only exact for multiplicities <= 256"

    if tb is None:
        tb = _pick_tb(B)
    tb = min(tb, _round_up(B, 8))                     # sublane-aligned, <= batch

    # bf16 weight tables for the MXU (one-time XLA cast/transpose at the call
    # boundary); bias stays f32 (added to f32 logits).
    emb_bf = emb_table.astype(jnp.bfloat16)           # (V, E)
    wt_bf = w.T.astype(jnp.bfloat16)                  # (E, V) pre-transposed
    b2 = b.reshape(1, V).astype(jnp.float32)

    grid = (pl.cdiv(B, tb),)                          # partial last block OK
    single = dict(pipeline_mode=pl.Buffered(1))       # constant-index inputs

    return pl.pallas_call(
        cbow_kernel,
        out_shape=jax.ShapeDtypeStruct((B, V), jnp.float32),
        grid=grid,
        in_specs=[
            pl.BlockSpec((tb, C), lambda i: (i, 0)),              # token ids tile
            pl.BlockSpec((V, E), lambda i: (0, 0), **single),     # embedding table
            pl.BlockSpec((E, V), lambda i: (0, 0), **single),     # linear weight^T
            pl.BlockSpec((1, V), lambda i: (0, 0), **single),     # linear bias
        ],
        out_specs=pl.BlockSpec((tb, V), lambda i: (i, 0)),        # lane-dense out
        compiler_params=pltpu.CompilerParams(
            dimension_semantics=("parallel",),        # shard batch tiles (v7x)
        ),
    )(x, emb_bf, wt_bf, b2)


if __name__ == "__main__":
    VOC_SIZE = 512    # vocabulary size (multiple of 128 -> lane-dense output)
    EMBED = 64        # embedding size
    BATCH = 256       # two 128-row batch tiles
    CONTEXT = 4       # context words per example (summed over dim=1)

    key = jax.random.PRNGKey(0)
    k_idx, k_emb, k_w, k_b = jax.random.split(key, 4)

    # Deterministic parameter init (matching module shapes, not a checkpoint).
    emb_table = jax.random.normal(k_emb, (VOC_SIZE, EMBED), jnp.float32)        # nn.Embedding weight
    bound = 1.0 / jnp.sqrt(EMBED)
    w = jax.random.uniform(k_w, (VOC_SIZE, EMBED), jnp.float32, -bound, bound)  # nn.Linear weight (out, in)
    b = jax.random.uniform(k_b, (VOC_SIZE,), jnp.float32, -bound, bound)        # nn.Linear bias

    x = jax.random.randint(k_idx, (BATCH, CONTEXT), 0, VOC_SIZE, jnp.int32)

    out = cbow_forward(x, emb_table, w, b)
    out = jax.block_until_ready(out)

    # Reference in plain JAX using the SAME bf16 weight casts the kernel uses
    # (f32 accumulation), so the check validates kernel structure tightly.
    emb_bf = emb_table.astype(jnp.bfloat16)
    wt_bf = w.T.astype(jnp.bfloat16)
    ref_sum = jnp.sum(emb_bf[x].astype(jnp.float32), axis=1)                    # (B, E)
    ref_logits = jnp.dot(ref_sum.astype(jnp.bfloat16), wt_bf,
                         preferred_element_type=jnp.float32) + b                # (B, V)
    ref = jax.nn.log_softmax(ref_logits, axis=1)

    assert out.shape == (BATCH, VOC_SIZE)
    assert jnp.allclose(out, ref, atol=1e-2, rtol=1e-2), "mismatch vs reference"

    print("KERNEL_OK")
</pallas_src>

<mosaic_0001>
module attributes {stable_mosaic.version = 11 : i64} {
  func.func @cbow_kernel(%arg0: i32, %arg1: memref<128x4xi32, #tpu.memory_space<vmem>>, %arg2: memref<512x64xbf16, #tpu.memory_space<vmem>>, %arg3: memref<64x512xbf16, #tpu.memory_space<vmem>>, %arg4: memref<1x512xf32, #tpu.memory_space<vmem>>, %arg5: memref<128x512xf32, #tpu.memory_space<vmem>>) attributes {dimension_semantics = [#tpu.dimension_semantics<parallel>], iteration_bounds = array<i64: 2>, scalar_prefetch = 0 : i64, scratch_operands = 0 : i64, tpu.core_type = #tpu.core_type<tc>, window_params = [{transform_indices = @transform_0, window_bounds = array<i64: 128, 4>}, {pipeline_mode = #tpu.pipeline_mode<synchronous>, transform_indices = @transform_1, window_bounds = array<i64: 512, 64>}, {pipeline_mode = #tpu.pipeline_mode<synchronous>, transform_indices = @transform_2, window_bounds = array<i64: 64, 512>}, {pipeline_mode = #tpu.pipeline_mode<synchronous>, transform_indices = @transform_3, window_bounds = array<i64: 1, 512>}, {transform_indices = @transform_4, window_bounds = array<i64: 128, 512>}]} {
    %c0 = arith.constant 0 : index
    %c0_0 = arith.constant 0 : index
    %0 = vector.load %arg1[%c0, %c0_0] : memref<128x4xi32, #tpu.memory_space<vmem>>, vector<128x4xi32>
    %1 = tpu.iota {dimensions = array<i32: 1>} : vector<128x512xi32>
    %cst = arith.constant 0.000000e+00 : f32
    %2 = vector.broadcast %cst : f32 to vector<128x512xf32>
    %3 = vector.extract_strided_slice %0 {offsets = [0, 0], sizes = [128, 1], strides = [1, 1]} : vector<128x4xi32> to vector<128x1xi32>
    %4 = vector.broadcast %3 : vector<128x1xi32> to vector<128x512xi32>
    %5 = arith.cmpi eq, %4, %1 : vector<128x512xi32>
    %6 = arith.extui %5 : vector<128x512xi1> to vector<128x512xi32>
    %7 = arith.sitofp %6 : vector<128x512xi32> to vector<128x512xf32>
    %8 = arith.addf %2, %7 : vector<128x512xf32>
    %9 = vector.extract_strided_slice %0 {offsets = [0, 1], sizes = [128, 1], strides = [1, 1]} : vector<128x4xi32> to vector<128x1xi32>
    %10 = vector.broadcast %9 : vector<128x1xi32> to vector<128x512xi32>
    %11 = arith.cmpi eq, %10, %1 : vector<128x512xi32>
    %12 = arith.extui %11 : vector<128x512xi1> to vector<128x512xi32>
    %13 = arith.sitofp %12 : vector<128x512xi32> to vector<128x512xf32>
    %14 = arith.addf %8, %13 : vector<128x512xf32>
    %15 = vector.extract_strided_slice %0 {offsets = [0, 2], sizes = [128, 1], strides = [1, 1]} : vector<128x4xi32> to vector<128x1xi32>
    %16 = vector.broadcast %15 : vector<128x1xi32> to vector<128x512xi32>
    %17 = arith.cmpi eq, %16, %1 : vector<128x512xi32>
    %18 = arith.extui %17 : vector<128x512xi1> to vector<128x512xi32>
    %19 = arith.sitofp %18 : vector<128x512xi32> to vector<128x512xf32>
    %20 = arith.addf %14, %19 : vector<128x512xf32>
    %21 = vector.extract_strided_slice %0 {offsets = [0, 3], sizes = [128, 1], strides = [1, 1]} : vector<128x4xi32> to vector<128x1xi32>
    %22 = vector.broadcast %21 : vector<128x1xi32> to vector<128x512xi32>
    %23 = arith.cmpi eq, %22, %1 : vector<128x512xi32>
    %24 = arith.extui %23 : vector<128x512xi1> to vector<128x512xi32>
    %25 = arith.sitofp %24 : vector<128x512xi32> to vector<128x512xf32>
    %26 = arith.addf %20, %25 : vector<128x512xf32>
    %27 = arith.truncf %26 : vector<128x512xf32> to vector<128x512xbf16>
    %c0_1 = arith.constant 0 : index
    %c0_2 = arith.constant 0 : index
    %28 = vector.load %arg2[%c0_1, %c0_2] : memref<512x64xbf16, #tpu.memory_space<vmem>>, vector<512x64xbf16>
    %cst_3 = arith.constant dense<0.000000e+00> : vector<128x64xf32>
    %29 = tpu.matmul %27, %28, %cst_3 {dimension_numbers = #tpu.dot_dimension_numbers<[1], [0], [0], [1], [0, 0, 1, 1], [], []>} : vector<128x512xbf16>, vector<512x64xbf16>, vector<128x64xf32> -> vector<128x64xf32>
    %30 = arith.truncf %29 : vector<128x64xf32> to vector<128x64xbf16>
    %c0_4 = arith.constant 0 : index
    %c0_5 = arith.constant 0 : index
    %31 = vector.load %arg3[%c0_4, %c0_5] : memref<64x512xbf16, #tpu.memory_space<vmem>>, vector<64x512xbf16>
    %cst_6 = arith.constant dense<0.000000e+00> : vector<128x512xf32>
    %32 = tpu.matmul %30, %31, %cst_6 {dimension_numbers = #tpu.dot_dimension_numbers<[1], [0], [0], [1], [0, 0, 1, 1], [], []>} : vector<128x64xbf16>, vector<64x512xbf16>, vector<128x512xf32> -> vector<128x512xf32>
    %c0_7 = arith.constant 0 : index
    %c0_8 = arith.constant 0 : index
    %33 = vector.load %arg4[%c0_7, %c0_8] : memref<1x512xf32, #tpu.memory_space<vmem>>, vector<1x512xf32>
    %34 = vector.broadcast %33 : vector<1x512xf32> to vector<128x512xf32>
    %35 = arith.addf %32, %34 : vector<128x512xf32>
    %cst_9 = arith.constant dense<0xFF800000> : vector<128xf32>
    %36 = vector.multi_reduction <maximumf>, %35, %cst_9 [1] : vector<128x512xf32> to vector<128xf32>
    %37 = vector.shape_cast %36 : vector<128xf32> to vector<128x1xf32>
    %38 = vector.broadcast %37 : vector<128x1xf32> to vector<128x512xf32>
    %39 = arith.subf %35, %38 : vector<128x512xf32>
    %40 = math.exp %39 : vector<128x512xf32>
    %cst_10 = arith.constant dense<0.000000e+00> : vector<128xf32>
    %41 = vector.multi_reduction <add>, %40, %cst_10 [1] : vector<128x512xf32> to vector<128xf32>
    %42 = vector.shape_cast %41 : vector<128xf32> to vector<128x1xf32>
    %43 = math.log %42 : vector<128x1xf32>
    %44 = vector.broadcast %43 : vector<128x1xf32> to vector<128x512xf32>
    %45 = arith.subf %39, %44 : vector<128x512xf32>
    %c0_11 = arith.constant 0 : index
    %c0_12 = arith.constant 0 : index
    %46 = vector.load %arg5[%c0_11, %c0_12] : memref<128x512xf32, #tpu.memory_space<vmem>>, vector<128x512xf32>
    tpu.vector_store %arg5[%c0_11, %c0_12], %45 {strides = array<i32>} : memref<128x512xf32, #tpu.memory_space<vmem>>, vector<128x512xf32>,
    return
  }
  func.func @transform_0(%arg0: i32) -> (i32, i32) {
    %c0_i32 = arith.constant 0 : i32
    %c0_i32_0 = arith.constant 0 : i32
    return %arg0, %c0_i32 : i32, i32
  }
  func.func @transform_1(%arg0: i32) -> (i32, i32) {
    %c0_i32 = arith.constant 0 : i32
    %c0_i32_0 = arith.constant 0 : i32
    %c0_i32_1 = arith.constant 0 : i32
    return %c0_i32, %c0_i32_0 : i32, i32
  }
  func.func @transform_2(%arg0: i32) -> (i32, i32) {
    %c0_i32 = arith.constant 0 : i32
    %c0_i32_0 = arith.constant 0 : i32
    %c0_i32_1 = arith.constant 0 : i32
    return %c0_i32, %c0_i32_0 : i32, i32
  }
  func.func @transform_3(%arg0: i32) -> (i32, i32) {
    %c0_i32 = arith.constant 0 : i32
    %c0_i32_0 = arith.constant 0 : i32
    %c0_i32_1 = arith.constant 0 : i32
    return %c0_i32, %c0_i32_0 : i32, i32
  }
  func.func @transform_4(%arg0: i32) -> (i32, i32) {
    %c0_i32 = arith.constant 0 : i32
    %c0_i32_0 = arith.constant 0 : i32
    return %arg0, %c0_i32 : i32, i32
  }
}

</mosaic_0001>

<bundles_post_ra>
// kernel: tpu_custom_call.1
= control target key start
LH: loop header
LB: loop body
LE: loop exit
PB: predicated region body
PF: predicated region fallthrough
CT: control target
= control target key end

     0   :  { %9 = vsyncpa [#allocation3], 0  ;;  %s6051_s0 = inlined_call_operand.vmem [shape: s32[256,4], index: 0, kind: input, shape index: {}]   ;;  %s6052_s1 = inlined_call_operand.vmem [shape: bf16[512,64], index: 1, kind: input, shape index: {}]   ;;  %s6053_s2 = inlined_call_operand.vmem [shape: bf16[64,512], index: 2, kind: input, shape index: {}]   ;;  %s6054_s3 = inlined_call_operand.vmem [shape: f32[1,512], index: 3, kind: input, shape index: {}]   ;;  %s6055_s4 = inlined_call_operand.hbm [shape: f32[256,512], index: 4, kind: output, shape index: {}]  }
   0x1   :  { %11 = vsyncpa [#allocation3 + $0x1], 0  ;;  %s3750_s15 = smov 0   ;;  %s3752_s16 = smov 0  }
   0x2   :  { %s3754_s17 = smov 0   ;;  %s3756_s18 = smov 0  }
   0x3 LB: > { %s3771_s19 = sadd.s32 4294967295, %s3716_s18   ;;  %s2847_s20 = sadd.s32 4294967294, %s3716_s18   ;;  %s3716_s18 = sphi %s3756_s18, %s6151_s18   ;;  %s3712_s17 = sphi %s3754_s17, %s6150_s17   ;;  %s3708_s16 = sphi %s3752_s16, %s6149_s16   ;;  %s3704_s15 = sphi %s3750_s15, %s6148_s15  }
   0x4   : > { %s3775_s21 = sadd.s32 1, %s3716_s18   ;;  %s113_s22 = sadd.s32 1, %s3712_s17 }
   0x5   : > { %s110_s23 = ssub.s32 %s3716_s18, %s3775_s21  ;;  %p123_p0 = scmp.ne.s32.totalorder %s3712_s17, %s3708_s16 }
   0x6   : > { %p111_p1 = scmp.eq.s32.totalorder %s110_s23, 0  ;;  %p124_p2 = scmp.eq.s32.totalorder %s3771_s19, 1 }
   0x7   : > { %p129_p3 = scmp.ne.s32.totalorder %s3708_s16, %s3704_s15  ;;  %p130_p4 = scmp.eq.s32.totalorder %s2847_s20, 1 }
   0x8   : > { %s3786_s24 = scalar_select %p111_p1, %s3712_s17, %s113_s22  }
   0x9   : > { %p3788_p5 = por %p124_p2, %p123_p0  ;;  %p3792_p6 = por %p130_p4, %p129_p3 }
   0xa   : > { %p2850_p7 = scmp.ge.s32.totalorder %s3716_s18, 1  ;;  %p166_p8 = scmp.lt.s32.totalorder %s3716_s18, 3 }
   0xc   : > { %p167_p9 = pnand %p2850_p7, %p166_p8 }
   0xe   : > { %170 = sbr.rel (%p167_p9) target bundleno = 925 (0x39d), region = 36 }
  0x13   : > { %s2852_s27 = sshll.u32 %s3771_s19, 4  ;;  %v3718_v0 = vmov 1   ;;  %v3719_v1 = vmov 0   ;;  %v3720_v2 = vmov 2   ;;  %v3721_v7 = vmov 3   ;;  %v3347_v15 = vld [vmem:[%s6052_s1 + $0x38] sm:$0xff] }
  0x14   : > { %3437 = vset.pattern.permute.xlu1 %v3718_v0  ;;  %3436 = vset.pattern.permute.xlu0 %v3719_v1  ;;  %p193_p10 = scmp.lt.s32.totalorder %s2852_s27, 31  ;;  %v3355_v16 = vld [vmem:[%s6052_s1 + $0x78] sm:$0xff]  ;;  %v3346_v19 = vld [vmem:[%s6052_s1 + $0x30] sm:$0xff]  ;;  %v3345_v24 = vld [vmem:[%s6052_s1 + $0x28] sm:$0xff]  ;;  %v216_v31 = vlaneseq  ;;  %v3722_v57 = vmov 0.0   ;;  %s189_s29 = sand.u32 1, %s3708_s16  }
  0x15   : > { %3438 = vset.pattern.permute.xlu2 %v3720_v2  ;;  %v3363_v17 = vld [vmem:[%s6052_s1 + $0xb8] sm:$0xff]  ;;  %1725 = vmatpush.bf16.msra.mxu0 %v3347_v15  ;;  %v3354_v20 = vld [vmem:[%s6052_s1 + $0x70] sm:$0xff]  ;;  %v3353_v25 = vld [vmem:[%s6052_s1 + $0x68] sm:$0xff]  ;;  %s2851_s30 = sshll.u32 %s189_s29, 9  ;;  %s3389_s6 = sshll.u32 %s3771_s19, 9 }
  0x16   : > { %s6153_s27 = smov (!%p193_p10, %s2852_s27), 31  ;;  %v3371_v18 = vld [vmem:[%s6052_s1 + $0xf8] sm:$0xff]  ;;  %1774 = vmatpush.bf16.msra.mxu1 %v3355_v16  ;;  %1823 = vmatpush.bf16.msra.mxu2 %v3363_v17  ;;  %v3362_v21 = vld [vmem:[%s6052_s1 + $0xb0] sm:$0xff]  ;;  %v3361_v26 = vld [vmem:[%s6052_s1 + $0xa8] sm:$0xff]  ;;  %v3919_v39 = vand.u32 127, %v216_v31  ;;  %s2781_s9 = scalar_lea.hbm %s6055_s4, %s3389_s6 }
  0x17   : > { %s2853_s28 = sshll.u32 %s6153_s27, 3  ;;  %1872 = vmatpush.bf16.msra.mxu3 %v3371_v18  ;;  %v3370_v22 = vld [vmem:[%s6052_s1 + $0xf0] sm:$0xff]  ;;  %v3369_v28 = vld [vmem:[%s6052_s1 + $0xe8] sm:$0xff]  ;;  %v3344_v30 = vld [vmem:[%s6052_s1 + $0x20] sm:$0xff]  ;;  %s2784_s11 = sshll.u32 %s2781_s9, 4  ;;  %s2785_s11 = int_to_ptr.hbm [resolvable:$true] %s2784_s11 }
  0x18   : > { %s3805_s5 = scalar_lea.vmem %s6051_s0, %s2853_s28  ;;  %v3352_v32 = vld [vmem:[%s6052_s1 + $0x60] sm:$0xff]  ;;  %v3343_v37 = vld [vmem:[%s6052_s1 + $0x18] sm:$0xff]  ;;  %v3342_v43 = vld [vmem:[%s6052_s1 + $0x10] sm:$0xff]  ;;  %v3939_v45 = vadd.s32 128, %v3919_v39  ;;  %v3942_v46 = vadd.s32 256, %v3919_v39  ;;  %v3945_v47 = vadd.s32 384, %v3919_v39 }
  0x19   : > { %v200_v3 = vld [vmem:[%s3805_s5] sm:$0xff]  ;;  %v201_v4 = vld [vmem:[%s3805_s5 + $0x8] sm:$0xff]  ;;  %v202_v6 = vld [vmem:[%s3805_s5 + $0x10] sm:$0xff]  ;;  %1726 = vmatpush.bf16.msra.mxu0 %v3346_v19  ;;  %s2769_s19 = scalar_lea.sflag [#allocation3], %s189_s29  ;;  %s3668_s12 = sshra.s32 %s2785_s11, 4  ;;  %s3669_s12 = int_to_ptr.hbm [resolvable:$true] %s3668_s12 }
  0x1a   : > { %526 = vperm.xlu1 %3437, %v200_v3   ;;  %222 = vperm.xlu0 %3436, %v200_v3   ;;  %v204_v5 = vld [vmem:[%s3805_s5 + $0x20] sm:$0xff]  ;;  %v203_v8 = vld [vmem:[%s3805_s5 + $0x18] sm:$0xff]  ;;  %v206_v9 = vld [vmem:[%s3805_s5 + $0x30] sm:$0xff]  ;;  %s3670_s13 = scalar_lea.hbm %s3669_s12, 512  ;;  %s3674_s22 = scalar_lea.hbm %s6055_s4, 1024 }
  0x1b   : > { %830 = vperm.xlu2 %3438, %v200_v3   ;;  %v207_v10 = vld [vmem:[%s3805_s5 + $0x38] sm:$0xff]  ;;  %v205_v11 = vld [vmem:[%s3805_s5 + $0x28] sm:$0xff]  ;;  %v3833_v12 = vld [vmem:[%s3805_s5 + $0x40] sm:$0xff]  ;;  %1775 = vmatpush.bf16.msra.mxu1 %v3354_v20  ;;  %p3671_p11 = scmp.ne.s32.totalorder %s3669_s12, %s3670_s13  ;;  %p3675_p0 = scmp.lt.s32.totalorder %s3669_s12, %s6055_s4 }
  0x1c   : > { %v3872_v23 = vld [vmem:[%s3805_s5 + $0x48] sm:$0xff]  ;;  %1824 = vmatpush.bf16.msra.mxu2 %v3362_v21  ;;  %1873 = vmatpush.bf16.msra.mxu3 %v3370_v22  ;;  %v3893_v29 = vld [vmem:[%s3805_s5 + $0x58] sm:$0xff]  ;;  %v3360_v33 = vld [vmem:[%s6052_s1 + $0xa0] sm:$0xff]  ;;  %p3676_p1 = scmp.lt.s32.totalorder %s3674_s22, %s3670_s13 }
  0x1d   : > { %1727 = vmatpush.bf16.msra.mxu0 %v3345_v24  ;;  %v3368_v36 = vld [vmem:[%s6052_s1 + $0xe0] sm:$0xff]  ;;  %v3351_v38 = vld [vmem:[%s6052_s1 + $0x58] sm:$0xff]  ;;  %v3350_v44 = vld [vmem:[%s6052_s1 + $0x50] sm:$0xff]  ;;  %p3672_p12 = pnand %p3671_p11, %p3788_p5 }
  0x1e   : > { %v3359_v40 = vld [vmem:[%s6052_s1 + $0x98] sm:$0xff]  ;;  %v3948_v48 = vld [vmem:[%s3805_s5 + $0x50] sm:$0xff]  ;;  %v3341_v53 = vld [vmem:[%s6052_s1 + $0x8] sm:$0xff]  ;;  %p3677_p2 = por %p3676_p1, %p3675_p0 }
  0x1f   : > { %1776 = vmatpush.bf16.msra.mxu1 %v3353_v25  ;;  %v3367_v42 = vld [vmem:[%s6052_s1 + $0xd8] sm:$0xff]  ;;  %v3358_v49 = vld [vmem:[%s6052_s1 + $0x90] sm:$0xff]  ;;  %v3349_v54 = vld [vmem:[%s6052_s1 + $0x48] sm:$0xff]  ;;  %p3673_p13 = pneg %p3672_p12 }
  0x20   : > { %1825 = vmatpush.bf16.msra.mxu2 %v3361_v26  ;;  %1874 = vmatpush.bf16.msra.mxu3 %v3369_v28  ;;  %v3366_v52 = vld [vmem:[%s6052_s1 + $0xd0] sm:$0xff]  ;;  %v3357_v55 = vld [vmem:[%s6052_s1 + $0x88] sm:$0xff]  ;;  %v3340_v63 = vld [vmem:[%s6052_s1] sm:$0xff] }
  0x21   : > { %1728 = vmatpush.bf16.msra.mxu0 %v3344_v30  ;;  %v3365_v56 = vld [vmem:[%s6052_s1 + $0xc8] sm:$0xff]  ;;  %p3678_p3 = pnand %p3677_p2, %p3673_p13 }
  0x22   : > { %529 = vperm.xlu1 %3437, %v201_v4   ;;  %225 = vperm.xlu0 %3436, %v201_v4  }
  0x23   : > { %833 = vperm.xlu2 %3438, %v201_v4   ;;  %1777 = vmatpush.bf16.msra.mxu1 %v3352_v32 }
  0x24   : > { %1826 = vmatpush.bf16.msra.mxu2 %v3360_v33  ;;  %1875 = vmatpush.bf16.msra.mxu3 %v3368_v36 }
  0x25   : > { %1729 = vmatpush.bf16.msra.mxu0 %v3343_v37 }
  0x27   : > { %1778 = vmatpush.bf16.msra.mxu1 %v3351_v38 }
  0x28   : > { %1827 = vmatpush.bf16.msra.mxu2 %v3359_v40  ;;  %1876 = vmatpush.bf16.msra.mxu3 %v3367_v42 }
  0x29   : > { %1730 = vmatpush.bf16.msra.mxu0 %v3342_v43 }
  0x2a   : > { %3439 = vset.pattern.permute.xlu1 %v3721_v7  ;;  %234 = vperm.xlu0 %3436, %v204_v5  }
  0x2b   : > { %1137 = vperm.xlu1 %3439, %v201_v4   ;;  %3440 = vset.pattern.permute.xlu2 %v3719_v1 }
  0x2c   : > { %228 = vperm.xlu2 %3440, %v202_v6   ;;  %1779 = vmatpush.bf16.msra.mxu1 %v3350_v44 }
  0x2d   : > { %1828 = vmatpush.bf16.msra.mxu2 %v3358_v49  ;;  %1877 = vmatpush.bf16.msra.mxu3 %v3366_v52 }
  0x2e   : > { %1731 = vmatpush.bf16.msra.mxu0 %v3341_v53 }
  0x30   : > { %1780 = vmatpush.bf16.msra.mxu1 %v3349_v54 }
  0x31   : > { %1829 = vmatpush.bf16.msra.mxu2 %v3357_v55  ;;  %1878 = vmatpush.bf16.msra.mxu3 %v3365_v56 }
  0x32   : > { %3447 = vset.pattern.permute.xlu0 %v3718_v0  ;;  %1732 = vmatpush.bf16.msra.mxu0 %v3340_v63 }
  0x33   : > { %3441 = vset.pattern.permute.xlu1 %v3719_v1  ;;  %535 = vperm.xlu0 %3447, %v203_v8  }
  0x34   : > { %231 = vperm.xlu1 %3441, %v203_v8   ;;  %3442 = vset.pattern.permute.xlu2 %v3718_v0 }
  0x35   : > { %532 = vperm.xlu2 %3442, %v202_v6  }
  0x3b   : > { %544 = vperm.xlu0 %3447, %v206_v9  }
  0x3c   : > { %3443 = vset.pattern.permute.xlu1 %v3720_v2 }
  0x3d   : > { %836 = vperm.xlu1 %3443, %v202_v6   ;;  %3444 = vset.pattern.permute.xlu2 %v3720_v2 }
  0x3e   : > { %839 = vperm.xlu2 %3444, %v203_v8  }
  0x43   : > { %3456 = vset.pattern.permute.xlu0 %v3721_v7 }
  0x44   : > { %1134 = vperm.xlu0 %3456, %v200_v3   ;;  %v3348_v3 = vld [vmem:[%s6052_s1 + $0x40] sm:$0xff] }
  0x45   : > { %3445 = vset.pattern.permute.xlu1 %v3721_v7  ;;  %1781 = vmatpush.bf16.msra.mxu1 %v3348_v3 }
  0x46   : > { %1140 = vperm.xlu1 %3445, %v202_v6   ;;  %3446 = vset.pattern.permute.xlu2 %v3721_v7 }
  0x47   : > { %1143 = vperm.xlu2 %3446, %v203_v8  }
  0x4c   : > { %1155 = vperm.xlu0 %3456, %v207_v10  }
  0x4e   : > { %3448 = vset.pattern.permute.xlu1 %v3719_v1 }
  0x4f   : > { %237 = vperm.xlu1 %3448, %v205_v11   ;;  %3449 = vset.pattern.permute.xlu2 %v3718_v0 }
  0x50   : > { %538 = vperm.xlu2 %3449, %v204_v5  }
  0x54   : > { %3461 = vset.pattern.permute.xlu0 %v3720_v2 }
  0x55   : > { %845 = vperm.xlu0 %3461, %v205_v11  }
  0x57   : > { %3450 = vset.pattern.permute.xlu1 %v3718_v0 }
  0x58   : > { %541 = vperm.xlu1 %3450, %v205_v11   ;;  %3451 = vset.pattern.permute.xlu2 %v3720_v2 }
  0x59   : > { %842 = vperm.xlu2 %3451, %v204_v5  }
  0x5d   : > { %854 = vperm.xlu0 %3461, %v3833_v12  }
  0x60   : > { %3452 = vset.pattern.permute.xlu1 %v3721_v7 }
  0x61   : > { %1146 = vperm.xlu1 %3452, %v204_v5   ;;  %3453 = vset.pattern.permute.xlu2 %v3721_v7 }
  0x62   : > { %1149 = vperm.xlu2 %3453, %v205_v11   ;;  %v3356_v11 = vld [vmem:[%s6052_s1 + $0x80] sm:$0xff] }
  0x63   : > { %1830 = vmatpush.bf16.msra.mxu2 %v3356_v11 }
  0x65   : > { %3470 = vset.pattern.permute.xlu0 %v3719_v1 }
  0x66   : > { %255 = vperm.xlu0 %3470, %v3893_v29  }
  0x69   : > { %3454 = vset.pattern.permute.xlu1 %v3719_v1 }
  0x6a   : > { %240 = vperm.xlu1 %3454, %v206_v9   ;;  %3455 = vset.pattern.permute.xlu2 %v3719_v1 }
  0x6b   : > { %243 = vperm.xlu2 %3455, %v207_v10  }
  0x6e   : > { %3475 = vset.pattern.permute.xlu0 %v3721_v7 }
  0x6f   : > { %1164 = vperm.xlu0 %3475, %v3948_v48  }
  0x72   : > { %3457 = vset.pattern.permute.xlu1 %v3718_v0 }
  0x73   : > { %547 = vperm.xlu1 %3457, %v207_v10   ;;  %3458 = vset.pattern.permute.xlu2 %v3720_v2 }
  0x74   : > { %848 = vperm.xlu2 %3458, %v206_v9  }
  0x75   : > { %v3841_v13 = vpop.permute.xlu2 %830 }
  0x76   : > { %vm877_vm0 = vcmp.eq.s32.totalorder %v3841_v13, %v3919_v39  ;;  %vm878_vm1 = vcmp.eq.s32.totalorder %v3841_v13, %v3939_v45  ;;  %vm879_vm2 = vcmp.eq.s32.totalorder %v3841_v13, %v3942_v46  ;;  %vm880_vm3 = vcmp.eq.s32.totalorder %v3841_v13, %v3945_v47 }
  0x77   : > { %v4001_v58 = vsel %vm877_vm0, 1.0, %v3722_v57  ;;  %v4012_v60 = vsel %vm878_vm1, 1.0, %v3722_v57  ;;  %v4018_v61 = vsel %vm879_vm2, 1.0, %v3722_v57  ;;  %v4024_v62 = vsel %vm880_vm3, 1.0, %v3722_v57  ;;  %3480 = vset.pattern.permute.xlu0 %v3718_v0 }
  0x7b   : > { %3459 = vset.pattern.permute.xlu1 %v3720_v2 }
  0x7c   : > { %851 = vperm.xlu1 %3459, %v207_v10   ;;  %3460 = vset.pattern.permute.xlu2 %v3721_v7 }
  0x7d   : > { %1152 = vperm.xlu2 %3460, %v206_v9   ;;  %v3845_v14 = vpop.permute.xlu2 %833 }
  0x7e   : > { %vm881_vm4 = vcmp.eq.s32.totalorder %v3845_v14, %v3919_v39  ;;  %vm882_vm5 = vcmp.eq.s32.totalorder %v3845_v14, %v3939_v45  ;;  %vm883_vm6 = vcmp.eq.s32.totalorder %v3845_v14, %v3942_v46  ;;  %vm884_vm7 = vcmp.eq.s32.totalorder %v3845_v14, %v3945_v47  ;;  %v3364_v14 = vld [vmem:[%s6052_s1 + $0xc0] sm:$0xff] }
  0x7f   : > { %v4036_v4 = vsel %vm881_vm4, 1.0, %v3722_v57  ;;  %v4042_v5 = vsel %vm882_vm5, 1.0, %v3722_v57  ;;  %v4048_v6 = vsel %vm883_vm6, 1.0, %v3722_v57  ;;  %v4054_v8 = vsel %vm884_vm7, 1.0, %v3722_v57  ;;  %1879 = vmatpush.bf16.msra.mxu3 %v3364_v14 }
  0x84   : > { %3462 = vset.pattern.permute.xlu1 %v3719_v1 }
  0x85   : > { %246 = vperm.xlu1 %3462, %v3833_v12   ;;  %3463 = vset.pattern.permute.xlu2 %v3719_v1 }
  0x86   : > { %249 = vperm.xlu2 %3463, %v3872_v23   ;;  %v3887_v27 = vpop.permute.xlu2 %228 }
  0x87   : > { %vm277_vm8 = vcmp.eq.s32.totalorder %v3887_v27, %v3919_v39  ;;  %vm278_vm9 = vcmp.eq.s32.totalorder %v3887_v27, %v3939_v45  ;;  %vm279_vm10 = vcmp.eq.s32.totalorder %v3887_v27, %v3942_v46  ;;  %vm280_vm12 = vcmp.eq.s32.totalorder %v3887_v27, %v3945_v47 }
  0x88   : > { %v4064_v9 = vsel %vm277_vm8, 1.0, %v3722_v57  ;;  %v4070_v10 = vsel %vm278_vm9, 1.0, %v3722_v57  ;;  %v4107_v16 = vsel %vm280_vm12, 1.0, %v3722_v57 }
  0x8c   : > { %v3905_v34 = vpop.permute.xlu1 %526  ;;  %v3907_v35 = vpop.permute.xlu0 %222 }
  0x8d   : > { %3464 = vset.pattern.permute.xlu1 %v3718_v0  ;;  %vm573_vm11 = vcmp.eq.s32.totalorder %v3905_v34, %v3919_v39  ;;  %vm574_vm13 = vcmp.eq.s32.totalorder %v3905_v34, %v3939_v45  ;;  %vm575_vm14 = vcmp.eq.s32.totalorder %v3905_v34, %v3942_v46  ;;  %vm576_vm15 = vcmp.eq.s32.totalorder %v3905_v34, %v3945_v47  ;;  %v4179_v34 = vld [vmem:[%s3805_s5 + $0x68] sm:$0xff] }
  0x8e   : > { %550 = vperm.xlu1 %3464, %v3833_v12   ;;  %3465 = vset.pattern.permute.xlu2 %v3718_v0  ;;  %vm269_vm0 = vcmp.eq.s32.totalorder %v3907_v35, %v3919_v39  ;;  %vm270_vm1 = vcmp.eq.s32.totalorder %v3907_v35, %v3939_v45  ;;  %vm271_vm2 = vcmp.eq.s32.totalorder %v3907_v35, %v3942_v46  ;;  %v2918_v17 = vsel %vm573_vm11, 1.0, %v3722_v57 }
  0x8f   : > { %553 = vperm.xlu2 %3465, %v3872_v23   ;;  %v3927_v41 = vpop.permute.xlu2 %532  ;;  %vm272_vm3 = vcmp.eq.s32.totalorder %v3907_v35, %v3945_v47  ;;  %v2919_v18 = vsel %vm574_vm13, 1.0, %v3722_v57  ;;  %v2920_v19 = vsel %vm575_vm14, 1.0, %v3722_v57  ;;  %v2921_v20 = vsel %vm576_vm15, 1.0, %v3722_v57  ;;  %565 = vperm.xlu0 %3480, %v4179_v34  }
  0x90   : > { %vm581_vm4 = vcmp.eq.s32.totalorder %v3927_v41, %v3919_v39  ;;  %vm582_vm5 = vcmp.eq.s32.totalorder %v3927_v41, %v3939_v45  ;;  %vm583_vm6 = vcmp.eq.s32.totalorder %v3927_v41, %v3942_v46  ;;  %v2854_v21 = vsel %vm269_vm0, 1.0, %v3722_v57 }
  0x91   : > { %v2855_v22 = vsel %vm270_vm1, 1.0, %v3722_v57  ;;  %v2856_v24 = vsel %vm271_vm2, 1.0, %v3722_v57  ;;  %vm584_vm7 = vcmp.eq.s32.totalorder %v3927_v41, %v3945_v47  ;;  %v2857_v25 = vsel %vm272_vm3, 1.0, %v3722_v57 }
  0x92   : > { %v2926_v26 = vsel %vm581_vm4, 1.0, %v3722_v57  ;;  %v2927_v27 = vsel %vm582_vm5, 1.0, %v3722_v57  ;;  %v4174_v28 = vsel %vm584_vm7, 1.0, %v3722_v57  ;;  %v765_v31 = vadd.f32 %v2918_v17, %v2854_v21 }
  0x93   : > { %v766_v32 = vadd.f32 %v2919_v18, %v2855_v22  ;;  %v767_v33 = vadd.f32 %v2920_v19, %v2856_v24  ;;  %v768_v42 = vadd.f32 %v2921_v20, %v2857_v25  ;;  %v4213_v43 = vadd.f32 %v2926_v26, %v4064_v9 }
  0x94   : > { %v3955_v50 = vpop.permute.xlu1 %529  ;;  %v3957_v51 = vpop.permute.xlu0 %225  ;;  %v4216_v44 = vadd.f32 %v2927_v27, %v4070_v10  ;;  %v4232_v56 = vadd.f32 %v4001_v58, %v765_v31 }
  0x95   : > { %vm577_vm8 = vcmp.eq.s32.totalorder %v3955_v50, %v3919_v39  ;;  %vm578_vm9 = vcmp.eq.s32.totalorder %v3955_v50, %v3939_v45  ;;  %vm274_vm11 = vcmp.eq.s32.totalorder %v3957_v51, %v3939_v45  ;;  %vm579_vm12 = vcmp.eq.s32.totalorder %v3955_v50, %v3942_v46 }
  0x96   : > { %3466 = vset.pattern.permute.xlu1 %v3720_v2  ;;  %vm580_vm13 = vcmp.eq.s32.totalorder %v3955_v50, %v3945_v47  ;;  %vm275_vm14 = vcmp.eq.s32.totalorder %v3957_v51, %v3942_v46  ;;  %vm276_vm15 = vcmp.eq.s32.totalorder %v3957_v51, %v3945_v47  ;;  %v2922_v35 = vsel %vm577_vm8, 1.0, %v3722_v57 }
  0x97   : > { %857 = vperm.xlu1 %3466, %v3872_v23   ;;  %3467 = vset.pattern.permute.xlu2 %v3721_v7  ;;  %v2923_v36 = vsel %vm578_vm9, 1.0, %v3722_v57  ;;  %v2859_v38 = vsel %vm274_vm11, 1.0, %v3722_v57  ;;  %v2924_v49 = vsel %vm579_vm12, 1.0, %v3722_v57  ;;  %v2925_v50 = vsel %vm580_vm13, 1.0, %v3722_v57 }
  0x98   : > { %1158 = vperm.xlu2 %3467, %v3833_v12   ;;  %v4006_v59 = vpop.permute.xlu2 %839  ;;  %v4085_v12 = vsel %vm279_vm10, 1.0, %v3722_v57  ;;  %vm273_vm10 = vcmp.eq.s32.totalorder %v3957_v51, %v3919_v39  ;;  %v2860_v51 = vsel %vm275_vm14, 1.0, %v3722_v57  ;;  %v2861_v52 = vsel %vm276_vm15, 1.0, %v3722_v57  ;;  %3485 = vset.pattern.permute.xlu0 %v3719_v1 }
  0x99   : > { %v2858_v37 = vsel %vm273_vm10, 1.0, %v3722_v57  ;;  %vm889_vm0 = vcmp.eq.s32.totalorder %v4006_v59, %v3919_v39  ;;  %vm890_vm1 = vcmp.eq.s32.totalorder %v4006_v59, %v3939_v45  ;;  %v770_v54 = vadd.f32 %v2923_v36, %v2859_v38 }
  0x9a   : > { %v769_v53 = vadd.f32 %v2922_v35, %v2858_v37  ;;  %vm891_vm2 = vcmp.eq.s32.totalorder %v4006_v59, %v3942_v46  ;;  %v4235_v63 = vadd.f32 %v4012_v60, %v766_v32  ;;  %v4241_v3 = vsel %vm889_vm0, 1.0, %v3722_v57 }
  0x9b   : > { %v771_v9 = vadd.f32 %v2924_v49, %v2860_v51  ;;  %v4247_v10 = vadd.f32 %v4018_v61, %v767_v33  ;;  %v772_v58 = vadd.f32 %v2925_v50, %v2861_v52  ;;  %v1074_v11 = vadd.f32 %v4042_v5, %v770_v54 }
  0x9c   : > { %v4087_v13 = vpop.permute.xlu0 %234  ;;  %v1073_v61 = vadd.f32 %v4036_v4, %v769_v53  ;;  %v1072_v17 = vadd.f32 %v4024_v62, %v768_v42  ;;  %v4280_v4 = vsel %vm890_vm1, 1.0, %v3722_v57  ;;  %v4315_v26 = vsel %vm891_vm2, 1.0, %v3722_v57 }
  0x9d   : > { %v4101_v15 = vpop.permute.xlu1 %1137  ;;  %vm285_vm4 = vcmp.eq.s32.totalorder %v4087_v13, %v3919_v39  ;;  %vm286_vm5 = vcmp.eq.s32.totalorder %v4087_v13, %v3939_v45  ;;  %vm287_vm8 = vcmp.eq.s32.totalorder %v4087_v13, %v3942_v46  ;;  %vm288_vm10 = vcmp.eq.s32.totalorder %v4087_v13, %v3945_v47 }
  0x9e   : > { %vm1185_vm3 = vcmp.eq.s32.totalorder %v4101_v15, %v3919_v39  ;;  %vm1187_vm7 = vcmp.eq.s32.totalorder %v4101_v15, %v3942_v46  ;;  %vm1188_vm9 = vcmp.eq.s32.totalorder %v4101_v15, %v3945_v47  ;;  %v4286_v5 = vsel %vm285_vm4, 1.0, %v3722_v57 }
  0x9f   : > { %3468 = vset.pattern.permute.xlu1 %v3721_v7  ;;  %v3050_v14 = vsel %vm1185_vm3, 1.0, %v3722_v57  ;;  %v3052_v18 = vsel %vm1187_vm7, 1.0, %v3722_v57  ;;  %v4297_v19 = vsel %vm287_vm8, 1.0, %v3722_v57  ;;  %v1075_v21 = vadd.f32 %v4048_v6, %v771_v9 }
  0xa0   : > { %1161 = vperm.xlu1 %3468, %v3872_v23   ;;  %v2928_v23 = vsel %vm583_vm6, 1.0, %v3722_v57  ;;  %3469 = vset.pattern.permute.xlu2 %v3719_v1  ;;  %vm1186_vm6 = vcmp.eq.s32.totalorder %v4101_v15, %v3939_v45  ;;  %v4292_v15 = vsel %vm286_vm5, 1.0, %v3722_v57  ;;  %v3053_v22 = vsel %vm1188_vm9, 1.0, %v3722_v57 }
  0xa1   : > { %252 = vperm.xlu2 %3469, %v3948_v48   ;;  %v4176_v30 = vpop.permute.xlu2 %1143  ;;  %v4226_v55 = vadd.f32 %v2928_v23, %v4085_v12  ;;  %v3051_v62 = vsel %vm1186_vm6, 1.0, %v3722_v57  ;;  %v4306_v13 = vsel %vm288_vm10, 1.0, %v3722_v57  ;;  %v4308_v24 = vadd.f32 %v3050_v14, %v1073_v61 }
  0xa2   : > { %vm1193_vm11 = vcmp.eq.s32.totalorder %v4176_v30, %v3919_v39  ;;  %v1076_v25 = vadd.f32 %v4054_v8, %v772_v58  ;;  %vm892_vm12 = vcmp.eq.s32.totalorder %v4006_v59, %v3945_v47  ;;  %v1378_v6 = vadd.f32 %v3051_v62, %v1074_v11 }
  0xa3   : > { %v4320_v27 = vadd.f32 %v3052_v18, %v1075_v21  ;;  %vm1194_vm13 = vcmp.eq.s32.totalorder %v4176_v30, %v3939_v45  ;;  %vm1195_vm14 = vcmp.eq.s32.totalorder %v4176_v30, %v3942_v46  ;;  %v4332_v23 = vsel %vm1193_vm11, 1.0, %v3722_v57 }
  0xa4   : > { %v1380_v8 = vadd.f32 %v3053_v22, %v1076_v25  ;;  %v4348_v31 = vsel %vm1195_vm14, 1.0, %v3722_v57  ;;  %v4352_v32 = vadd.f32 %v4174_v28, %v4107_v16  ;;  %vm1196_vm5 = vcmp.eq.s32.totalorder %v4176_v30, %v3945_v47 }
  0xa5   : > { %v4206_v40 = vpop.permute.xlu0 %535  ;;  %v3061_v18 = vsel %vm1196_vm5, 1.0, %v3722_v57 }
  0xa6   : > { %v4210_v41 = vpop.permute.xlu1 %231  ;;  %vm585_vm3 = vcmp.eq.s32.totalorder %v4206_v40, %v3919_v39  ;;  %vm586_vm4 = vcmp.eq.s32.totalorder %v4206_v40, %v3939_v45  ;;  %vm587_vm6 = vcmp.eq.s32.totalorder %v4206_v40, %v3942_v46  ;;  %vm588_vm7 = vcmp.eq.s32.totalorder %v4206_v40, %v3945_v47  ;;  %v4403_v40 = vld [vmem:[%s3805_s5 + $0x60] sm:$0xff] }
  0xa7   : > { %vm281_vm15 = vcmp.eq.s32.totalorder %v4210_v41, %v3919_v39  ;;  %vm282_vm0 = vcmp.eq.s32.totalorder %v4210_v41, %v3939_v45  ;;  %vm283_vm1 = vcmp.eq.s32.totalorder %v4210_v41, %v3942_v46  ;;  %vm284_vm2 = vcmp.eq.s32.totalorder %v4210_v41, %v3945_v47 }
  0xa8   : > { %3471 = vset.pattern.permute.xlu1 %v3718_v0  ;;  %v2866_v33 = vsel %vm281_vm15, 1.0, %v3722_v57  ;;  %v2867_v35 = vsel %vm282_vm0, 1.0, %v3722_v57  ;;  %v2868_v37 = vsel %vm283_vm1, 1.0, %v3722_v57  ;;  %v2869_v16 = vsel %vm284_vm2, 1.0, %v3722_v57 }
  0xa9   : > { %556 = vperm.xlu1 %3471, %v3948_v48   ;;  %3472 = vset.pattern.permute.xlu2 %v3718_v0  ;;  %v2930_v28 = vsel %vm585_vm3, 1.0, %v3722_v57  ;;  %v2931_v38 = vsel %vm586_vm4, 1.0, %v3722_v57  ;;  %v2932_v61 = vsel %vm587_vm6, 1.0, %v3722_v57  ;;  %v2933_v11 = vsel %vm588_vm7, 1.0, %v3722_v57 }
  0xaa   : > { %559 = vperm.xlu2 %3472, %v3893_v29   ;;  %v4254_v60 = vpop.permute.xlu2 %538  ;;  %v778_v62 = vadd.f32 %v2931_v38, %v2867_v35  ;;  %v779_v22 = vadd.f32 %v2932_v61, %v2868_v37 }
  0xab   : > { %vm590_vm14 = vcmp.eq.s32.totalorder %v4254_v60, %v3939_v45  ;;  %vm591_vm15 = vcmp.eq.s32.totalorder %v4254_v60, %v3942_v46  ;;  %vm592_vm0 = vcmp.eq.s32.totalorder %v4254_v60, %v3945_v47 }
  0xac   : > { %v2935_v21 = vsel %vm590_vm14, 1.0, %v3722_v57  ;;  %v2936_v30 = vsel %vm591_vm15, 1.0, %v3722_v57  ;;  %v2937_v25 = vsel %vm592_vm0, 1.0, %v3722_v57  ;;  %v1082_v37 = vadd.f32 %v4280_v4, %v778_v62 }
  0xad   : > { %v4269_v12 = vpop.permute.xlu0 %544  ;;  %v1083_v4 = vadd.f32 %v4315_v26, %v779_v22 }
  0xaf   : > { %v4299_v20 = vpop.permute.xlu1 %836 }
  0xb0   : > { %vm885_vm1 = vcmp.eq.s32.totalorder %v4299_v20, %v3919_v39  ;;  %vm886_vm2 = vcmp.eq.s32.totalorder %v4299_v20, %v3939_v45  ;;  %vm888_vm3 = vcmp.eq.s32.totalorder %v4299_v20, %v3945_v47 }
  0xb1   : > { %3473 = vset.pattern.permute.xlu1 %v3720_v2 }
  0xb2   : > { %860 = vperm.xlu1 %3473, %v3948_v48   ;;  %3474 = vset.pattern.permute.xlu2 %v3720_v2  ;;  %v4345_v48 = vsel %vm1194_vm13, 1.0, %v3722_v57  ;;  %vm589_vm13 = vcmp.eq.s32.totalorder %v4254_v60, %v3919_v39  ;;  %v2991_v60 = vsel %vm886_vm2, 1.0, %v3722_v57 }
  0xb3   : > { %863 = vperm.xlu2 %3474, %v3893_v29   ;;  %v4362_v36 = vpop.permute.xlu2 %842  ;;  %v2934_v59 = vsel %vm589_vm13, 1.0, %v3722_v57  ;;  %v1078_v26 = vadd.f32 %v2991_v60, %v4216_v44  ;;  %v1386_v61 = vadd.f32 %v4345_v48, %v1082_v37  ;;  %v4533_v48 = vld [vmem:[%s3805_s5 + $0x78] sm:$0xff] }
  0xb6   : > { %v1135_v41 = vpop.permute.xlu0 %1134 }
  0xb7   : > { %vm1181_vm8 = vcmp.eq.s32.totalorder %v1135_v41, %v3919_v39  ;;  %vm1182_vm9 = vcmp.eq.s32.totalorder %v1135_v41, %v3939_v45  ;;  %vm1183_vm10 = vcmp.eq.s32.totalorder %v1135_v41, %v3942_v46  ;;  %vm1184_vm11 = vcmp.eq.s32.totalorder %v1135_v41, %v3945_v47 }
  0xb8   : > { %v4372_v42 = vpop.permute.xlu1 %1140  ;;  %v3046_v49 = vsel %vm1181_vm8, 1.0, %v3722_v57  ;;  %v3047_v50 = vsel %vm1182_vm9, 1.0, %v3722_v57  ;;  %v3048_v51 = vsel %vm1183_vm10, 1.0, %v3722_v57  ;;  %v3049_v52 = vsel %vm1184_vm11, 1.0, %v3722_v57 }
  0xb9   : > { %v1373_v53 = vadd.f32 %v3046_v49, %v4232_v56  ;;  %v1374_v54 = vadd.f32 %v3047_v50, %v4235_v63  ;;  %v1375_v9 = vadd.f32 %v3048_v51, %v4247_v10  ;;  %v1376_v58 = vadd.f32 %v3049_v52, %v1072_v17 }
  0xba   : > { %3476 = vset.pattern.permute.xlu1 %v3721_v7  ;;  %v777_v17 = vadd.f32 %v2930_v28, %v2866_v33  ;;  %vm1189_vm4 = vcmp.eq.s32.totalorder %v4372_v42, %v3919_v39  ;;  %v4452_v33 = vld [vmem:[%s3805_s5 + $0x70] sm:$0xff]  ;;  %vm1190_vm5 = vcmp.eq.s32.totalorder %v4372_v42, %v3939_v45  ;;  %vm1191_vm6 = vcmp.eq.s32.totalorder %v4372_v42, %v3942_v46  ;;  %s5891_s5 = scalar_lea.vmem [#allocation2], %s2851_s30 }
  0xbb   : > { %1167 = vperm.xlu1 %3476, %v3893_v29   ;;  %v1437_v56 = vpack.c.bf16 %v4308_v24, %v1373_v53  ;;  %v1438_v63 = vpack.c.bf16 %v1378_v6, %v1374_v54  ;;  %v1439_v10 = vpack.c.bf16 %v4320_v27, %v1375_v9  ;;  %v1440_v14 = vpack.c.bf16 %v1380_v8, %v1376_v58  ;;  %s2782_s10 = sshll.u32 %s5891_s5, 4  ;;  %s2783_s10 = int_to_ptr.vmem [resolvable:$true] %s2782_s10 }
  0xbc   : > { %3477 = vset.pattern.permute.xlu2 %v3719_v1  ;;  %v2997_v29 = vsel %vm892_vm12, 1.0, %v3722_v57  ;;  %v780_v24 = vadd.f32 %v2933_v11, %v2869_v16  ;;  %vm887_vm12 = vcmp.eq.s32.totalorder %v4299_v20, %v3942_v46  ;;  %v4438_v6 = vpop.permute.xlu2 %1149  ;;  %v2990_v27 = vsel %vm885_vm1, 1.0, %v3722_v57  ;;  %264 = vperm.xlu0 %3485, %v4452_v33  }
  0xbd   : > { %1733 = vmatmul.bf16.vlgmr.msra.gmra.mxu0 %v1437_v56  ;;  %1782 = vmatmul.bf16.vlgmr.msra.gmra.mxu1 %v1438_v63  ;;  %v1081_v8 = vadd.f32 %v4241_v3, %v777_v17  ;;  %vm1192_vm7 = vcmp.eq.s32.totalorder %v4372_v42, %v3945_v47  ;;  %v2992_v16 = vsel %vm887_vm12, 1.0, %v3722_v57  ;;  %v2993_v28 = vsel %vm888_vm3, 1.0, %v3722_v57 }
  0xbe   : > { %1831 = vmatmul.bf16.vlgmr.msra.gmra.mxu2 %v1439_v10  ;;  %1880 = vmatmul.bf16.vlgmr.msra.gmra.mxu3 %v1440_v14  ;;  %v4464_v3 = vpop.permute.xlu0 %1155  ;;  %v1084_v38 = vadd.f32 %v2997_v29, %v780_v24  ;;  %vm893_vm8 = vcmp.eq.s32.totalorder %v4362_v36, %v3919_v39  ;;  %v1077_v41 = vadd.f32 %v2990_v27, %v4213_v43  ;;  %v3054_v49 = vsel %vm1189_vm4, 1.0, %v3722_v57 }
  0xbf   : > { %258 = vperm.xlu2 %3477, %v4403_v40   ;;  %vm894_vm9 = vcmp.eq.s32.totalorder %v4362_v36, %v3939_v45  ;;  %v3055_v20 = vsel %vm1190_vm5, 1.0, %v3722_v57  ;;  %v3056_v43 = vsel %vm1191_vm6, 1.0, %v3722_v57  ;;  %v3057_v44 = vsel %vm1192_vm7, 1.0, %v3722_v57 }
  0xc0   : > { %vm895_vm10 = vcmp.eq.s32.totalorder %v4362_v36, %v3942_v46  ;;  %v1079_v50 = vadd.f32 %v2992_v16, %v4226_v55  ;;  %v1080_v51 = vadd.f32 %v2993_v28, %v4352_v32  ;;  %v781_v52 = vadd.f32 %v2934_v59, %v4286_v5 }
  0xc1   : > { %v4454_v35 = vpop.permute.xlu1 %237  ;;  %vm896_vm11 = vcmp.eq.s32.totalorder %v4362_v36, %v3945_v47  ;;  %v1381_v53 = vadd.f32 %v3054_v49, %v1077_v41  ;;  %v2998_v54 = vsel %vm893_vm8, 1.0, %v3722_v57  ;;  %v782_v42 = vadd.f32 %v2935_v21, %v4292_v15 }
  0xc2   : > { %v1382_v9 = vadd.f32 %v3055_v20, %v1078_v26  ;;  %v1383_v55 = vadd.f32 %v3056_v43, %v1079_v50  ;;  %v1384_v58 = vadd.f32 %v3057_v44, %v1080_v51  ;;  %v2999_v5 = vsel %vm894_vm9, 1.0, %v3722_v57 }
  0xc3   : > { %3478 = vset.pattern.permute.xlu1 %v3719_v1  ;;  %v1385_v32 = vadd.f32 %v4332_v23, %v1081_v8  ;;  %v1387_v11 = vadd.f32 %v4348_v31, %v1083_v4  ;;  %v1388_v56 = vadd.f32 %v3061_v18, %v1084_v38  ;;  %v4522_v63 = vadd.f32 %v2998_v54, %v781_v52 }
  0xc4   : > { %261 = vperm.xlu1 %3478, %v4179_v34   ;;  %v783_v10 = vadd.f32 %v2936_v30, %v4297_v19  ;;  %v3000_v14 = vsel %vm895_vm10, 1.0, %v3722_v57  ;;  %v4530_v23 = vadd.f32 %v2937_v25, %v4306_v13  ;;  %3490 = vset.pattern.permute.xlu0 %v3720_v2  ;;  %vm1201_vm13 = vcmp.eq.s32.totalorder %v4438_v6, %v3919_v39 }
  0xc5   : > { %v4520_v15 = vpop.permute.xlu2 %243  ;;  %v1441_v17 = vpack.c.bf16 %v1385_v32, %v1381_v53  ;;  %v4538_v29 = vadd.f32 %v2999_v5, %v782_v42  ;;  %v4544_v19 = vsel %vm896_vm11, 1.0, %v3722_v57  ;;  %875 = vperm.xlu0 %3490, %v4533_v48   ;;  %v1442_v13 = vpack.c.bf16 %v1386_v61, %v1382_v9 }
  0xc6   : > { %v1443_v62 = vpack.c.bf16 %v1387_v11, %v1383_v55  ;;  %v1444_v18 = vpack.c.bf16 %v1388_v56, %v1384_v58  ;;  %vm289_vm15 = vcmp.eq.s32.totalorder %v4454_v35, %v3919_v39  ;;  %vm1202_vm2 = vcmp.eq.s32.totalorder %v4438_v6, %v3939_v45 }
  0xc7   : > { %3479 = vset.pattern.permute.xlu2 %v3718_v0  ;;  %v846_v59 = vpop.permute.xlu0 %845  ;;  %v3066_v36 = vsel %vm1201_vm13, 1.0, %v3722_v57  ;;  %v1087_v21 = vadd.f32 %v3000_v14, %v783_v10  ;;  %vm1203_vm3 = vcmp.eq.s32.totalorder %v4438_v6, %v3942_v46  ;;  %vm290_vm4 = vcmp.eq.s32.totalorder %v4454_v35, %v3939_v45 }
  0xc8   : > { %562 = vperm.xlu2 %3479, %v4403_v40   ;;  %vm291_vm5 = vcmp.eq.s32.totalorder %v4454_v35, %v3942_v46  ;;  %vm292_vm6 = vcmp.eq.s32.totalorder %v4454_v35, %v3945_v47  ;;  %v2874_v24 = vsel %vm289_vm15, 1.0, %v3722_v57  ;;  %vm897_vm7 = vcmp.eq.s32.totalorder %v846_v59, %v3919_v39 }
  0xc9   : > { %vm898_vm8 = vcmp.eq.s32.totalorder %v846_v59, %v3939_v45  ;;  %vm899_vm9 = vcmp.eq.s32.totalorder %v846_v59, %v3942_v46  ;;  %vm900_vm10 = vcmp.eq.s32.totalorder %v846_v59, %v3945_v47  ;;  %v2875_v8 = vsel %vm290_vm4, 1.0, %v3722_v57 }
  0xca   : > { %v542_v31 = vpop.permute.xlu1 %541  ;;  %v2876_v60 = vsel %vm291_vm5, 1.0, %v3722_v57  ;;  %vm1204_vm11 = vcmp.eq.s32.totalorder %v4438_v6, %v3945_v47  ;;  %v2877_v16 = vsel %vm292_vm6, 1.0, %v3722_v57  ;;  %v3002_v4 = vsel %vm897_vm7, 1.0, %v3722_v57 }
  0xcb   : > { %vm593_vm14 = vcmp.eq.s32.totalorder %v542_v31, %v3919_v39  ;;  %vm594_vm0 = vcmp.eq.s32.totalorder %v542_v31, %v3939_v45  ;;  %vm595_vm1 = vcmp.eq.s32.totalorder %v542_v31, %v3942_v46  ;;  %vm596_vm12 = vcmp.eq.s32.totalorder %v542_v31, %v3945_v47 }
  0xcc   : > { %3481 = vset.pattern.permute.xlu1 %v3720_v2  ;;  %v2938_v22 = vsel %vm593_vm14, 1.0, %v3722_v57  ;;  %v2939_v30 = vsel %vm594_vm0, 1.0, %v3722_v57  ;;  %v2940_v25 = vsel %vm595_vm1, 1.0, %v3722_v57  ;;  %v2941_v27 = vsel %vm596_vm12, 1.0, %v3722_v57 }
  0xcd   : > { %866 = vperm.xlu1 %3481, %v4403_v40   ;;  %1738 = vmatmul.bf16.gmra.mxu0 %v1441_v17  ;;  %v785_v37 = vadd.f32 %v2938_v22, %v2874_v24  ;;  %v786_v28 = vadd.f32 %v2939_v30, %v2875_v8  ;;  %v787_v38 = vadd.f32 %v2940_v25, %v2876_v60  ;;  %v3003_v26 = vsel %vm898_vm8, 1.0, %v3722_v57 }
  0xce   : > { %1787 = vmatmul.bf16.gmra.mxu1 %v1442_v13  ;;  %1836 = vmatmul.bf16.gmra.mxu2 %v1443_v62  ;;  %v4607_v49 = vpop.permute.xlu2 %848  ;;  %v3004_v20 = vsel %vm899_vm9, 1.0, %v3722_v57  ;;  %v788_v43 = vadd.f32 %v2941_v27, %v2877_v16  ;;  %v3005_v35 = vsel %vm900_vm10, 1.0, %v3722_v57  ;;  %v3067_v54 = vsel %vm1202_vm2, 1.0, %v3722_v57 }
  0xcf   : > { %1885 = vmatmul.bf16.gmra.mxu3 %v1444_v18  ;;  %3493 = vset.pattern.permute.xlu0 %v3721_v7  ;;  %v1089_v44 = vadd.f32 %v3002_v4, %v785_v37  ;;  %v1090_v53 = vadd.f32 %v3003_v26, %v786_v28  ;;  %v1091_v42 = vadd.f32 %v3004_v20, %v787_v38  ;;  %v3068_v58 = vsel %vm1203_vm3, 1.0, %v3722_v57 }
  0xd0   : > { %3482 = vset.pattern.permute.xlu2 %v3720_v2  ;;  %v1088_v5 = vadd.f32 %v4544_v19, %v4530_v23  ;;  %v3069_v11 = vsel %vm1204_vm11, 1.0, %v3722_v57  ;;  %vm597_vm1 = vcmp.eq.s32.totalorder %v4269_v12, %v3919_v39  ;;  %vm598_vm2 = vcmp.eq.s32.totalorder %v4269_v12, %v3939_v45 }
  0xd1   : > { %869 = vperm.xlu2 %3482, %v4179_v34   ;;  %v1393_v56 = vadd.f32 %v3066_v36, %v1089_v44  ;;  %v1395_v14 = vadd.f32 %v3068_v58, %v1091_v42  ;;  %vm599_vm12 = vcmp.eq.s32.totalorder %v4269_v12, %v3942_v46  ;;  %vm600_vm3 = vcmp.eq.s32.totalorder %v4269_v12, %v3945_v47  ;;  %v3298_v58 = vld [vmem:[%s6053_s2 + $0x78] sm:$0xf0] }
  0xd2   : > { %vm297_vm4 = vcmp.eq.s32.totalorder %v4520_v15, %v3919_v39  ;;  %vm298_vm5 = vcmp.eq.s32.totalorder %v4520_v15, %v3939_v45  ;;  %vm299_vm6 = vcmp.eq.s32.totalorder %v4520_v15, %v3942_v46  ;;  %v2942_v13 = vsel %vm597_vm1, 1.0, %v3722_v57 }
  0xd3   : > { %v1147_v41 = vpop.permute.xlu1 %1146  ;;  %v2943_v62 = vsel %vm598_vm2, 1.0, %v3722_v57  ;;  %vm300_vm7 = vcmp.eq.s32.totalorder %v4520_v15, %v3945_v47  ;;  %vm901_vm8 = vcmp.eq.s32.totalorder %v4607_v49, %v3919_v39  ;;  %v2944_v18 = vsel %vm599_vm12, 1.0, %v3722_v57 }
  0xd4   : > { %vm1197_vm13 = vcmp.eq.s32.totalorder %v1147_v41, %v3919_v39  ;;  %vm1198_vm14 = vcmp.eq.s32.totalorder %v1147_v41, %v3939_v45  ;;  %vm1199_vm15 = vcmp.eq.s32.totalorder %v1147_v41, %v3942_v46  ;;  %vm1200_vm0 = vcmp.eq.s32.totalorder %v1147_v41, %v3945_v47 }
  0xd5   : > { %3483 = vset.pattern.permute.xlu1 %v3721_v7  ;;  %v3062_v50 = vsel %vm1197_vm13, 1.0, %v3722_v57  ;;  %v3063_v51 = vsel %vm1198_vm14, 1.0, %v3722_v57  ;;  %v3064_v52 = vsel %vm1199_vm15, 1.0, %v3722_v57  ;;  %v3065_v9 = vsel %vm1200_vm0, 1.0, %v3722_v57 }
  0xd6   : > { %1170 = vperm.xlu1 %3483, %v4403_v40   ;;  %v1389_v55 = vadd.f32 %v3062_v50, %v4522_v63  ;;  %v1092_v40 = vadd.f32 %v3005_v35, %v788_v43  ;;  %v1390_v32 = vadd.f32 %v3063_v51, %v4538_v29  ;;  %v1391_v61 = vadd.f32 %v3064_v52, %v1087_v21  ;;  %v3296_v52 = vld [vmem:[%s6053_s2 + $0x68] sm:$0xf] }
  0xd7   : > { %v1392_v10 = vadd.f32 %v3065_v9, %v1088_v5  ;;  %v1394_v63 = vadd.f32 %v3067_v54, %v1090_v53  ;;  %v4660_v19 = vpop.permute.xlu2 %1152  ;;  %v2945_v59 = vsel %vm600_vm3, 1.0, %v3722_v57  ;;  %v4686_v36 = vsel %vm297_vm4, 1.0, %v3722_v57  ;;  %v3385_v53 = vld [vmem:[%s6053_s2 + $0x6c] sm:$0xf] }
  0xd8   : > { %v1445_v6 = vpack.c.bf16 %v1393_v56, %v1389_v55  ;;  %v1396_v23 = vadd.f32 %v3069_v11, %v1092_v40  ;;  %v1447_v29 = vpack.c.bf16 %v1395_v14, %v1391_v61  ;;  %v4692_v21 = vsel %vm298_vm5, 1.0, %v3722_v57  ;;  %v3288_v11 = vld [vmem:[%s6053_s2 + $0x60] sm:$0xf]  ;;  %v3386_v56 = vld [vmem:[%s6053_s2 + $0x6c] sm:$0xf0] }
  0xd9   : > { %3484 = vset.pattern.permute.xlu2 %v3721_v7  ;;  %v1446_v17 = vpack.c.bf16 %v1394_v63, %v1390_v32  ;;  %v4699_v12 = vsel %vm299_vm6, 1.0, %v3722_v57  ;;  %vm902_vm9 = vcmp.eq.s32.totalorder %v4607_v49, %v3939_v45  ;;  %vm903_vm10 = vcmp.eq.s32.totalorder %v4607_v49, %v3942_v46 }
  0xda   : > { %1173 = vperm.xlu2 %3484, %v4179_v34   ;;  %v1448_v34 = vpack.c.bf16 %v1396_v23, %v1392_v10  ;;  %vm904_vm11 = vcmp.eq.s32.totalorder %v4607_v49, %v3945_v47  ;;  %v4709_v22 = vsel %vm300_vm7, 1.0, %v3722_v57  ;;  %vm1205_vm14 = vcmp.eq.s32.totalorder %v4660_v19, %v3919_v39  ;;  %v3290_v23 = vld [vmem:[%s6053_s2 + $0x70] sm:$0xf0] }
  0xdb   : > { %vm1209_vm1 = vcmp.eq.s32.totalorder %v4464_v3, %v3919_v39  ;;  %vm1206_vm2 = vcmp.eq.s32.totalorder %v4660_v19, %v3939_v45  ;;  %v3007_v15 = vsel %vm902_vm9, 1.0, %v3722_v57  ;;  %v3008_v24 = vsel %vm903_vm10, 1.0, %v3722_v57 }
  0xdc   : > { %v241_v31 = vpop.permute.xlu1 %240  ;;  %v3009_v30 = vsel %vm904_vm11, 1.0, %v3722_v57  ;;  %v4732_v27 = vsel %vm1205_vm14, 1.0, %v3722_v57  ;;  %vm1210_vm3 = vcmp.eq.s32.totalorder %v4464_v3, %v3939_v45  ;;  %vm1207_vm4 = vcmp.eq.s32.totalorder %v4660_v19, %v3942_v46 }
  0xdd   : > { %1743 = vmatmul.bf16.gmra.mxu0 %v1445_v6  ;;  %vm293_vm13 = vcmp.eq.s32.totalorder %v241_v31, %v3919_v39  ;;  %vm294_vm15 = vcmp.eq.s32.totalorder %v241_v31, %v3939_v45  ;;  %vm295_vm0 = vcmp.eq.s32.totalorder %v241_v31, %v3942_v46  ;;  %vm296_vm12 = vcmp.eq.s32.totalorder %v241_v31, %v3945_v47 }
  0xde   : > { %1792 = vmatmul.bf16.gmra.mxu1 %v1446_v17  ;;  %1841 = vmatmul.bf16.gmra.mxu2 %v1447_v29  ;;  %v2878_v25 = vsel %vm293_vm13, 1.0, %v3722_v57  ;;  %v2879_v8 = vsel %vm294_vm15, 1.0, %v3722_v57  ;;  %v2880_v60 = vsel %vm295_vm0, 1.0, %v3722_v57  ;;  %v4743_v4 = vsel %vm1209_vm1, 1.0, %v3722_v57 }
  0xdf   : > { %1890 = vmatmul.bf16.gmra.mxu3 %v1448_v34  ;;  %3486 = vset.pattern.permute.xlu1 %v3719_v1  ;;  %v3006_v1 = vsel %vm901_vm8, 1.0, %v3722_v57  ;;  %v4746_v28 = vsel %vm1206_vm2, 1.0, %v3722_v57  ;;  %v2881_v38 = vsel %vm296_vm12, 1.0, %v3722_v57  ;;  %vm1211_vm7 = vcmp.eq.s32.totalorder %v4464_v3, %v3942_v46 }
  0xe0   : > { %267 = vperm.xlu1 %3486, %v4533_v48   ;;  %v4740_v16 = vpop.permute.xlu2 %249  ;;  %v789_v41 = vadd.f32 %v2942_v13, %v2878_v25  ;;  %v4754_v49 = vsel %vm1210_vm3, 1.0, %v3722_v57  ;;  %v3072_v26 = vsel %vm1207_vm4, 1.0, %v3722_v57  ;;  %vm1208_vm8 = vcmp.eq.s32.totalorder %v4660_v19, %v3945_v47 }
  0xe1   : > { %v790_v20 = vadd.f32 %v2943_v62, %v2879_v8  ;;  %v791_v43 = vadd.f32 %v2944_v18, %v2880_v60  ;;  %v3076_v50 = vsel %vm1211_vm7, 1.0, %v3722_v57  ;;  %v792_v51 = vadd.f32 %v2945_v59, %v2881_v38 }
  0xe2   : > { %3487 = vset.pattern.permute.xlu2 %v3718_v0  ;;  %vm1212_vm11 = vcmp.eq.s32.totalorder %v4464_v3, %v3945_v47  ;;  %v1093_v9 = vadd.f32 %v3006_v1, %v789_v41  ;;  %v3073_v55 = vsel %vm1208_vm8, 1.0, %v3722_v57  ;;  %v3301_v61 = vor.u32 %v3385_v53, %v3298_v58  ;;  %v3280_v58 = vld [vmem:[%s6053_s2 + $0x48] sm:$0xf] }
  0xe3   : > { %568 = vperm.xlu2 %3487, %v4452_v33   ;;  %v1094_v5 = vadd.f32 %v3007_v15, %v790_v20  ;;  %v1095_v40 = vadd.f32 %v3008_v24, %v791_v43  ;;  %v1096_v14 = vadd.f32 %v3009_v30, %v792_v51  ;;  %v3289_v6 = vor.u32 %v3386_v56, %v3288_v11 }
  0xe4   : > { %v3077_v34 = vsel %vm1212_vm11, 1.0, %v3722_v57  ;;  %2211 = vmatpush.bf16.msrb.mxu3 %v3301_v61  ;;  %v1397_v1 = vadd.f32 %v4732_v27, %v1093_v9  ;;  %vm305_vm1 = vcmp.eq.s32.totalorder %v4740_v16, %v3919_v39  ;;  %vm306_vm2 = vcmp.eq.s32.totalorder %v4740_v16, %v3939_v45 }
  0xe5   : > { %v548_v37 = vpop.permute.xlu1 %547  ;;  %2064 = vmatpush.bf16.msrb.mxu0 %v3289_v6  ;;  %v1398_v15 = vadd.f32 %v4746_v28, %v1094_v5  ;;  %v1399_v24 = vadd.f32 %v3072_v26, %v1095_v40  ;;  %v1400_v30 = vadd.f32 %v3073_v55, %v1096_v14  ;;  %vm307_vm12 = vcmp.eq.s32.totalorder %v4740_v16, %v3942_v46  ;;  %v3383_v5 = vld [vmem:[%s6053_s2 + $0x54] sm:$0xf0] }
  0xe6   : > { %vm601_vm5 = vcmp.eq.s32.totalorder %v548_v37, %v3919_v39  ;;  %vm602_vm6 = vcmp.eq.s32.totalorder %v548_v37, %v3939_v45  ;;  %vm603_vm9 = vcmp.eq.s32.totalorder %v548_v37, %v3942_v46  ;;  %vm604_vm10 = vcmp.eq.s32.totalorder %v548_v37, %v3945_v47 }
  0xe7   : > { %v2946_v35 = vsel %vm601_vm5, 1.0, %v3722_v57  ;;  %v2947_v44 = vsel %vm602_vm6, 1.0, %v3722_v57  ;;  %v2948_v54 = vsel %vm603_vm9, 1.0, %v3722_v57  ;;  %v2949_v42 = vsel %vm604_vm10, 1.0, %v3722_v57 }
  0xe8   : > { %3488 = vset.pattern.permute.xlu1 %v3718_v0  ;;  %v3387_v0 = vld [vmem:[%s6053_s2 + $0x74] sm:$0xf0]  ;;  %v793_v10 = vadd.f32 %v2946_v35, %v4686_v36  ;;  %v794_v63 = vadd.f32 %v2947_v44, %v4692_v21  ;;  %v795_v17 = vadd.f32 %v2948_v54, %v4699_v12  ;;  %v796_v29 = vadd.f32 %v2949_v42, %v4709_v22 }
  0xe9   : > { %571 = vperm.xlu1 %3488, %v4533_v48   ;;  %v3297_v32 = vor.u32 %v3387_v0, %v3296_v52  ;;  %v554_v13 = vpop.permute.xlu2 %553  ;;  %vm308_vm3 = vcmp.eq.s32.totalorder %v4740_v16, %v3945_v47  ;;  %v4843_v28 = vsel %vm307_vm12, 1.0, %v3722_v57  ;;  %v3281_v14 = vor.u32 %v3383_v5, %v3280_v58 }
  0xea   : > { %vm609_vm4 = vcmp.eq.s32.totalorder %v554_v13, %v3919_v39  ;;  %vm610_vm5 = vcmp.eq.s32.totalorder %v554_v13, %v3939_v45  ;;  %vm611_vm6 = vcmp.eq.s32.totalorder %v554_v13, %v3942_v46  ;;  %vm612_vm7 = vcmp.eq.s32.totalorder %v554_v13, %v3945_v47 }
  0xeb   : > { %3489 = vset.pattern.permute.xlu2 %v3720_v2  ;;  %v3384_v2 = vld [vmem:[%s6053_s2 + $0x64] sm:$0xf]  ;;  %2162 = vmatpush.bf16.msrb.mxu2 %v3297_v32  ;;  %v4848_v16 = vsel %vm308_vm3, 1.0, %v3722_v57  ;;  %v2954_v35 = vsel %vm609_vm4, 1.0, %v3722_v57  ;;  %v2955_v44 = vsel %vm610_vm5, 1.0, %v3722_v57  ;;  %v2957_v51 = vsel %vm612_vm7, 1.0, %v3722_v57 }
  0xec   : > { %872 = vperm.xlu2 %3489, %v4452_v33   ;;  %v3293_v19 = vor.u32 %v3384_v2, %v3290_v23 }
  0xee   : > { %v852_v31 = vpop.permute.xlu1 %851  ;;  %2113 = vmatpush.bf16.msrb.mxu1 %v3293_v19 }
  0xef   : > { %vm905_vm13 = vcmp.eq.s32.totalorder %v852_v31, %v3919_v39  ;;  %vm906_vm14 = vcmp.eq.s32.totalorder %v852_v31, %v3939_v45  ;;  %vm907_vm15 = vcmp.eq.s32.totalorder %v852_v31, %v3942_v46  ;;  %vm908_vm0 = vcmp.eq.s32.totalorder %v852_v31, %v3945_v47  ;;  %2163 = vmatpush.bf16.msrb.mxu2 %v3281_v14 }
  0xf0   : > { %v3010_v62 = vsel %vm905_vm13, 1.0, %v3722_v57  ;;  %v3011_v18 = vsel %vm906_vm14, 1.0, %v3722_v57  ;;  %v3012_v3 = vsel %vm907_vm15, 1.0, %v3722_v57  ;;  %v3013_v59 = vsel %vm908_vm0, 1.0, %v3722_v57 }
  0xf1   : > { %3491 = vset.pattern.permute.xlu1 %v3721_v7  ;;  %v1097_v36 = vadd.f32 %v3010_v62, %v793_v10  ;;  %v1098_v21 = vadd.f32 %v3011_v18, %v794_v63  ;;  %v1099_v12 = vadd.f32 %v3012_v3, %v795_v17  ;;  %v1100_v22 = vadd.f32 %v3013_v59, %v796_v29 }
  0xf2   : > { %1176 = vperm.xlu1 %3491, %v4452_v33   ;;  %v4824_v27 = vpop.permute.xlu2 %1158 }
  0xf3   : > { %v1401_v25 = vadd.f32 %v4743_v4, %v1097_v36  ;;  %v1402_v8 = vadd.f32 %v4754_v49, %v1098_v21  ;;  %v1403_v60 = vadd.f32 %v3076_v50, %v1099_v12  ;;  %v1404_v37 = vadd.f32 %v3077_v34, %v1100_v22  ;;  %v3381_v36 = vld [vmem:[%s6053_s2 + $0x4c] sm:$0xf]  ;;  %v3282_v21 = vld [vmem:[%s6053_s2 + $0x58] sm:$0xf0]  ;;  %v3272_v12 = vld [vmem:[%s6053_s2 + $0x40] sm:$0xf] }
  0xf4   : > { %3492 = vset.pattern.permute.xlu2 %v3721_v7  ;;  %v855_v7 = vpop.permute.xlu0 %854  ;;  %v4840_v4 = vsel %vm306_vm2, 1.0, %v3722_v57  ;;  %v2956_v50 = vsel %vm611_vm6, 1.0, %v3722_v57  ;;  %vm1213_vm4 = vcmp.eq.s32.totalorder %v4824_v27, %v3919_v39  ;;  %vm1214_vm5 = vcmp.eq.s32.totalorder %v4824_v27, %v3939_v45 }
  0xf5   : > { %v1449_v38 = vpack.c.bf16 %v1401_v25, %v1397_v1  ;;  %v1450_v41 = vpack.c.bf16 %v1402_v8, %v1398_v15  ;;  %v1451_v20 = vpack.c.bf16 %v1403_v60, %v1399_v24  ;;  %v1452_v43 = vpack.c.bf16 %v1404_v37, %v1400_v30  ;;  %1179 = vperm.xlu2 %3492, %v4533_v48   ;;  %v3382_v24 = vld [vmem:[%s6053_s2 + $0x4c] sm:$0xf0]  ;;  %v3380_v30 = vld [vmem:[%s6053_s2 + $0x44] sm:$0xf]  ;;  %v3274_v25 = vld [vmem:[%s6053_s2 + $0x50] sm:$0xf0] }
  0xf6   : > { %v4835_v48 = vsel %vm305_vm1, 1.0, %v3722_v57  ;;  %vm909_vm9 = vcmp.eq.s32.totalorder %v855_v7, %v3919_v39  ;;  %vm910_vm10 = vcmp.eq.s32.totalorder %v855_v7, %v3939_v45  ;;  %vm911_vm12 = vcmp.eq.s32.totalorder %v855_v7, %v3942_v46 }
  0xf7   : > { %v247_v33 = vpop.permute.xlu1 %246  ;;  %1748 = vmatmul.bf16.gmra.mxu0 %v1449_v38  ;;  %1797 = vmatmul.bf16.gmra.mxu1 %v1450_v41  ;;  %v3014_v0 = vsel %vm909_vm9, 1.0, %v3722_v57  ;;  %v3015_v53 = vsel %vm910_vm10, 1.0, %v3722_v57  ;;  %vm912_vm3 = vcmp.eq.s32.totalorder %v855_v7, %v3945_v47  ;;  %vm1215_vm6 = vcmp.eq.s32.totalorder %v4824_v27, %v3942_v46 }
  0xf8   : > { %1846 = vmatmul.bf16.gmra.mxu2 %v1451_v20  ;;  %1895 = vmatmul.bf16.gmra.mxu3 %v1452_v43  ;;  %vm301_vm11 = vcmp.eq.s32.totalorder %v247_v33, %v3919_v39  ;;  %vm302_vm0 = vcmp.eq.s32.totalorder %v247_v33, %v3939_v45  ;;  %vm303_vm1 = vcmp.eq.s32.totalorder %v247_v33, %v3942_v46  ;;  %v3078_v6 = vsel %vm1213_vm4, 1.0, %v3722_v57 }
  0xf9   : > { %vm304_vm2 = vcmp.eq.s32.totalorder %v247_v33, %v3945_v47  ;;  %v2886_v54 = vsel %vm301_vm11, 1.0, %v3722_v57  ;;  %v2887_v32 = vsel %vm302_vm0, 1.0, %v3722_v57  ;;  %v2888_v61 = vsel %vm303_vm1, 1.0, %v3722_v57 }
  0xfa   : > { %v2889_v11 = vsel %vm304_vm2, 1.0, %v3722_v57  ;;  %vm1216_vm7 = vcmp.eq.s32.totalorder %v4824_v27, %v3945_v47  ;;  %v3016_v23 = vsel %vm911_vm12, 1.0, %v3722_v57  ;;  %v3017_v31 = vsel %vm912_vm3, 1.0, %v3722_v57 }
  0xfb   : > { %v4853_v26 = vpop.permute.xlu2 %252  ;;  %v3079_v34 = vsel %vm1214_vm5, 1.0, %v3722_v57  ;;  %v3080_v19 = vsel %vm1215_vm6, 1.0, %v3722_v57  ;;  %v3081_v13 = vsel %vm1216_vm7, 1.0, %v3722_v57  ;;  %v801_v22 = vadd.f32 %v2954_v35, %v4835_v48 }
  0xfc   : > { %v802_v1 = vadd.f32 %v2955_v44, %v4840_v4  ;;  %v3285_v15 = vor.u32 %v3381_v36, %v3282_v21  ;;  %v803_v60 = vadd.f32 %v2956_v50, %v4843_v28  ;;  %v804_v20 = vadd.f32 %v2957_v51, %v4848_v16 }
  0xfd   : > { %v3273_v43 = vor.u32 %v3382_v24, %v3272_v12  ;;  %v3277_v33 = vor.u32 %v3380_v30, %v3274_v25  ;;  %vm309_vm6 = vcmp.eq.s32.totalorder %v4853_v26, %v3919_v39  ;;  %vm310_vm7 = vcmp.eq.s32.totalorder %v4853_v26, %v3939_v45 }
  0xfe   : > { %2212 = vmatpush.bf16.msrb.mxu3 %v3285_v15 }
  0xff   : > { %2065 = vmatpush.bf16.msrb.mxu0 %v3273_v43  ;;  %2114 = vmatpush.bf16.msrb.mxu1 %v3277_v33 }
 0x100   : > { %v551_v49 = vpop.permute.xlu1 %550 }
 0x101   : > { %vm605_vm8 = vcmp.eq.s32.totalorder %v551_v49, %v3919_v39  ;;  %vm606_vm13 = vcmp.eq.s32.totalorder %v551_v49, %v3939_v45  ;;  %vm607_vm14 = vcmp.eq.s32.totalorder %v551_v49, %v3942_v46  ;;  %vm608_vm15 = vcmp.eq.s32.totalorder %v551_v49, %v3945_v47 }
 0x102   : > { %v2950_v52 = vsel %vm605_vm8, 1.0, %v3722_v57  ;;  %v2951_v42 = vsel %vm606_vm13, 1.0, %v3722_v57  ;;  %v2952_v9 = vsel %vm607_vm14, 1.0, %v3722_v57  ;;  %v2953_v55 = vsel %vm608_vm15, 1.0, %v3722_v57 }
 0x103   : > { %v797_v40 = vadd.f32 %v2950_v52, %v2886_v54  ;;  %v798_v2 = vadd.f32 %v2951_v42, %v2887_v32  ;;  %v799_v10 = vadd.f32 %v2952_v9, %v2888_v61  ;;  %v800_v63 = vadd.f32 %v2953_v55, %v2889_v11  ;;  %v256_v55 = vpop.permute.xlu0 %255 }
 0x104   : > { %v4902_v17 = vpop.permute.xlu2 %559  ;;  %vm313_vm1 = vcmp.eq.s32.totalorder %v256_v55, %v3919_v39  ;;  %vm314_vm2 = vcmp.eq.s32.totalorder %v256_v55, %v3939_v45  ;;  %vm315_vm12 = vcmp.eq.s32.totalorder %v256_v55, %v3942_v46 }
 0x105   : > { %v1101_v29 = vadd.f32 %v3014_v0, %v797_v40  ;;  %v1102_v18 = vadd.f32 %v3015_v53, %v798_v2  ;;  %v1103_v3 = vadd.f32 %v3016_v23, %v799_v10  ;;  %v1104_v59 = vadd.f32 %v3017_v31, %v800_v63 }
 0x106   : > { %vm617_vm3 = vcmp.eq.s32.totalorder %v4902_v17, %v3919_v39  ;;  %vm618_vm4 = vcmp.eq.s32.totalorder %v4902_v17, %v3939_v45  ;;  %vm619_vm5 = vcmp.eq.s32.totalorder %v4902_v17, %v3942_v46  ;;  %v2898_v11 = vsel %vm313_vm1, 1.0, %v3722_v57 }
 0x107   : > { %v1405_v41 = vadd.f32 %v3078_v6, %v1101_v29  ;;  %v1406_v7 = vadd.f32 %v3079_v34, %v1102_v18  ;;  %v1407_v48 = vadd.f32 %v3080_v19, %v1103_v3  ;;  %v1408_v4 = vadd.f32 %v3081_v13, %v1104_v59 }
 0x108   : > { %v2962_v2 = vsel %vm617_vm3, 1.0, %v3722_v57  ;;  %v2963_v10 = vsel %vm618_vm4, 1.0, %v3722_v57  ;;  %v2964_v63 = vsel %vm619_vm5, 1.0, %v3722_v57  ;;  %v2894_v6 = vsel %vm309_vm6, 1.0, %v3722_v57 }
 0x109   : > { %v858_v56 = vpop.permute.xlu1 %857  ;;  %v2895_v23 = vsel %vm310_vm7, 1.0, %v3722_v57  ;;  %v809_v13 = vadd.f32 %v2962_v2, %v2898_v11 }
 0x10a   : > { %vm913_vm8 = vcmp.eq.s32.totalorder %v858_v56, %v3919_v39  ;;  %vm914_vm9 = vcmp.eq.s32.totalorder %v858_v56, %v3939_v45  ;;  %vm915_vm10 = vcmp.eq.s32.totalorder %v858_v56, %v3942_v46  ;;  %vm916_vm11 = vcmp.eq.s32.totalorder %v858_v56, %v3945_v47 }
 0x10b   : > { %v3018_v62 = vsel %vm913_vm8, 1.0, %v3722_v57  ;;  %v3019_v8 = vsel %vm914_vm9, 1.0, %v3722_v57  ;;  %v3020_v37 = vsel %vm915_vm10, 1.0, %v3722_v57  ;;  %v3021_v38 = vsel %vm916_vm11, 1.0, %v3722_v57  ;;  %v1165_v14 = vpop.permute.xlu0 %1164 }
 0x10c   : > { %v1105_v27 = vadd.f32 %v3018_v62, %v801_v22  ;;  %v1106_v28 = vadd.f32 %v3019_v8, %v802_v1  ;;  %v1107_v35 = vadd.f32 %v3020_v37, %v803_v60  ;;  %v1108_v44 = vadd.f32 %v3021_v38, %v804_v20 }
 0x10d   : > { %v4956_v9 = vpop.permute.xlu2 %863  ;;  %vm311_vm8 = vcmp.eq.s32.totalorder %v4853_v26, %v3942_v46  ;;  %vm312_vm9 = vcmp.eq.s32.totalorder %v4853_v26, %v3945_v47  ;;  %vm620_vm10 = vcmp.eq.s32.totalorder %v4902_v17, %v3945_v47  ;;  %vm316_vm11 = vcmp.eq.s32.totalorder %v256_v55, %v3945_v47  ;;  %v3264_v55 = vld [vmem:[%s6053_s2 + $0x28] sm:$0xf] }
 0x10e   : > { %v2899_v56 = vsel %vm314_vm2, 1.0, %v3722_v57  ;;  %v2900_v26 = vsel %vm315_vm12, 1.0, %v3722_v57  ;;  %v2896_v31 = vsel %vm311_vm8, 1.0, %v3722_v57  ;;  %v2897_v17 = vsel %vm312_vm9, 1.0, %v3722_v57 }
 0x10f   : > { %v2965_v29 = vsel %vm620_vm10, 1.0, %v3722_v57  ;;  %v2901_v34 = vsel %vm316_vm11, 1.0, %v3722_v57  ;;  %v810_v62 = vadd.f32 %v2963_v10, %v2899_v56  ;;  %v811_v18 = vadd.f32 %v2964_v63, %v2900_v26  ;;  %v3266_v56 = vld [vmem:[%s6053_s2 + $0x38] sm:$0xf0] }
 0x110   : > { %vm921_vm2 = vcmp.eq.s32.totalorder %v4956_v9, %v3919_v39  ;;  %vm922_vm12 = vcmp.eq.s32.totalorder %v4956_v9, %v3939_v45  ;;  %vm923_vm3 = vcmp.eq.s32.totalorder %v4956_v9, %v3942_v46  ;;  %v812_v3 = vadd.f32 %v2965_v29, %v2901_v34 }
 0x111   : > { %vm924_vm4 = vcmp.eq.s32.totalorder %v4956_v9, %v3945_v47  ;;  %vm1222_vm5 = vcmp.eq.s32.totalorder %v1165_v14, %v3939_v45  ;;  %vm1223_vm6 = vcmp.eq.s32.totalorder %v1165_v14, %v3942_v46  ;;  %vm1224_vm7 = vcmp.eq.s32.totalorder %v1165_v14, %v3945_v47 }
 0x112   : > { %v1162_v49 = vpop.permute.xlu1 %1161  ;;  %v3026_v38 = vsel %vm921_vm2, 1.0, %v3722_v57  ;;  %v3028_v20 = vsel %vm923_vm3, 1.0, %v3722_v57  ;;  %v3029_v43 = vsel %vm924_vm4, 1.0, %v3722_v57 }
 0x113   : > { %vm1217_vm13 = vcmp.eq.s32.totalorder %v1162_v49, %v3919_v39  ;;  %vm1218_vm14 = vcmp.eq.s32.totalorder %v1162_v49, %v3939_v45  ;;  %vm1219_vm15 = vcmp.eq.s32.totalorder %v1162_v49, %v3942_v46  ;;  %vm1220_vm0 = vcmp.eq.s32.totalorder %v1162_v49, %v3945_v47 }
 0x114   : > { %v3082_v16 = vsel %vm1217_vm13, 1.0, %v3722_v57  ;;  %v3083_v50 = vsel %vm1218_vm14, 1.0, %v3722_v57  ;;  %v3084_v51 = vsel %vm1219_vm15, 1.0, %v3722_v57  ;;  %v3085_v52 = vsel %vm1220_vm0, 1.0, %v3722_v57 }
 0x115   : > { %v1409_v0 = vadd.f32 %v3082_v16, %v1105_v27  ;;  %v1410_v53 = vadd.f32 %v3083_v50, %v1106_v28  ;;  %v1411_v54 = vadd.f32 %v3084_v51, %v1107_v35  ;;  %v1412_v42 = vadd.f32 %v3085_v52, %v1108_v44 }
 0x116   : > { %vm1221_vm13 = vcmp.eq.s32.totalorder %v1165_v14, %v3919_v39  ;;  %v3087_v28 = vsel %vm1222_vm5, 1.0, %v3722_v57  ;;  %v3088_v35 = vsel %vm1223_vm6, 1.0, %v3722_v57  ;;  %v3089_v44 = vsel %vm1224_vm7, 1.0, %v3722_v57  ;;  %v566_v14 = vpop.permute.xlu0 %565 }
 0x117   : > { %v1453_v58 = vpack.c.bf16 %v1409_v0, %v1405_v41  ;;  %v1454_v5 = vpack.c.bf16 %v1410_v53, %v1406_v7  ;;  %v1455_v40 = vpack.c.bf16 %v1411_v54, %v1407_v48  ;;  %v1456_v32 = vpack.c.bf16 %v1412_v42, %v1408_v4 }
 0x118   : > { %v3027_v41 = vsel %vm922_vm12, 1.0, %v3722_v57  ;;  %v3086_v49 = vsel %vm1221_vm13, 1.0, %v3722_v57  ;;  %v1113_v16 = vadd.f32 %v3026_v38, %v809_v13  ;;  %v1115_v51 = vadd.f32 %v3028_v20, %v811_v18 }
 0x119   : > { %1753 = vmatmul.bf16.gmra.mxu0 %v1453_v58  ;;  %1802 = vmatmul.bf16.gmra.mxu1 %v1454_v5  ;;  %v4992_v19 = vpop.permute.xlu2 %258  ;;  %v1114_v50 = vadd.f32 %v3027_v41, %v810_v62  ;;  %v1116_v52 = vadd.f32 %v3029_v43, %v812_v3  ;;  %v3379_v58 = vld [vmem:[%s6053_s2 + $0x34] sm:$0xf0]  ;;  %v3377_v5 = vld [vmem:[%s6053_s2 + $0x2c] sm:$0xf]  ;;  %v3256_v3 = vld [vmem:[%s6053_s2 + $0x20] sm:$0xf]  ;;  %vm626_vm5 = vcmp.eq.s32.totalorder %v566_v14, %v3939_v45 }
 0x11a   : > { %1851 = vmatmul.bf16.gmra.mxu2 %v1455_v40  ;;  %1900 = vmatmul.bf16.gmra.mxu3 %v1456_v32  ;;  %vm317_vm2 = vcmp.eq.s32.totalorder %v4992_v19, %v3919_v39  ;;  %vm318_vm12 = vcmp.eq.s32.totalorder %v4992_v19, %v3939_v45  ;;  %vm319_vm3 = vcmp.eq.s32.totalorder %v4992_v19, %v3942_v46 }
 0x11b   : > { %v557_v61 = vpop.permute.xlu1 %556  ;;  %vm320_vm4 = vcmp.eq.s32.totalorder %v4992_v19, %v3945_v47  ;;  %vm627_vm6 = vcmp.eq.s32.totalorder %v566_v14, %v3942_v46  ;;  %v3258_v19 = vld [vmem:[%s6053_s2 + $0x30] sm:$0xf0]  ;;  %vm628_vm7 = vcmp.eq.s32.totalorder %v566_v14, %v3945_v47 }
 0x11c   : > { %vm613_vm14 = vcmp.eq.s32.totalorder %v557_v61, %v3919_v39  ;;  %vm614_vm15 = vcmp.eq.s32.totalorder %v557_v61, %v3939_v45  ;;  %vm615_vm0 = vcmp.eq.s32.totalorder %v557_v61, %v3942_v46  ;;  %vm616_vm1 = vcmp.eq.s32.totalorder %v557_v61, %v3945_v47 }
 0x11d   : > { %v2958_v59 = vsel %vm613_vm14, 1.0, %v3722_v57  ;;  %v2959_v36 = vsel %vm614_vm15, 1.0, %v3722_v57  ;;  %v2960_v21 = vsel %vm615_vm0, 1.0, %v3722_v57  ;;  %v2961_v12 = vsel %vm616_vm1, 1.0, %v3722_v57 }
 0x11e   : > { %v805_v25 = vadd.f32 %v2958_v59, %v2894_v6  ;;  %v806_v8 = vadd.f32 %v2959_v36, %v2895_v23  ;;  %v807_v60 = vadd.f32 %v2960_v21, %v2896_v31  ;;  %v808_v37 = vadd.f32 %v2961_v12, %v2897_v17  ;;  %v3378_v59 = vld [vmem:[%s6053_s2 + $0x2c] sm:$0xf0]  ;;  %v3376_v36 = vld [vmem:[%s6053_s2 + $0x24] sm:$0xf] }
 0x11f   : > { %v3265_v6 = vor.u32 %v3379_v58, %v3264_v55  ;;  %v3269_v23 = vor.u32 %v3377_v5, %v3266_v56  ;;  %vm625_vm1 = vcmp.eq.s32.totalorder %v566_v14, %v3919_v39  ;;  %v2902_v21 = vsel %vm317_vm2, 1.0, %v3722_v57 }
 0x120   : > { %v2970_v18 = vsel %vm625_vm1, 1.0, %v3722_v57  ;;  %v2903_v12 = vsel %vm318_vm12, 1.0, %v3722_v57 }
 0x121   : > { %2164 = vmatpush.bf16.msrb.mxu2 %v3265_v6  ;;  %2213 = vmatpush.bf16.msrb.mxu3 %v3269_v23 }
 0x122   : > { %v5038_v33 = vpop.permute.xlu2 %562 }
 0x124   : > { %v861_v22 = vpop.permute.xlu1 %860 }
 0x125   : > { %vm917_vm8 = vcmp.eq.s32.totalorder %v861_v22, %v3919_v39  ;;  %vm918_vm9 = vcmp.eq.s32.totalorder %v861_v22, %v3939_v45  ;;  %vm919_vm10 = vcmp.eq.s32.totalorder %v861_v22, %v3942_v46  ;;  %vm920_vm11 = vcmp.eq.s32.totalorder %v861_v22, %v3945_v47 }
 0x126   : > { %v3022_v1 = vsel %vm917_vm8, 1.0, %v3722_v57  ;;  %v3023_v15 = vsel %vm918_vm9, 1.0, %v3722_v57  ;;  %v3024_v24 = vsel %vm919_vm10, 1.0, %v3722_v57  ;;  %v3025_v30 = vsel %vm920_vm11, 1.0, %v3722_v57 }
 0x127   : > { %v1109_v27 = vadd.f32 %v3022_v1, %v805_v25  ;;  %v1110_v7 = vadd.f32 %v3023_v15, %v806_v8  ;;  %v1111_v48 = vadd.f32 %v3024_v24, %v807_v60  ;;  %v1112_v4 = vadd.f32 %v3025_v30, %v808_v37 }
 0x128   : > { %v2904_v22 = vsel %vm319_vm3, 1.0, %v3722_v57  ;;  %v2905_v1 = vsel %vm320_vm4, 1.0, %v3722_v57  ;;  %vm621_vm8 = vcmp.eq.s32.totalorder %v5038_v33, %v3919_v39  ;;  %v2971_v15 = vsel %vm626_vm5, 1.0, %v3722_v57 }
 0x129   : > { %v1413_v53 = vadd.f32 %v3086_v49, %v1109_v27  ;;  %v1414_v54 = vadd.f32 %v3087_v28, %v1110_v7  ;;  %v1415_v42 = vadd.f32 %v3088_v35, %v1111_v48  ;;  %v1416_v9 = vadd.f32 %v3089_v44, %v1112_v4 }
 0x12a   : > { %v3257_v24 = vor.u32 %v3378_v59, %v3256_v3  ;;  %v3261_v30 = vor.u32 %v3376_v36, %v3258_v19  ;;  %v2972_v25 = vsel %vm627_vm6, 1.0, %v3722_v57  ;;  %v2973_v8 = vsel %vm628_vm7, 1.0, %v3722_v57 }
 0x12b   : > { %v5072_v13 = vpop.permute.xlu2 %869  ;;  %v2966_v60 = vsel %vm621_vm8, 1.0, %v3722_v57 }
 0x12c   : > { %2066 = vmatpush.bf16.msrb.mxu0 %v3257_v24  ;;  %2115 = vmatpush.bf16.msrb.mxu1 %v3261_v30  ;;  %vm930_vm1 = vcmp.eq.s32.totalorder %v5072_v13, %v3939_v45  ;;  %vm931_vm12 = vcmp.eq.s32.totalorder %v5072_v13, %v3942_v46  ;;  %vm932_vm3 = vcmp.eq.s32.totalorder %v5072_v13, %v3945_v47 }
 0x12d   : > { %v1168_v0 = vpop.permute.xlu1 %1167  ;;  %v813_v48 = vadd.f32 %v2966_v60, %v2902_v21  ;;  %v3035_v44 = vsel %vm930_vm1, 1.0, %v3722_v57  ;;  %v3375_v60 = vld [vmem:[%s6053_s2 + $0x14] sm:$0xf0] }
 0x12e   : > { %vm1225_vm13 = vcmp.eq.s32.totalorder %v1168_v0, %v3919_v39  ;;  %vm1226_vm14 = vcmp.eq.s32.totalorder %v1168_v0, %v3939_v45  ;;  %vm1227_vm15 = vcmp.eq.s32.totalorder %v1168_v0, %v3942_v46  ;;  %vm1228_vm0 = vcmp.eq.s32.totalorder %v1168_v0, %v3945_v47  ;;  %v265_v3 = vpop.permute.xlu0 %264 }
 0x12f   : > { %v3090_v40 = vsel %vm1225_vm13, 1.0, %v3722_v57  ;;  %v3091_v32 = vsel %vm1226_vm14, 1.0, %v3722_v57  ;;  %v3092_v61 = vsel %vm1227_vm15, 1.0, %v3722_v57  ;;  %v3093_v11 = vsel %vm1228_vm0, 1.0, %v3722_v57 }
 0x130   : > { %v1417_v2 = vadd.f32 %v3090_v40, %v1113_v16  ;;  %v1418_v10 = vadd.f32 %v3091_v32, %v1114_v50  ;;  %v1419_v63 = vadd.f32 %v3092_v61, %v1115_v51  ;;  %v1420_v26 = vadd.f32 %v3093_v11, %v1116_v52 }
 0x131   : > { %vm622_vm13 = vcmp.eq.s32.totalorder %v5038_v33, %v3939_v45  ;;  %vm623_vm14 = vcmp.eq.s32.totalorder %v5038_v33, %v3942_v46  ;;  %vm624_vm15 = vcmp.eq.s32.totalorder %v5038_v33, %v3945_v47  ;;  %vm929_vm0 = vcmp.eq.s32.totalorder %v5072_v13, %v3919_v39 }
 0x132   : > { %v1457_v31 = vpack.c.bf16 %v1417_v2, %v1413_v53  ;;  %v1458_v17 = vpack.c.bf16 %v1418_v10, %v1414_v54  ;;  %v1459_v29 = vpack.c.bf16 %v1419_v63, %v1415_v42  ;;  %v1460_v34 = vpack.c.bf16 %v1420_v26, %v1416_v9 }
 0x133   : > { %v2967_v43 = vsel %vm622_vm13, 1.0, %v3722_v57  ;;  %v2968_v33 = vsel %vm623_vm14, 1.0, %v3722_v57  ;;  %v2969_v27 = vsel %vm624_vm15, 1.0, %v3722_v57  ;;  %v3034_v35 = vsel %vm929_vm0, 1.0, %v3722_v57 }
 0x134   : > { %1758 = vmatmul.bf16.gmra.mxu0 %v1457_v31  ;;  %1807 = vmatmul.bf16.gmra.mxu1 %v1458_v17  ;;  %v1174_v20 = vpop.permute.xlu2 %1173  ;;  %v3036_v50 = vsel %vm931_vm12, 1.0, %v3722_v57  ;;  %v3037_v51 = vsel %vm932_vm3, 1.0, %v3722_v57  ;;  %v814_v61 = vadd.f32 %v2967_v43, %v2903_v12  ;;  %v815_v11 = vadd.f32 %v2968_v33, %v2904_v22 }
 0x135   : > { %1856 = vmatmul.bf16.gmra.mxu2 %v1459_v29  ;;  %1905 = vmatmul.bf16.gmra.mxu3 %v1460_v34  ;;  %vm1233_vm4 = vcmp.eq.s32.totalorder %v1174_v20, %v3919_v39  ;;  %vm1234_vm5 = vcmp.eq.s32.totalorder %v1174_v20, %v3939_v45  ;;  %v816_v56 = vadd.f32 %v2969_v27, %v2905_v1 }
 0x136   : > { %v262_v62 = vpop.permute.xlu1 %261  ;;  %v3098_v54 = vsel %vm1233_vm4, 1.0, %v3722_v57  ;;  %v3099_v42 = vsel %vm1234_vm5, 1.0, %v3722_v57  ;;  %vm325_vm1 = vcmp.eq.s32.totalorder %v265_v3, %v3919_v39  ;;  %vm326_vm5 = vcmp.eq.s32.totalorder %v265_v3, %v3939_v45 }
 0x137   : > { %vm321_vm9 = vcmp.eq.s32.totalorder %v262_v62, %v3919_v39  ;;  %vm322_vm10 = vcmp.eq.s32.totalorder %v262_v62, %v3939_v45  ;;  %vm323_vm11 = vcmp.eq.s32.totalorder %v262_v62, %v3942_v46  ;;  %vm324_vm2 = vcmp.eq.s32.totalorder %v262_v62, %v3945_v47  ;;  %v5197_v43 = vpop.permute.xlu0 %875 }
 0x138   : > { %v2906_v37 = vsel %vm321_vm9, 1.0, %v3722_v57  ;;  %v2907_v38 = vsel %vm322_vm10, 1.0, %v3722_v57  ;;  %v2908_v41 = vsel %vm323_vm11, 1.0, %v3722_v57  ;;  %v2909_v28 = vsel %vm324_vm2, 1.0, %v3722_v57 }
 0x139   : > { %v817_v4 = vadd.f32 %v2970_v18, %v2906_v37  ;;  %v818_v49 = vadd.f32 %v2971_v15, %v2907_v38  ;;  %v819_v16 = vadd.f32 %v2972_v25, %v2908_v41  ;;  %vm1235_vm9 = vcmp.eq.s32.totalorder %v1174_v20, %v3942_v46  ;;  %v3248_v25 = vld [vmem:[%s6053_s2 + $0x8] sm:$0xf]  ;;  %v3373_v37 = vld [vmem:[%s6053_s2 + $0xc] sm:$0xf]  ;;  %v3250_v38 = vld [vmem:[%s6053_s2 + $0x18] sm:$0xf0] }
 0x13a   : > { %v820_v53 = vadd.f32 %v2973_v8, %v2909_v28  ;;  %vm1236_vm10 = vcmp.eq.s32.totalorder %v1174_v20, %v3945_v47  ;;  %v3100_v32 = vsel %vm1235_vm9, 1.0, %v3722_v57  ;;  %v3240_v41 = vld [vmem:[%s6053_s2] sm:$0xf]  ;;  %v3249_v33 = vor.u32 %v3375_v60, %v3248_v25 }
 0x13b   : > { %v1121_v52 = vadd.f32 %v3034_v35, %v817_v4  ;;  %v1122_v0 = vadd.f32 %v3035_v44, %v818_v49  ;;  %v1123_v9 = vadd.f32 %v3036_v50, %v819_v16  ;;  %v3101_v2 = vsel %vm1236_vm10, 1.0, %v3722_v57  ;;  %v3242_v4 = vld [vmem:[%s6053_s2 + $0x10] sm:$0xf0]  ;;  %v5223_v16 = vpop.f32.mrf.mxu0  ;;  %v5225_v50 = vpop.f32.mrf.mxu1 }
 0x13c   : > { %v1124_v14 = vadd.f32 %v3037_v51, %v820_v53  ;;  %v3253_v27 = vor.u32 %v3373_v37, %v3250_v38  ;;  %v2910_v44 = vsel %vm325_vm1, 1.0, %v3722_v57  ;;  %2165 = vmatpush.bf16.msrb.mxu2 %v3249_v33  ;;  %vm937_vm9 = vcmp.eq.s32.totalorder %v5197_v43, %v3919_v39 }
 0x13d   : > { %v5152_v55 = vpop.permute.xlu2 %568  ;;  %v1425_v10 = vadd.f32 %v3098_v54, %v1121_v52  ;;  %v1426_v63 = vadd.f32 %v3099_v42, %v1122_v0  ;;  %v1427_v29 = vadd.f32 %v3100_v32, %v1123_v9  ;;  %v2911_v52 = vsel %vm326_vm5, 1.0, %v3722_v57 }
 0x13e   : > { %v1428_v22 = vadd.f32 %v3101_v2, %v1124_v14  ;;  %vm629_vm2 = vcmp.eq.s32.totalorder %v5152_v55, %v3919_v39  ;;  %vm630_vm12 = vcmp.eq.s32.totalorder %v5152_v55, %v3939_v45  ;;  %vm631_vm3 = vcmp.eq.s32.totalorder %v5152_v55, %v3942_v46  ;;  %2214 = vmatpush.bf16.msrb.mxu3 %v3253_v27 }
 0x13f   : > { %v867_v7 = vpop.permute.xlu1 %866  ;;  %vm632_vm4 = vcmp.eq.s32.totalorder %v5152_v55, %v3945_v47  ;;  %v2974_v49 = vsel %vm629_vm2, 1.0, %v3722_v57  ;;  %v2975_v28 = vsel %vm630_vm12, 1.0, %v3722_v57  ;;  %v2976_v35 = vsel %vm631_vm3, 1.0, %v3722_v57 }
 0x140   : > { %vm925_vm6 = vcmp.eq.s32.totalorder %v867_v7, %v3919_v39  ;;  %vm926_vm7 = vcmp.eq.s32.totalorder %v867_v7, %v3939_v45  ;;  %vm927_vm8 = vcmp.eq.s32.totalorder %v867_v7, %v3942_v46  ;;  %vm928_vm11 = vcmp.eq.s32.totalorder %v867_v7, %v3945_v47  ;;  %v3374_v7 = vld [vmem:[%s6053_s2 + $0xc] sm:$0xf0] }
 0x141   : > { %v3030_v58 = vsel %vm925_vm6, 1.0, %v3722_v57  ;;  %v3031_v5 = vsel %vm926_vm7, 1.0, %v3722_v57  ;;  %v3032_v40 = vsel %vm927_vm8, 1.0, %v3722_v57  ;;  %v3033_v26 = vsel %vm928_vm11, 1.0, %v3722_v57  ;;  %v5279_v14 = vpop.f32.mrf.mxu3 }
 0x142   : > { %v1117_v23 = vadd.f32 %v3030_v58, %v813_v48  ;;  %v1118_v31 = vadd.f32 %v3031_v5, %v814_v61  ;;  %v1119_v17 = vadd.f32 %v3032_v40, %v815_v11  ;;  %v1120_v18 = vadd.f32 %v3033_v26, %v816_v56  ;;  %v3372_v48 = vld [vmem:[%s6053_s2 + $0x4] sm:$0xf]  ;;  %v5252_v58 = vpop.f32.mrf.mxu2 }
 0x143   : > { %vm327_vm6 = vcmp.eq.s32.totalorder %v265_v3, %v3942_v46  ;;  %vm328_vm7 = vcmp.eq.s32.totalorder %v265_v3, %v3945_v47  ;;  %v2977_v51 = vsel %vm632_vm4, 1.0, %v3722_v57  ;;  %v3241_v54 = vor.u32 %v3374_v7, %v3240_v41 }
 0x144   : > { %v2912_v0 = vsel %vm327_vm6, 1.0, %v3722_v57  ;;  %v2913_v53 = vsel %vm328_vm7, 1.0, %v3722_v57  ;;  %v3245_v42 = vor.u32 %v3372_v48, %v3242_v4  ;;  %v821_v55 = vadd.f32 %v2974_v49, %v2910_v44 }
 0x145   : > { %2067 = vmatpush.bf16.msrb.mxu0 %v3241_v54  ;;  %v822_v40 = vadd.f32 %v2975_v28, %v2911_v52  ;;  %v823_v32 = vadd.f32 %v2976_v35, %v2912_v0  ;;  %v824_v61 = vadd.f32 %v2977_v51, %v2913_v53 }
 0x146   : > { %v873_v8 = vpop.permute.xlu2 %872  ;;  %2116 = vmatpush.bf16.msrb.mxu1 %v3245_v42 }
 0x147   : > { %vm933_vm8 = vcmp.eq.s32.totalorder %v873_v8, %v3919_v39  ;;  %vm934_vm10 = vcmp.eq.s32.totalorder %v873_v8, %v3939_v45  ;;  %vm935_vm11 = vcmp.eq.s32.totalorder %v873_v8, %v3942_v46 }
 0x148   : > { %v1171_v6 = vpop.permute.xlu1 %1170  ;;  %v3038_v5 = vsel %vm933_vm8, 1.0, %v3722_v57  ;;  %v3039_v11 = vsel %vm934_vm10, 1.0, %v3722_v57  ;;  %v3040_v56 = vsel %vm935_vm11, 1.0, %v3722_v57 }
 0x149   : > { %vm1229_vm13 = vcmp.eq.s32.totalorder %v1171_v6, %v3919_v39  ;;  %vm1230_vm14 = vcmp.eq.s32.totalorder %v1171_v6, %v3939_v45  ;;  %vm1231_vm15 = vcmp.eq.s32.totalorder %v1171_v6, %v3942_v46  ;;  %vm1232_vm0 = vcmp.eq.s32.totalorder %v1171_v6, %v3945_v47  ;;  %v1883_v4 = vpop.f32.mrf.mxu3 }
 0x14a   : > { %v3094_v34 = vsel %vm1229_vm13, 1.0, %v3722_v57  ;;  %v3095_v13 = vsel %vm1230_vm14, 1.0, %v3722_v57  ;;  %v3096_v62 = vsel %vm1231_vm15, 1.0, %v3722_v57  ;;  %v3097_v21 = vsel %vm1232_vm0, 1.0, %v3722_v57 }
 0x14b   : > { %v1421_v59 = vadd.f32 %v3094_v34, %v1117_v23  ;;  %v1422_v36 = vadd.f32 %v3095_v13, %v1118_v31  ;;  %v1423_v19 = vadd.f32 %v3096_v62, %v1119_v17  ;;  %v1424_v12 = vadd.f32 %v3097_v21, %v1120_v18  ;;  %v1736_v34 = vpop.f32.mrf.mxu0  ;;  %v1785_v13 = vpop.f32.mrf.mxu1 }
 0x14c   : > { %vm936_vm13 = vcmp.eq.s32.totalorder %v873_v8, %v3945_v47  ;;  %vm938_vm14 = vcmp.eq.s32.totalorder %v5197_v43, %v3939_v45  ;;  %vm939_vm15 = vcmp.eq.s32.totalorder %v5197_v43, %v3942_v46  ;;  %vm940_vm0 = vcmp.eq.s32.totalorder %v5197_v43, %v3945_v47  ;;  %v1834_v8 = vpop.f32.mrf.mxu2 }
 0x14d   : > { %v1461_v1 = vpack.c.bf16 %v1425_v10, %v1421_v59  ;;  %v1462_v15 = vpack.c.bf16 %v1426_v63, %v1422_v36  ;;  %v1463_v24 = vpack.c.bf16 %v1427_v29, %v1423_v19  ;;  %v1464_v30 = vpack.c.bf16 %v1428_v22, %v1424_v12 }
 0x14e   : > { %v3041_v2 = vsel %vm936_vm13, 1.0, %v3722_v57  ;;  %v3042_v10 = vsel %vm937_vm9, 1.0, %v3722_v57  ;;  %v3043_v63 = vsel %vm938_vm14, 1.0, %v3722_v57  ;;  %v3044_v26 = vsel %vm939_vm15, 1.0, %v3722_v57 }
 0x14f   : > { %1763 = vmatmul.bf16.gmra.mxu0 %v1461_v1  ;;  %1812 = vmatmul.bf16.gmra.mxu1 %v1462_v15  ;;  %v1180_v9 = vpop.permute.xlu2 %1179  ;;  %v3045_v15 = vsel %vm940_vm0, 1.0, %v3722_v57  ;;  %v1125_v37 = vadd.f32 %v3038_v5, %v821_v55  ;;  %v1126_v38 = vadd.f32 %v3039_v11, %v822_v40  ;;  %v1127_v41 = vadd.f32 %v3040_v56, %v823_v32 }
 0x150   : > { %1861 = vmatmul.bf16.gmra.mxu2 %v1463_v24  ;;  %1910 = vmatmul.bf16.gmra.mxu3 %v1464_v30  ;;  %vm1241_vm2 = vcmp.eq.s32.totalorder %v1180_v9, %v3919_v39  ;;  %vm1242_vm5 = vcmp.eq.s32.totalorder %v1180_v9, %v3939_v45  ;;  %vm1243_vm10 = vcmp.eq.s32.totalorder %v1180_v9, %v3942_v46 }
 0x151   : > { %v3106_v22 = vsel %vm1241_vm2, 1.0, %v3722_v57  ;;  %v3107_v30 = vsel %vm1242_vm5, 1.0, %v3722_v57  ;;  %vm1244_vm11 = vcmp.eq.s32.totalorder %v1180_v9, %v3945_v47  ;;  %v3108_v60 = vsel %vm1243_vm10, 1.0, %v3722_v57 }
 0x152   : > { %v5195_v20 = vpop.permute.xlu1 %267  ;;  %v3109_v48 = vsel %vm1244_vm11, 1.0, %v3722_v57  ;;  %v1786_v32 = vadd.f32 %v1785_v13, %v1736_v34 }
 0x153   : > { %vm329_vm1 = vcmp.eq.s32.totalorder %v5195_v20, %v3919_v39  ;;  %vm330_vm12 = vcmp.eq.s32.totalorder %v5195_v20, %v3939_v45  ;;  %vm331_vm3 = vcmp.eq.s32.totalorder %v5195_v20, %v3942_v46  ;;  %vm332_vm4 = vcmp.eq.s32.totalorder %v5195_v20, %v3945_v47  ;;  %v1739_v54 = vpop.f32.mrf.mxu0 }
 0x154   : > { %v2914_v23 = vsel %vm329_vm1, 1.0, %v3722_v57  ;;  %v2915_v62 = vsel %vm330_vm12, 1.0, %v3722_v57  ;;  %v2916_v18 = vsel %vm331_vm3, 1.0, %v3722_v57  ;;  %v2917_v36 = vsel %vm332_vm4, 1.0, %v3722_v57  ;;  %v1837_v40 = vpop.f32.mrf.mxu2 }
 0x155   : > { %v1128_v20 = vadd.f32 %v3041_v2, %v824_v61  ;;  %v1784_v61 = vadd.f32 %v5225_v50, %v5223_v16  ;;  %v1835_v11 = vadd.f32 %v1834_v8, %v1786_v32  ;;  %vm2035_vm1 = vcmask 523264  }
 0x157   : > { %v1833_v2 = vadd.f32 %v5252_v58, %v1784_v61 }
 0x15b   : > { %v572_v6 = vpop.permute.xlu1 %571 }
 0x15c   : > { %vm633_vm6 = vcmp.eq.s32.totalorder %v572_v6, %v3919_v39  ;;  %vm634_vm7 = vcmp.eq.s32.totalorder %v572_v6, %v3939_v45  ;;  %vm635_vm8 = vcmp.eq.s32.totalorder %v572_v6, %v3942_v46  ;;  %vm636_vm9 = vcmp.eq.s32.totalorder %v572_v6, %v3945_v47 }
 0x15d   : > { %v2978_v31 = vsel %vm633_vm6, 1.0, %v3722_v57  ;;  %v2979_v17 = vsel %vm634_vm7, 1.0, %v3722_v57  ;;  %v2980_v29 = vsel %vm635_vm8, 1.0, %v3722_v57  ;;  %v2981_v3 = vsel %vm636_vm9, 1.0, %v3722_v57 }
 0x15e   : > { %v825_v59 = vadd.f32 %v2978_v31, %v2914_v23  ;;  %v826_v19 = vadd.f32 %v2979_v17, %v2915_v62  ;;  %v827_v21 = vadd.f32 %v2980_v29, %v2916_v18  ;;  %v828_v1 = vadd.f32 %v2981_v3, %v2917_v36 }
 0x160   : > { %v1129_v12 = vadd.f32 %v3042_v10, %v825_v59  ;;  %v1130_v24 = vadd.f32 %v3043_v63, %v826_v19  ;;  %v1131_v25 = vadd.f32 %v3044_v26, %v827_v21  ;;  %v1132_v43 = vadd.f32 %v3045_v15, %v828_v1  ;;  %v1839_v63 = vpop.f32.mrf.mxu2 }
 0x161   : > { %v1884_v10 = vadd.f32 %v1883_v4, %v1835_v11  ;;  %v1882_v26 = vadd.f32 %v5279_v14, %v1833_v2 }
 0x162   : > { %v1433_v27 = vadd.f32 %v3106_v22, %v1129_v12  ;;  %v1434_v7 = vadd.f32 %v3107_v30, %v1130_v24  ;;  %v1435_v49 = vadd.f32 %v3108_v60, %v1131_v25 }
 0x163   : > { %v1921_v6 = vpack.c.bf16 %v1884_v10, %v1882_v26 }
 0x164   : > { %v1177_v33 = vpop.permute.xlu1 %1176 }
 0x165   : > { %vm1237_vm13 = vcmp.eq.s32.totalorder %v1177_v33, %v3919_v39  ;;  %vm1238_vm14 = vcmp.eq.s32.totalorder %v1177_v33, %v3939_v45  ;;  %vm1239_vm15 = vcmp.eq.s32.totalorder %v1177_v33, %v3942_v46  ;;  %vm1240_vm0 = vcmp.eq.s32.totalorder %v1177_v33, %v3945_v47  ;;  %v1788_v39 = vpop.f32.mrf.mxu1  ;;  %v1886_v47 = vpop.f32.mrf.mxu3 }
 0x166   : > { %v3102_v28 = vsel %vm1237_vm13, 1.0, %v3722_v57  ;;  %v3103_v35 = vsel %vm1238_vm14, 1.0, %v3722_v57  ;;  %v3104_v44 = vsel %vm1239_vm15, 1.0, %v3722_v57  ;;  %v3105_v53 = vsel %vm1240_vm0, 1.0, %v3722_v57  ;;  %v1741_v57 = vpop.f32.mrf.mxu0 }
 0x167   : > { %v1429_v51 = vadd.f32 %v3102_v28, %v1125_v37  ;;  %v1430_v52 = vadd.f32 %v3103_v35, %v1126_v38  ;;  %v1431_v0 = vadd.f32 %v3104_v44, %v1127_v41  ;;  %v1432_v42 = vadd.f32 %v3105_v53, %v1128_v20 }
 0x168   : > { %v1436_v45 = vadd.f32 %v3109_v48, %v1132_v43  ;;  %v1842_v50 = vpop.f32.mrf.mxu2  ;;  %v1789_v58 = vadd.f32 %v1788_v39, %v1739_v54 }
 0x169   : > { %v1465_v9 = vpack.c.bf16 %v1433_v27, %v1429_v51  ;;  %v1466_v46 = vpack.c.bf16 %v1434_v7, %v1430_v52  ;;  %v1467_v55 = vpack.c.bf16 %v1435_v49, %v1431_v0 }
 0x16a   : > { %v1468_v5 = vpack.c.bf16 %v1436_v45, %v1432_v42  ;;  %v1838_v34 = vadd.f32 %v1837_v40, %v1789_v58 }
 0x16b   : > { %1768 = vmatmul.bf16.gmra.mxu0 %v1465_v9  ;;  %1817 = vmatmul.bf16.gmra.mxu1 %v1466_v46 }
 0x16c   : > { %1866 = vmatmul.bf16.gmra.mxu2 %v1467_v55  ;;  %1915 = vmatmul.bf16.gmra.mxu3 %v1468_v5  ;;  %v1887_v3 = vadd.f32 %v1886_v47, %v1838_v34 }
 0x16d   : > { %v1790_v56 = vpop.f32.mrf.mxu1  ;;  %v1888_v23 = vpop.f32.mrf.mxu3 }
 0x16e   : > { %v1744_v31 = vpop.f32.mrf.mxu0  ;;  %v1791_v16 = vadd.f32 %v1790_v56, %v1741_v57 }
 0x170   : > { %v1840_v29 = vadd.f32 %v1839_v63, %v1791_v16  ;;  %v1844_v36 = vpop.f32.mrf.mxu2 }
 0x172   : > { %v1889_v14 = vadd.f32 %v1888_v23, %v1840_v29 }
 0x174   : > { %v1922_v59 = vpack.c.bf16 %v1889_v14, %v1887_v3 }
 0x175   : > { %v1793_v17 = vpop.f32.mrf.mxu1  ;;  %v1891_v13 = vpop.f32.mrf.mxu3 }
 0x176   : > { %v1746_v62 = vpop.f32.mrf.mxu0  ;;  %v1794_v1 = vadd.f32 %v1793_v17, %v1744_v31 }
 0x178   : > { %v1843_v30 = vadd.f32 %v1842_v50, %v1794_v1 }
 0x17a   : > { %v1892_v60 = vadd.f32 %v1891_v13, %v1843_v30 }
 0x17b   : > { %3302 = vmatmul.msk.bf16.vlgmr.msrb.gmra.mxu0 %vm2035_vm1, %v1921_v6  ;;  %3310 = vmatmul.msk.bf16.vlgmr.msrb.gmra.mxu1 %vm2035_vm1, %v1921_v6  ;;  %v1847_v24 = vpop.f32.mrf.mxu2 }
 0x17c   : > { %3318 = vmatmul.msk.bf16.vlgmr.msrb.gmra.mxu2 %vm2035_vm1, %v1921_v6  ;;  %3326 = vmatmul.msk.bf16.vlgmr.msrb.gmra.mxu3 %vm2035_vm1, %v1921_v6 }
 0x17d   : > { %v1795_v18 = vpop.f32.mrf.mxu1  ;;  %v1893_v19 = vpop.f32.mrf.mxu3 }
 0x17e   : > { %v1749_v21 = vpop.f32.mrf.mxu0  ;;  %v1796_v22 = vadd.f32 %v1795_v18, %v1746_v62 }
 0x180   : > { %v1845_v15 = vadd.f32 %v1844_v36, %v1796_v22 }
 0x182   : > { %v1894_v25 = vadd.f32 %v1893_v19, %v1845_v15 }
 0x183   : > { %v1849_v20 = vpop.f32.mrf.mxu2 }
 0x184   : > { %v1923_v41 = vpack.c.bf16 %v1894_v25, %v1892_v60 }
 0x185   : > { %v1798_v12 = vpop.f32.mrf.mxu1  ;;  %v1896_v8 = vpop.f32.mrf.mxu3 }
 0x186   : > { %v1751_v37 = vpop.f32.mrf.mxu0  ;;  %v1799_v48 = vadd.f32 %v1798_v12, %v1749_v21 }
 0x188   : > { %v1848_v49 = vadd.f32 %v1847_v24, %v1799_v48 }
 0x18a   : > { %v1897_v44 = vadd.f32 %v1896_v8, %v1848_v49 }
 0x18b   : > { %3303 = vmatmul.msk.bf16.gmra.mxu0 %vm2035_vm1, %v1922_v59  ;;  %3311 = vmatmul.msk.bf16.gmra.mxu1 %vm2035_vm1, %v1922_v59 }
 0x18c   : > { %3319 = vmatmul.msk.bf16.gmra.mxu2 %vm2035_vm1, %v1922_v59  ;;  %3327 = vmatmul.msk.bf16.gmra.mxu3 %vm2035_vm1, %v1922_v59 }
 0x18d   : > { %v1800_v38 = vpop.f32.mrf.mxu1  ;;  %v1898_v27 = vpop.f32.mrf.mxu3 }
 0x18e   : > { %v1801_v33 = vadd.f32 %v1800_v38, %v1751_v37  ;;  %v1945_v37 = vld [vmem:[%s6054_s3] sm:$0xf] }
 0x18f   : > { %v5362_v48 = vperm.slane %v1945_v37, 1 }
 0x190   : > { %v1850_v4 = vadd.f32 %v1849_v20, %v1801_v33 }
 0x192   : > { %v1899_v35 = vadd.f32 %v1898_v27, %v1850_v4 }
 0x194   : > { %v1924_v52 = vpack.c.bf16 %v1899_v35, %v1897_v44 }
 0x196   : > { %v1754_v7 = vpop.f32.mrf.mxu0  ;;  %v1803_v43 = vpop.f32.mrf.mxu1 }
 0x197   : > { %v1804_v42 = vadd.f32 %v1803_v43, %v1754_v7  ;;  %v5360_v7 = vperm.slane %v1945_v37, 0 }
 0x19b   : > { %3304 = vmatmul.msk.bf16.gmra.mxu0 %vm2035_vm1, %v1923_v41  ;;  %3312 = vmatmul.msk.bf16.gmra.mxu1 %vm2035_vm1, %v1923_v41 }
 0x19c   : > { %3320 = vmatmul.msk.bf16.gmra.mxu2 %vm2035_vm1, %v1923_v41  ;;  %3328 = vmatmul.msk.bf16.gmra.mxu3 %vm2035_vm1, %v1923_v41 }
 0x19d   : > { %v1852_v28 = vpop.f32.mrf.mxu2  ;;  %v1901_v51 = vpop.f32.mrf.mxu3 }
 0x19e   : > { %v1756_v0 = vpop.f32.mrf.mxu0  ;;  %v1805_v53 = vpop.f32.mrf.mxu1  ;;  %v1853_v5 = vadd.f32 %v1852_v28, %v1804_v42 }
 0x19f   : > { %v1806_v39 = vadd.f32 %v1805_v53, %v1756_v0  ;;  %v5374_v0 = vperm.slane %v1945_v37, 3 }
 0x1a0   : > { %v1902_v32 = vadd.f32 %v1901_v51, %v1853_v5 }
 0x1a5   : > { %v1854_v54 = vpop.f32.mrf.mxu2  ;;  %v1903_v9 = vpop.f32.mrf.mxu3 }
 0x1a6   : > { %v1855_v45 = vadd.f32 %v1854_v54, %v1806_v39 }
 0x1a8   : > { %v1904_v40 = vadd.f32 %v1903_v9, %v1855_v45 }
 0x1aa   : > { %v1925_v61 = vpack.c.bf16 %v1904_v40, %v1902_v32 }
 0x1ab   : > { %3305 = vmatmul.msk.bf16.gmra.mxu0 %vm2035_vm1, %v1924_v52  ;;  %3313 = vmatmul.msk.bf16.gmra.mxu1 %vm2035_vm1, %v1924_v52 }
 0x1ac   : > { %3321 = vmatmul.msk.bf16.gmra.mxu2 %vm2035_vm1, %v1924_v52  ;;  %3329 = vmatmul.msk.bf16.gmra.mxu3 %vm2035_vm1, %v1924_v52  ;;  %v5370_v52 = vperm.slane %v1945_v37, 2 }
 0x1b1   : > { %v1759_v46 = vpop.f32.mrf.mxu0  ;;  %v1808_v55 = vpop.f32.mrf.mxu1 }
 0x1b2   : > { %v1809_v63 = vadd.f32 %v1808_v55, %v1759_v46 }
 0x1b8   : > { %v1857_v47 = vpop.f32.mrf.mxu2  ;;  %v1906_v11 = vpop.f32.mrf.mxu3 }
 0x1b9   : > { %v1761_v57 = vpop.f32.mrf.mxu0  ;;  %v1810_v56 = vpop.f32.mrf.mxu1  ;;  %v1858_v6 = vadd.f32 %v1857_v47, %v1809_v63 }
 0x1ba   : > { %v1811_v2 = vadd.f32 %v1810_v56, %v1761_v57 }
 0x1bb   : > { %3306 = vmatmul.msk.bf16.gmra.mxu0 %vm2035_vm1, %v1925_v61  ;;  %3314 = vmatmul.msk.bf16.gmra.mxu1 %vm2035_vm1, %v1925_v61  ;;  %v1907_v17 = vadd.f32 %v1906_v11, %v1858_v6 }
 0x1bc   : > { %3322 = vmatmul.msk.bf16.gmra.mxu2 %vm2035_vm1, %v1925_v61  ;;  %3330 = vmatmul.msk.bf16.gmra.mxu3 %vm2035_vm1, %v1925_v61 }
 0x1c0   : > { %v1859_v10 = vpop.f32.mrf.mxu2  ;;  %v1908_v23 = vpop.f32.mrf.mxu3 }
 0x1c1   : > { %v1860_v26 = vadd.f32 %v1859_v10, %v1811_v2 }
 0x1c3   : > { %v1909_v31 = vadd.f32 %v1908_v23, %v1860_v26 }
 0x1c5   : > { %v1926_v16 = vpack.c.bf16 %v1909_v31, %v1907_v17 }
 0x1cb   : > { %3307 = vmatmul.msk.bf16.gmra.mxu0 %vm2035_vm1, %v1926_v16  ;;  %3315 = vmatmul.msk.bf16.gmra.mxu1 %vm2035_vm1, %v1926_v16 }
 0x1cc   : > { %3323 = vmatmul.msk.bf16.gmra.mxu2 %vm2035_vm1, %v1926_v16  ;;  %3331 = vmatmul.msk.bf16.gmra.mxu3 %vm2035_vm1, %v1926_v16  ;;  %v1764_v50 = vpop.f32.mrf.mxu0  ;;  %v1813_v58 = vpop.f32.mrf.mxu1 }
 0x1cd   : > { %v1814_v62 = vadd.f32 %v1813_v58, %v1764_v50 }
 0x1d3   : > { %v1862_v29 = vpop.f32.mrf.mxu2  ;;  %v1911_v34 = vpop.f32.mrf.mxu3 }
 0x1d4   : > { %v1766_v13 = vpop.f32.mrf.mxu0  ;;  %v1815_v14 = vpop.f32.mrf.mxu1  ;;  %v1863_v18 = vadd.f32 %v1862_v29, %v1814_v62 }
 0x1d5   : > { %v1816_v3 = vadd.f32 %v1815_v14, %v1766_v13 }
 0x1d6   : > { %v1912_v21 = vadd.f32 %v1911_v34, %v1863_v18 }
 0x1db   : > { %v1864_v59 = vpop.f32.mrf.mxu2  ;;  %v1913_v19 = vpop.f32.mrf.mxu3 }
 0x1dc   : > { %v1865_v36 = vadd.f32 %v1864_v59, %v1816_v3 }
 0x1de   : > { %v1914_v12 = vadd.f32 %v1913_v19, %v1865_v36 }
 0x1e0   : > { %v1927_v22 = vpack.c.bf16 %v1914_v12, %v1912_v21 }
 0x1e2   : > { %3308 = vmatmul.msk.bf16.gmra.mxu0 %vm2035_vm1, %v1927_v22  ;;  %3316 = vmatmul.msk.bf16.gmra.mxu1 %vm2035_vm1, %v1927_v22 }
 0x1e3   : > { %3324 = vmatmul.msk.bf16.gmra.mxu2 %vm2035_vm1, %v1927_v22  ;;  %3332 = vmatmul.msk.bf16.gmra.mxu3 %vm2035_vm1, %v1927_v22 }
 0x1e8   : > { %v1769_v1 = vpop.f32.mrf.mxu0  ;;  %v1818_v15 = vpop.f32.mrf.mxu1 }
 0x1e9   : > { %v1819_v60 = vadd.f32 %v1818_v15, %v1769_v1 }
 0x1ef   : > { %v1867_v24 = vpop.f32.mrf.mxu2  ;;  %v1916_v30 = vpop.f32.mrf.mxu3 }
 0x1f0   : > { %v1771_v25 = vpop.f32.mrf.mxu0  ;;  %v1820_v8 = vpop.f32.mrf.mxu1  ;;  %v1868_v38 = vadd.f32 %v1867_v24, %v1819_v60 }
 0x1f1   : > { %v1821_v41 = vadd.f32 %v1820_v8, %v1771_v25 }
 0x1f2   : > { %v1917_v49 = vadd.f32 %v1916_v30, %v1868_v38 }
 0x1f7   : > { %v1869_v20 = vpop.f32.mrf.mxu2  ;;  %v1918_v33 = vpop.f32.mrf.mxu3 }
 0x1f8   : > { %v1870_v27 = vadd.f32 %v1869_v20, %v1821_v41  ;;  %v2069_v43 = vpop.f32.mrf.mxu0  ;;  %v2118_v4 = vpop.f32.mrf.mxu1 }
 0x1f9   : > { %v5365_v44 = vadd.f32 %v2069_v43, %v5360_v7  ;;  %v5368_v51 = vadd.f32 %v2118_v4, %v5362_v48 }
 0x1fa   : > { %v1919_v28 = vadd.f32 %v1918_v33, %v1870_v27 }
 0x1fb   : > { %v2256_v39 = vmax.f32 %v5365_v44, %v5368_v51 }
 0x1fc   : > { %v1928_v35 = vpack.c.bf16 %v1919_v28, %v1917_v49 }
 0x1fe   : > { %3309 = vmatmul.msk.bf16.gmra.mxu0 %vm2035_vm1, %v1928_v35  ;;  %3317 = vmatmul.msk.bf16.gmra.mxu1 %vm2035_vm1, %v1928_v35 }
 0x1ff   : > { %3325 = vmatmul.msk.bf16.gmra.mxu2 %vm2035_vm1, %v1928_v35  ;;  %3333 = vmatmul.msk.bf16.gmra.mxu3 %vm2035_vm1, %v1928_v35  ;;  %v2167_v53 = vpop.f32.mrf.mxu2  ;;  %v2216_v54 = vpop.f32.mrf.mxu3 }
 0x200   : > { %v5381_v42 = vadd.f32 %v2167_v53, %v5370_v52  ;;  %v2071_v45 = vpop.f32.mrf.mxu0  ;;  %v2120_v9 = vpop.f32.mrf.mxu1  ;;  %v5385_v55 = vadd.f32 %v2216_v54, %v5374_v0 }
 0x201   : > { %v5388_v5 = vadd.f32 %v2071_v45, %v5360_v7  ;;  %v5391_v40 = vadd.f32 %v2120_v9, %v5362_v48 }
 0x202   : > { %v2257_v46 = vmax.f32 %v2256_v39, %v5381_v42 }
 0x203   : > { %v2261_v11 = vmax.f32 %v5388_v5, %v5391_v40 }
 0x204   : > { %v2258_v32 = vmax.f32 %v2257_v46, %v5385_v55 }
 0x206   : > { %2259 = vmax.xlane.f32.xlu1 %v2258_v32 }
 0x207   : > { %v2169_v47 = vpop.f32.mrf.mxu2  ;;  %v2218_v61 = vpop.f32.mrf.mxu3 }
 0x208   : > { %v5397_v57 = vadd.f32 %v2169_v47, %v5370_v52  ;;  %v2074_v56 = vpop.f32.mrf.mxu0  ;;  %v2123_v2 = vpop.f32.mrf.mxu1  ;;  %v5401_v63 = vadd.f32 %v2218_v61, %v5374_v0 }
 0x209   : > { %v5404_v26 = vadd.f32 %v2074_v56, %v5360_v7  ;;  %v5407_v6 = vadd.f32 %v2123_v2, %v5362_v48 }
 0x20a   : > { %v2262_v10 = vmax.f32 %v2261_v11, %v5397_v57 }
 0x20b   : > { %v2266_v16 = vmax.f32 %v5404_v26, %v5407_v6 }
 0x20c   : > { %v2263_v23 = vmax.f32 %v2262_v10, %v5401_v63 }
 0x20e   : > { %2264 = vmax.xlane.f32.xlu2 %v2263_v23 }
 0x20f   : > { %v2172_v31 = vpop.f32.mrf.mxu2  ;;  %v2221_v17 = vpop.f32.mrf.mxu3 }
 0x210   : > { %v5413_v50 = vadd.f32 %v2172_v31, %v5370_v52  ;;  %v2076_v58 = vpop.f32.mrf.mxu0  ;;  %v2125_v29 = vpop.f32.mrf.mxu1  ;;  %v5417_v13 = vadd.f32 %v2221_v17, %v5374_v0 }
 0x211   : > { %v5420_v14 = vadd.f32 %v2076_v58, %v5360_v7  ;;  %v5423_v62 = vadd.f32 %v2125_v29, %v5362_v48 }
 0x212   : > { %v2267_v34 = vmax.f32 %v2266_v16, %v5413_v50 }
 0x213   : > { %v2271_v36 = vmax.f32 %v5420_v14, %v5423_v62 }
 0x214   : > { %v2268_v18 = vmax.f32 %v2267_v34, %v5417_v13 }
 0x216   : > { %2269 = vmax.xlane.f32.xlu0 %v2268_v18 }
 0x217   : > { %v2174_v3 = vpop.f32.mrf.mxu2  ;;  %v2223_v59 = vpop.f32.mrf.mxu3 }
 0x218   : > { %v5429_v19 = vadd.f32 %v2174_v3, %v5370_v52  ;;  %v2079_v21 = vpop.f32.mrf.mxu0  ;;  %v2128_v12 = vpop.f32.mrf.mxu1  ;;  %v5433_v1 = vadd.f32 %v2223_v59, %v5374_v0 }
 0x219   : > { %v5436_v15 = vadd.f32 %v2079_v21, %v5360_v7  ;;  %v5439_v24 = vadd.f32 %v2128_v12, %v5362_v48 }
 0x21a   : > { %v2272_v22 = vmax.f32 %v2271_v36, %v5429_v19 }
 0x21b   : > { %v2276_v60 = vmax.f32 %v5436_v15, %v5439_v24 }
 0x21c   : > { %v2273_v30 = vmax.f32 %v2272_v22, %v5433_v1 }
 0x21e   : > { %2274 = vmax.xlane.f32.xlu2 %v2273_v30 }
 0x21f   : > { %v2177_v25 = vpop.f32.mrf.mxu2  ;;  %v2226_v8 = vpop.f32.mrf.mxu3 }
 0x220   : > { %v5445_v37 = vadd.f32 %v2177_v25, %v5370_v52  ;;  %v2081_v38 = vpop.f32.mrf.mxu0  ;;  %v2130_v41 = vpop.f32.mrf.mxu1  ;;  %v5449_v33 = vadd.f32 %v2226_v8, %v5374_v0 }
 0x221   : > { %v5452_v27 = vadd.f32 %v2081_v38, %v5360_v7  ;;  %v5455_v43 = vadd.f32 %v2130_v41, %v5362_v48 }
 0x222   : > { %v2277_v20 = vmax.f32 %v2276_v60, %v5445_v37 }
 0x223   : > { %v2281_v35 = vmax.f32 %v5452_v27, %v5455_v43 }
 0x224   : > { %v2278_v4 = vmax.f32 %v2277_v20, %v5449_v33 }
 0x226   : > { %2279 = vmax.xlane.f32.xlu1 %v2278_v4 }
 0x227   : > { %v2179_v49 = vpop.f32.mrf.mxu2  ;;  %v2228_v28 = vpop.f32.mrf.mxu3 }
 0x228   : > { %v5461_v53 = vadd.f32 %v2179_v49, %v5370_v52  ;;  %v2084_v54 = vpop.f32.mrf.mxu0  ;;  %v2133_v39 = vpop.f32.mrf.mxu1  ;;  %v5465_v9 = vadd.f32 %v2228_v28, %v5374_v0 }
 0x229   : > { %v5468_v46 = vadd.f32 %v2084_v54, %v5360_v7  ;;  %v5471_v32 = vadd.f32 %v2133_v39, %v5362_v48 }
 0x22a   : > { %v2282_v45 = vmax.f32 %v2281_v35, %v5461_v53 }
 0x22b   : > { %v2286_v56 = vmax.f32 %v5468_v46, %v5471_v32 }
 0x22c   : > { %v2283_v47 = vmax.f32 %v2282_v45, %v5465_v9 }
 0x22e   : > { %2284 = vmax.xlane.f32.xlu2 %v2283_v47 }
 0x22f   : > { %v2182_v61 = vpop.f32.mrf.mxu2  ;;  %v2231_v11 = vpop.f32.mrf.mxu3 }
 0x230   : > { %v5477_v2 = vadd.f32 %v2182_v61, %v5370_v52  ;;  %v2086_v10 = vpop.f32.mrf.mxu0  ;;  %v2135_v23 = vpop.f32.mrf.mxu1  ;;  %v5481_v17 = vadd.f32 %v2231_v11, %v5374_v0 }
 0x231   : > { %v5484_v16 = vadd.f32 %v2086_v10, %v5360_v7  ;;  %v5487_v58 = vadd.f32 %v2135_v23, %v5362_v48 }
 0x232   : > { %v2287_v31 = vmax.f32 %v2286_v56, %v5477_v2 }
 0x233   : > { %v2291_v3 = vmax.f32 %v5484_v16, %v5487_v58 }
 0x234   : > { %v2288_v29 = vmax.f32 %v2287_v31, %v5481_v17 }
 0x236   : > { %2289 = vmax.xlane.f32.xlu0 %v2288_v29 }
 0x237   : > { %v2184_v34 = vpop.f32.mrf.mxu2  ;;  %v2233_v18 = vpop.f32.mrf.mxu3 }
 0x238   : > { %v5493_v59 = vadd.f32 %v2184_v34, %v5370_v52  ;;  %v2089_v36 = vpop.f32.mrf.mxu0  ;;  %v2138_v21 = vpop.f32.mrf.mxu1  ;;  %v5497_v22 = vadd.f32 %v2233_v18, %v5374_v0 }
 0x239   : > { %v5500_v30 = vadd.f32 %v2089_v36, %v5360_v7  ;;  %v5503_v25 = vadd.f32 %v2138_v21, %v5362_v48 }
 0x23a   : > { %v2292_v12 = vmax.f32 %v2291_v3, %v5493_v59 }
 0x23b   : > { %v2296_v41 = vmax.f32 %v5500_v30, %v5503_v25 }
 0x23c   : > { %v2293_v8 = vmax.f32 %v2292_v12, %v5497_v22 }
 0x23e   : > { %2294 = vmax.xlane.f32.xlu1 %v2293_v8 }
 0x23f   : > { %v2187_v60 = vpop.f32.mrf.mxu2  ;;  %v2236_v38 = vpop.f32.mrf.mxu3 }
 0x240   : > { %v5509_v20 = vadd.f32 %v2187_v60, %v5370_v52  ;;  %v2091_v4 = vpop.f32.mrf.mxu0  ;;  %v2140_v49 = vpop.f32.mrf.mxu1  ;;  %v5513_v35 = vadd.f32 %v2236_v38, %v5374_v0 }
 0x241   : > { %v5516_v54 = vadd.f32 %v2091_v4, %v5360_v7  ;;  %v5519_v39 = vadd.f32 %v2140_v49, %v5362_v48 }
 0x242   : > { %v2297_v28 = vmax.f32 %v2296_v41, %v5509_v20 }
 0x243   : > { %v2301_v11 = vmax.f32 %v5516_v54, %v5519_v39 }
 0x244   : > { %v2298_v45 = vmax.f32 %v2297_v28, %v5513_v35 }
 0x246   : > { %2299 = vmax.xlane.f32.xlu2 %v2298_v45 }
 0x247   : > { %v2189_v47 = vpop.f32.mrf.mxu2  ;;  %v2238_v61 = vpop.f32.mrf.mxu3 }
 0x248   : > { %v5525_v56 = vadd.f32 %v2189_v47, %v5370_v52  ;;  %v2094_v10 = vpop.f32.mrf.mxu0  ;;  %v2143_v23 = vpop.f32.mrf.mxu1  ;;  %v5529_v29 = vadd.f32 %v2238_v61, %v5374_v0 }
 0x249   : > { %v5532_v34 = vadd.f32 %v2094_v10, %v5360_v7  ;;  %v5535_v18 = vadd.f32 %v2143_v23, %v5362_v48 }
 0x24a   : > { %v2302_v31 = vmax.f32 %v2301_v11, %v5525_v56 }
 0x24b   : > { %v2306_v12 = vmax.f32 %v5532_v34, %v5535_v18 }
 0x24c   : > { %v2303_v3 = vmax.f32 %v2302_v31, %v5529_v29 }
 0x24e   : > { %2304 = vmax.xlane.f32.xlu0 %v2303_v3 }
 0x24f   : > { %v2192_v36 = vpop.f32.mrf.mxu2  ;;  %v2241_v21 = vpop.f32.mrf.mxu3 }
 0x250   : > { %v5541_v8 = vadd.f32 %v2192_v36, %v5370_v52  ;;  %v2096_v60 = vpop.f32.mrf.mxu0  ;;  %v2145_v38 = vpop.f32.mrf.mxu1  ;;  %v5545_v4 = vadd.f32 %v2241_v21, %v5374_v0 }
 0x251   : > { %v5548_v49 = vadd.f32 %v2096_v60, %v5360_v7  ;;  %v5551_v28 = vadd.f32 %v2145_v38, %v5362_v48 }
 0x252   : > { %v2307_v41 = vmax.f32 %v2306_v12, %v5541_v8 }
 0x253   : > { %v2311_v11 = vmax.f32 %v5548_v49, %v5551_v28 }
 0x254   : > { %v2308_v45 = vmax.f32 %v2307_v41, %v5545_v4 }
 0x256   : > { %2309 = vmax.xlane.f32.xlu1 %v2308_v45 }
 0x257   : > { %v2194_v47 = vpop.f32.mrf.mxu2  ;;  %v2243_v61 = vpop.f32.mrf.mxu3 }
 0x258   : > { %v5557_v10 = vadd.f32 %v2194_v47, %v5370_v52  ;;  %v5561_v31 = vadd.f32 %v2243_v61, %v5374_v0 }
 0x25a   : > { %6088 = vst [vmem:[#allocation5_spill] sm:$0xff] %v5557_v10  ;;  %v2312_v23 = vmax.f32 %v2311_v11, %v5557_v10 }
 0x25b   : > { %6089 = vst [vmem:[#allocation6_spill] sm:$0xff] %v5561_v31 }
 0x25c   : > { %v2313_v3 = vmax.f32 %v2312_v23, %v5561_v31 }
 0x25e   : > { %2314 = vmax.xlane.f32.xlu2 %v2313_v3 }
 0x25f   : > { %v2099_v36 = vpop.f32.mrf.mxu0  ;;  %v2148_v21 = vpop.f32.mrf.mxu1 }
 0x260   : > { %v5565_v12 = vadd.f32 %v2099_v36, %v5360_v7  ;;  %v5568_v60 = vadd.f32 %v2148_v21, %v5362_v48 }
 0x262   : > { %6090 = vst [vmem:[#allocation7_spill] sm:$0xff] %v5565_v12  ;;  %v2316_v45 = vmax.f32 %v5565_v12, %v5568_v60 }
 0x263   : > { %6091 = vst [vmem:[#allocation8_spill] sm:$0xff] %v5568_v60 }
 0x266   : > { %v2197_v38 = vpop.f32.mrf.mxu2  ;;  %v2246_v41 = vpop.f32.mrf.mxu3 }
 0x267   : > { %v5573_v47 = vadd.f32 %v2197_v38, %v5370_v52  ;;  %v2101_v61 = vpop.f32.mrf.mxu0  ;;  %v2150_v11 = vpop.f32.mrf.mxu1  ;;  %v5577_v3 = vadd.f32 %v2246_v41, %v5374_v0 }
 0x268   : > { %v5580_v36 = vadd.f32 %v2101_v61, %v5360_v7  ;;  %v5583_v21 = vadd.f32 %v2150_v11, %v5362_v48 }
 0x269   : > { %v2317_v23 = vmax.f32 %v2316_v45, %v5573_v47  ;;  %6092 = vst [vmem:[#allocation9_spill] sm:$0xff] %v5577_v3 }
 0x26a   : > { %6093 = vst [vmem:[#allocation10_spill] sm:$0xff] %v5580_v36  ;;  %v2321_v38 = vmax.f32 %v5580_v36, %v5583_v21 }
 0x26b   : > { %6094 = vst [vmem:[#allocation11_spill] sm:$0xff] %v5583_v21  ;;  %v2318_v31 = vmax.f32 %v2317_v23, %v5577_v3 }
 0x26d   : > { %2319 = vmax.xlane.f32.xlu0 %v2318_v31 }
 0x26e   : > { %v2199_v60 = vpop.f32.mrf.mxu2  ;;  %v2248_v12 = vpop.f32.mrf.mxu3 }
 0x26f   : > { %v5589_v10 = vadd.f32 %v2199_v60, %v5370_v52  ;;  %v5593_v45 = vadd.f32 %v2248_v12, %v5374_v0 }
 0x271   : > { %6095 = vst [vmem:[#allocation12_spill] sm:$0xff] %v5589_v10  ;;  %v2322_v41 = vmax.f32 %v2321_v38, %v5589_v10 }
 0x272   : > { %6096 = vst [vmem:[#allocation13_spill] sm:$0xff] %v5593_v45 }
 0x273   : > { %v2323_v61 = vmax.f32 %v2322_v41, %v5593_v45 }
 0x275   : > { %2324 = vmax.xlane.f32.xlu1 %v2323_v61 }
 0x279   : > { %v2260_v11 = vpop.xlane.xlu1 %2259 }
 0x27a   : > { %v5597_v23 = vsub.f32 %v5365_v44, %v2260_v11  ;;  %v5600_v31 = vsub.f32 %v5368_v51, %v2260_v11  ;;  %v5603_v21 = vsub.f32 %v5381_v42, %v2260_v11  ;;  %v5606_v38 = vsub.f32 %v5385_v55, %v2260_v11 }
 0x27b   : > { %v2104_v60 = vpop.f32.mrf.mxu0  ;;  %v2153_v36 = vpop.f32.mrf.mxu1 }
 0x27c   : > { %6097 = vst [vmem:[#allocation14_spill] sm:$0xff] %v5597_v23  ;;  %v2400_v12 = vmul.f32 1.442695, %v5597_v23  ;;  %v2402_v41 = vmul.f32 1.442695, %v5600_v31  ;;  %v5612_v44 = vadd.f32 %v2104_v60, %v5360_v7  ;;  %v5615_v51 = vadd.f32 %v2153_v36, %v5362_v48 }
 0x27d   : > { %6098 = vst [vmem:[#allocation15_spill] sm:$0xff] %v5600_v31  ;;  %v2404_v61 = vmul.f32 1.442695, %v5603_v21  ;;  %v2406_v42 = vmul.f32 1.442695, %v5606_v38 }
 0x27e   : > { %6099 = vst [vmem:[#allocation16_spill] sm:$0xff] %v5603_v21  ;;  %3494 = vpow2.f32 %v2400_v12  ;;  %v2326_v60 = vmax.f32 %v5612_v44, %v5615_v51 }
 0x27f   : > { %6100 = vst [vmem:[#allocation17_spill] sm:$0xff] %v5606_v38  ;;  %3496 = vpow2.f32 %v2402_v41 }
 0x280   : > { %6101 = vst [vmem:[#allocation18_spill] sm:$0xff] %v5615_v51  ;;  %3498 = vpow2.f32 %v2404_v61 }
 0x281   : > { %v2265_v45 = vpop.xlane.xlu2 %2264  ;;  %3500 = vpow2.f32 %v2406_v42 }
 0x282   : > { %v5619_v55 = vsub.f32 %v5388_v5, %v2265_v45  ;;  %v5622_v11 = vsub.f32 %v5391_v40, %v2265_v45  ;;  %v5625_v21 = vsub.f32 %v5397_v57, %v2265_v45  ;;  %v2202_v12 = vpop.f32.mrf.mxu2  ;;  %v2251_v41 = vpop.f32.mrf.mxu3  ;;  %v5633_v61 = vsub.f32 %v5401_v63, %v2265_v45 }
 0x283   : > { %v5630_v36 = vadd.f32 %v2202_v12, %v5370_v52  ;;  %v2106_v31 = vpop.f32.mrf.mxu0  ;;  %v2155_v57 = vpop.f32.mrf.mxu1  ;;  %v5640_v51 = vadd.f32 %v2251_v41, %v5374_v0 }
 0x284   : > { %6102 = vst [vmem:[#allocation19_spill] sm:$0xff] %v5619_v55  ;;  %v3495_v38 = vpop.eup %3494  ;;  %v2408_v5 = vmul.f32 1.442695, %v5619_v55  ;;  %v2410_v40 = vmul.f32 1.442695, %v5622_v11  ;;  %v5643_v63 = vadd.f32 %v2106_v31, %v5360_v7  ;;  %v5646_v45 = vadd.f32 %v2155_v57, %v5362_v48 }
 0x285   : > { %6103 = vst [vmem:[#allocation20_spill] sm:$0xff] %v5622_v11  ;;  %v3497_v23 = vpop.eup %3496  ;;  %v2412_v10 = vmul.f32 1.442695, %v5625_v21  ;;  %v2327_v3 = vmax.f32 %v2326_v60, %v5630_v36  ;;  %v2414_v55 = vmul.f32 1.442695, %v5633_v61 }
 0x286   : > { %6104 = vst [vmem:[#allocation21_spill] sm:$0xff] %v5625_v21  ;;  %3502 = vpow2.f32 %v2408_v5  ;;  %v2528_v12 = vadd.f32 %v3497_v23, %v3495_v38  ;;  %v3499_v42 = vpop.eup %3498 }
 0x287   : > { %3504 = vpow2.f32 %v2410_v40  ;;  %v2328_v11 = vmax.f32 %v2327_v3, %v5640_v51  ;;  %v3501_v41 = vpop.eup %3500  ;;  %v2331_v3 = vmax.f32 %v5643_v63, %v5646_v45 }
 0x288   : > { %v2529_v21 = vadd.f32 %v3499_v42, %v2528_v12  ;;  %3506 = vpow2.f32 %v2412_v10 }
 0x289   : > { %2329 = vmax.xlane.f32.xlu2 %v2328_v11  ;;  %v2270_v60 = vpop.xlane.xlu0 %2269  ;;  %3508 = vpow2.f32 %v2414_v55 }
 0x28a   : > { %v5651_v5 = vsub.f32 %v5404_v26, %v2270_v60  ;;  %v5654_v23 = vsub.f32 %v5407_v6, %v2270_v60  ;;  %v5657_v7 = vsub.f32 %v5413_v50, %v2270_v60  ;;  %v2204_v48 = vpop.f32.mrf.mxu2  ;;  %v2253_v31 = vpop.f32.mrf.mxu3  ;;  %v2530_v10 = vadd.f32 %v3501_v41, %v2529_v21 }
 0x28b   : > { %v5662_v38 = vadd.f32 %v2204_v48, %v5370_v52  ;;  %v5665_v26 = vsub.f32 %v5417_v13, %v2270_v60  ;;  %v5672_v42 = vadd.f32 %v2253_v31, %v5374_v0 }
 0x28c   : > { %6105 = vst [vmem:[#allocation22_spill] sm:$0xff] %v5657_v7  ;;  %v3503_v11 = vpop.eup %3502  ;;  %v2416_v6 = vmul.f32 1.442695, %v5651_v5  ;;  %v2418_v40 = vmul.f32 1.442695, %v5654_v23  ;;  %2531 = vadd.xlane.f32.xlu1 %v2530_v10 }
 0x28d   : > { %v3505_v50 = vpop.eup %3504  ;;  %v2420_v57 = vmul.f32 1.442695, %v5657_v7  ;;  %v2332_v12 = vmax.f32 %v2331_v3, %v5662_v38  ;;  %v2422_v55 = vmul.f32 1.442695, %v5665_v26 }
 0x28e   : > { %3510 = vpow2.f32 %v2416_v6  ;;  %v2533_v52 = vadd.f32 %v3505_v50, %v3503_v11  ;;  %v3507_v21 = vpop.eup %3506 }
 0x28f   : > { %3512 = vpow2.f32 %v2418_v40  ;;  %v2333_v13 = vmax.f32 %v2332_v12, %v5672_v42  ;;  %v3509_v48 = vpop.eup %3508 }
 0x290   : > { %v2534_v60 = vadd.f32 %v3507_v21, %v2533_v52  ;;  %3514 = vpow2.f32 %v2420_v57 }
 0x291   : > { %2334 = vmax.xlane.f32.xlu0 %v2333_v13  ;;  %v2275_v41 = vpop.xlane.xlu2 %2274  ;;  %3516 = vpow2.f32 %v2422_v55 }
 0x292   : > { %v5677_v7 = vsub.f32 %v5420_v14, %v2275_v41  ;;  %v5680_v0 = vsub.f32 %v5423_v62, %v2275_v41  ;;  %v5683_v31 = vsub.f32 %v5429_v19, %v2275_v41  ;;  %v2535_v3 = vadd.f32 %v3509_v48, %v2534_v60 }
 0x293   : > { %v5686_v11 = vsub.f32 %v5433_v1, %v2275_v41 }
 0x294   : > { %v3511_v10 = vpop.eup %3510  ;;  %v2424_v6 = vmul.f32 1.442695, %v5677_v7  ;;  %v2426_v40 = vmul.f32 1.442695, %v5680_v0  ;;  %v2428_v14 = vmul.f32 1.442695, %v5683_v31  ;;  %2536 = vadd.xlane.f32.xlu2 %v2535_v3 }
 0x295   : > { %v3513_v50 = vpop.eup %3512  ;;  %v2430_v19 = vmul.f32 1.442695, %v5686_v11 }
 0x296   : > { %3518 = vpow2.f32 %v2424_v6  ;;  %v2538_v62 = vadd.f32 %v3513_v50, %v3511_v10  ;;  %v3515_v57 = vpop.eup %3514 }
 0x297   : > { %3520 = vpow2.f32 %v2426_v40  ;;  %v3517_v21 = vpop.eup %3516 }
 0x298   : > { %v2539_v12 = vadd.f32 %v3515_v57, %v2538_v62  ;;  %3522 = vpow2.f32 %v2428_v14 }
 0x299   : > { %v2280_v52 = vpop.xlane.xlu1 %2279  ;;  %3524 = vpow2.f32 %v2430_v19 }
 0x29a   : > { %v5693_v1 = vsub.f32 %v5436_v15, %v2280_v52  ;;  %v5696_v13 = vsub.f32 %v5439_v24, %v2280_v52  ;;  %v5699_v55 = vsub.f32 %v5445_v37, %v2280_v52  ;;  %v2540_v60 = vadd.f32 %v3517_v21, %v2539_v12 }
 0x29b   : > { %v5702_v48 = vsub.f32 %v5449_v33, %v2280_v52 }
 0x29c   : > { %v3519_v41 = vpop.eup %3518  ;;  %v2432_v3 = vmul.f32 1.442695, %v5693_v1  ;;  %v2434_v10 = vmul.f32 1.442695, %v5696_v13  ;;  %v2436_v15 = vmul.f32 1.442695, %v5699_v55  ;;  %2541 = vadd.xlane.f32.xlu0 %v2540_v60 }
 0x29d   : > { %v3521_v6 = vpop.eup %3520  ;;  %v2438_v37 = vmul.f32 1.442695, %v5702_v48 }
 0x29e   : > { %3526 = vpow2.f32 %v2432_v3  ;;  %v2543_v24 = vadd.f32 %v3521_v6, %v3519_v41  ;;  %v3523_v40 = vpop.eup %3522 }
 0x29f   : > { %3528 = vpow2.f32 %v2434_v10  ;;  %v3525_v62 = vpop.eup %3524 }
 0x2a0   : > { %v2544_v50 = vadd.f32 %v3523_v40, %v2543_v24  ;;  %3530 = vpow2.f32 %v2436_v15 }
 0x2a1   : > { %v2285_v14 = vpop.xlane.xlu2 %2284  ;;  %3532 = vpow2.f32 %v2438_v37 }
 0x2a2   : > { %v5709_v33 = vsub.f32 %v5452_v27, %v2285_v14  ;;  %v5712_v57 = vsub.f32 %v5455_v43, %v2285_v14  ;;  %v5715_v19 = vsub.f32 %v5461_v53, %v2285_v14  ;;  %v2545_v12 = vadd.f32 %v3525_v62, %v2544_v50 }
 0x2a3   : > { %v5718_v21 = vsub.f32 %v5465_v9, %v2285_v14 }
 0x2a4   : > { %v3527_v52 = vpop.eup %3526  ;;  %v2440_v60 = vmul.f32 1.442695, %v5709_v33  ;;  %v2442_v41 = vmul.f32 1.442695, %v5712_v57  ;;  %v2444_v27 = vmul.f32 1.442695, %v5715_v19  ;;  %2546 = vadd.xlane.f32.xlu1 %v2545_v12 }
 0x2a5   : > { %v3529_v3 = vpop.eup %3528  ;;  %v2446_v53 = vmul.f32 1.442695, %v5718_v21 }
 0x2a6   : > { %3534 = vpow2.f32 %v2440_v60  ;;  %v2548_v43 = vadd.f32 %v3529_v3, %v3527_v52  ;;  %v3531_v10 = vpop.eup %3530 }
 0x2a7   : > { %3536 = vpow2.f32 %v2442_v41  ;;  %v3533_v24 = vpop.eup %3532 }
 0x2a8   : > { %v2549_v6 = vadd.f32 %v3531_v10, %v2548_v43  ;;  %3538 = vpow2.f32 %v2444_v27 }
 0x2a9   : > { %v2290_v15 = vpop.xlane.xlu0 %2289  ;;  %3540 = vpow2.f32 %v2446_v53 }
 0x2aa   : > { %v5725_v9 = vsub.f32 %v5468_v46, %v2290_v15  ;;  %v5728_v40 = vsub.f32 %v5471_v32, %v2290_v15  ;;  %v5731_v37 = vsub.f32 %v5477_v2, %v2290_v15  ;;  %v2550_v50 = vadd.f32 %v3533_v24, %v2549_v6 }
 0x2ab   : > { %v5734_v62 = vsub.f32 %v5481_v17, %v2290_v15 }
 0x2ac   : > { %v3535_v14 = vpop.eup %3534  ;;  %v2448_v12 = vmul.f32 1.442695, %v5725_v9  ;;  %v2450_v52 = vmul.f32 1.442695, %v5728_v40  ;;  %v2452_v46 = vmul.f32 1.442695, %v5731_v37  ;;  %2551 = vadd.xlane.f32.xlu2 %v2550_v50 }
 0x2ad   : > { %v3537_v60 = vpop.eup %3536  ;;  %v2454_v2 = vmul.f32 1.442695, %v5734_v62 }
 0x2ae   : > { %3542 = vpow2.f32 %v2448_v12  ;;  %v2553_v32 = vadd.f32 %v3537_v60, %v3535_v14  ;;  %v3539_v41 = vpop.eup %3538 }
 0x2af   : > { %3544 = vpow2.f32 %v2450_v52  ;;  %v3541_v43 = vpop.eup %3540 }
 0x2b0   : > { %v2554_v3 = vadd.f32 %v3539_v41, %v2553_v32  ;;  %3546 = vpow2.f32 %v2452_v46 }
 0x2b1   : > { %v2295_v27 = vpop.xlane.xlu1 %2294  ;;  %3548 = vpow2.f32 %v2454_v2 }
 0x2b2   : > { %v5741_v17 = vsub.f32 %v5484_v16, %v2295_v27  ;;  %v5744_v10 = vsub.f32 %v5487_v58, %v2295_v27  ;;  %v5747_v53 = vsub.f32 %v5493_v59, %v2295_v27  ;;  %v2555_v6 = vadd.f32 %v3541_v43, %v2554_v3 }
 0x2b3   : > { %v5750_v24 = vsub.f32 %v5497_v22, %v2295_v27 }
 0x2b4   : > { %v3543_v15 = vpop.eup %3542  ;;  %v2456_v50 = vmul.f32 1.442695, %v5741_v17  ;;  %v2458_v14 = vmul.f32 1.442695, %v5744_v10  ;;  %v2460_v16 = vmul.f32 1.442695, %v5747_v53  ;;  %2556 = vadd.xlane.f32.xlu0 %v2555_v6 }
 0x2b5   : > { %v3545_v12 = vpop.eup %3544  ;;  %v2462_v59 = vmul.f32 1.442695, %v5750_v24 }
 0x2b6   : > { %3550 = vpow2.f32 %v2456_v50  ;;  %v2558_v58 = vadd.f32 %v3545_v12, %v3543_v15  ;;  %v3547_v52 = vpop.eup %3546 }
 0x2b7   : > { %3552 = vpow2.f32 %v2458_v14  ;;  %v3549_v32 = vpop.eup %3548 }
 0x2b8   : > { %v2559_v60 = vadd.f32 %v3547_v52, %v2558_v58  ;;  %3554 = vpow2.f32 %v2460_v16 }
 0x2b9   : > { %v2300_v46 = vpop.xlane.xlu2 %2299  ;;  %3556 = vpow2.f32 %v2462_v59 }
 0x2ba   : > { %v5757_v22 = vsub.f32 %v5500_v30, %v2300_v46  ;;  %v5760_v41 = vsub.f32 %v5503_v25, %v2300_v46  ;;  %v5763_v2 = vsub.f32 %v5509_v20, %v2300_v46  ;;  %v2560_v3 = vadd.f32 %v3549_v32, %v2559_v60 }
 0x2bb   : > { %v5766_v43 = vsub.f32 %v5513_v35, %v2300_v46 }
 0x2bc   : > { %v3551_v27 = vpop.eup %3550  ;;  %v2464_v6 = vmul.f32 1.442695, %v5757_v22  ;;  %v2466_v15 = vmul.f32 1.442695, %v5760_v41  ;;  %v2468_v30 = vmul.f32 1.442695, %v5763_v2  ;;  %2561 = vadd.xlane.f32.xlu1 %v2560_v3 }
 0x2bd   : > { %v3553_v50 = vpop.eup %3552  ;;  %v2470_v20 = vmul.f32 1.442695, %v5766_v43 }
 0x2be   : > { %3558 = vpow2.f32 %v2464_v6  ;;  %v2563_v25 = vadd.f32 %v3553_v50, %v3551_v27  ;;  %v3555_v14 = vpop.eup %3554 }
 0x2bf   : > { %3560 = vpow2.f32 %v2466_v15  ;;  %v3557_v58 = vpop.eup %3556 }
 0x2c0   : > { %v2564_v12 = vadd.f32 %v3555_v14, %v2563_v25  ;;  %3562 = vpow2.f32 %v2468_v30 }
 0x2c1   : > { %v2305_v16 = vpop.xlane.xlu0 %2304  ;;  %3564 = vpow2.f32 %v2470_v20 }
 0x2c2   : > { %v5773_v35 = vsub.f32 %v5516_v54, %v2305_v16  ;;  %v5776_v52 = vsub.f32 %v5519_v39, %v2305_v16  ;;  %v5779_v59 = vsub.f32 %v5525_v56, %v2305_v16  ;;  %v2565_v60 = vadd.f32 %v3557_v58, %v2564_v12 }
 0x2c3   : > { %v5782_v32 = vsub.f32 %v5529_v29, %v2305_v16 }
 0x2c4   : > { %v3559_v46 = vpop.eup %3558  ;;  %v2472_v3 = vmul.f32 1.442695, %v5773_v35  ;;  %v2474_v27 = vmul.f32 1.442695, %v5776_v52  ;;  %v2476_v54 = vmul.f32 1.442695, %v5779_v59  ;;  %2566 = vadd.xlane.f32.xlu2 %v2565_v60 }
 0x2c5   : > { %v3561_v6 = vpop.eup %3560  ;;  %v2478_v56 = vmul.f32 1.442695, %v5782_v32 }
 0x2c6   : > { %3566 = vpow2.f32 %v2472_v3  ;;  %v2568_v39 = vadd.f32 %v3561_v6, %v3559_v46  ;;  %v3563_v15 = vpop.eup %3562 }
 0x2c7   : > { %3568 = vpow2.f32 %v2474_v27  ;;  %v3565_v25 = vpop.eup %3564 }
 0x2c8   : > { %v2569_v50 = vadd.f32 %v3563_v15, %v2568_v39  ;;  %3570 = vpow2.f32 %v2476_v54 }
 0x2c9   : > { %v2310_v30 = vpop.xlane.xlu1 %2309  ;;  %3572 = vpow2.f32 %v2478_v56  ;;  %v6108_v56 = vld [vmem:[#allocation5_spill] sm:$0xff] }
 0x2ca   : > { %v5789_v29 = vsub.f32 %v5532_v34, %v2310_v30  ;;  %v5792_v14 = vsub.f32 %v5535_v18, %v2310_v30  ;;  %v5795_v20 = vsub.f32 %v5541_v8, %v2310_v30  ;;  %v5798_v12 = vsub.f32 %v5545_v4, %v2310_v30  ;;  %v6110_v30 = vld [vmem:[#allocation6_spill] sm:$0xff] }
 0x2cb   : > { %v2570_v16 = vadd.f32 %v3565_v25, %v2569_v50 }
 0x2cc   : > { %v3567_v58 = vpop.eup %3566  ;;  %v2480_v60 = vmul.f32 1.442695, %v5789_v29  ;;  %v2482_v46 = vmul.f32 1.442695, %v5792_v14  ;;  %v2484_v34 = vmul.f32 1.442695, %v5795_v20 }
 0x2cd   : > { %v3569_v3 = vpop.eup %3568  ;;  %2571 = vadd.xlane.f32.xlu0 %v2570_v16  ;;  %v2486_v8 = vmul.f32 1.442695, %v5798_v12 }
 0x2ce   : > { %3574 = vpow2.f32 %v2480_v60  ;;  %v2573_v18 = vadd.f32 %v3569_v3, %v3567_v58  ;;  %v3571_v27 = vpop.eup %3570 }
 0x2cf   : > { %3576 = vpow2.f32 %v2482_v46  ;;  %v3573_v54 = vpop.eup %3572 }
 0x2d0   : > { %v2574_v6 = vadd.f32 %v3571_v27, %v2573_v18  ;;  %3578 = vpow2.f32 %v2484_v34 }
 0x2d1   : > { %v2315_v4 = vpop.xlane.xlu2 %2314  ;;  %3580 = vpow2.f32 %v2486_v8 }
 0x2d2   : > { %v5805_v39 = vsub.f32 %v5548_v49, %v2315_v4  ;;  %v5808_v15 = vsub.f32 %v5551_v28, %v2315_v4  ;;  %v5811_v50 = vsub.f32 %v6108_v56, %v2315_v4  ;;  %v5814_v25 = vsub.f32 %v6110_v30, %v2315_v4 }
 0x2d3   : > { %v2575_v16 = vadd.f32 %v3573_v54, %v2574_v6 }
 0x2d4   : > { %6106 = vst [vmem:[#allocation23_spill] sm:$0xff] %v5805_v39  ;;  %v3575_v58 = vpop.eup %3574  ;;  %v2488_v60 = vmul.f32 1.442695, %v5805_v39  ;;  %v2490_v46 = vmul.f32 1.442695, %v5808_v15 }
 0x2d5   : > { %6107 = vst [vmem:[#allocation24_spill] sm:$0xff] %v5808_v15  ;;  %v3577_v3 = vpop.eup %3576  ;;  %v2492_v49 = vmul.f32 1.442695, %v5811_v50  ;;  %2576 = vadd.xlane.f32.xlu1 %v2575_v16  ;;  %v2494_v18 = vmul.f32 1.442695, %v5814_v25  ;;  %v6111_v16 = vld [vmem:[#allocation7_spill] sm:$0xff] }
 0x2d6   : > { %6109 = vst [vmem:[#allocation5_spill] sm:$0xff] %v5811_v50  ;;  %3582 = vpow2.f32 %v2488_v60  ;;  %v2578_v28 = vadd.f32 %v3577_v3, %v3575_v58  ;;  %v3579_v34 = vpop.eup %3578  ;;  %v6113_v58 = vld [vmem:[#allocation8_spill] sm:$0xff] }
 0x2d7   : > { %3584 = vpow2.f32 %v2490_v46  ;;  %v3581_v8 = vpop.eup %3580 }
 0x2d8   : > { %v2579_v27 = vadd.f32 %v3579_v34, %v2578_v28  ;;  %3586 = vpow2.f32 %v2492_v49  ;;  %v6116_v49 = vld [vmem:[#allocation9_spill] sm:$0xff] }
 0x2d9   : > { %3588 = vpow2.f32 %v2494_v18 }
 0x2da   : > { %v2580_v4 = vadd.f32 %v3581_v8, %v2579_v27 }
 0x2dc   : > { %v3583_v6 = vpop.eup %3582  ;;  %2581 = vadd.xlane.f32.xlu2 %v2580_v4 }
 0x2dd   : > { %v3585_v54 = vpop.eup %3584 }
 0x2de   : > { %v2583_v56 = vadd.f32 %v3585_v54, %v3583_v6  ;;  %v3587_v30 = vpop.eup %3586  ;;  %v6118_v54 = vld [vmem:[#allocation10_spill] sm:$0xff] }
 0x2df   : > { %v3589_v50 = vpop.eup %3588 }
 0x2e0   : > { %v2320_v15 = vpop.xlane.xlu0 %2319  ;;  %v2584_v39 = vadd.f32 %v3587_v30, %v2583_v56  ;;  %v6120_v56 = vld [vmem:[#allocation11_spill] sm:$0xff]  ;;  %v6123_v30 = vld [vmem:[#allocation13_spill] sm:$0xff] }
 0x2e1   : > { %v5821_v60 = vsub.f32 %v6111_v16, %v2320_v15  ;;  %v5824_v46 = vsub.f32 %v6113_v58, %v2320_v15  ;;  %v5827_v3 = vsub.f32 %v5573_v47, %v2320_v15  ;;  %v5830_v28 = vsub.f32 %v6116_v49, %v2320_v15 }
 0x2e2   : > { %v2585_v34 = vadd.f32 %v3589_v50, %v2584_v39  ;;  %v6122_v39 = vld [vmem:[#allocation12_spill] sm:$0xff] }
 0x2e3   : > { %6112 = vst [vmem:[#allocation6_spill] sm:$0xff] %v5821_v60  ;;  %v2496_v18 = vmul.f32 1.442695, %v5821_v60  ;;  %v2498_v27 = vmul.f32 1.442695, %v5824_v46 }
 0x2e4   : > { %6114 = vst [vmem:[#allocation7_spill] sm:$0xff] %v5824_v46  ;;  %v2500_v8 = vmul.f32 1.442695, %v5827_v3  ;;  %2586 = vadd.xlane.f32.xlu0 %v2585_v34  ;;  %v2502_v4 = vmul.f32 1.442695, %v5830_v28 }
 0x2e5   : > { %6115 = vst [vmem:[#allocation8_spill] sm:$0xff] %v5827_v3  ;;  %3590 = vpow2.f32 %v2496_v18 }
 0x2e6   : > { %6117 = vst [vmem:[#allocation9_spill] sm:$0xff] %v5830_v28  ;;  %3592 = vpow2.f32 %v2498_v27 }
 0x2e7   : > { %3594 = vpow2.f32 %v2500_v8 }
 0x2e8   : > { %v2325_v6 = vpop.xlane.xlu1 %2324  ;;  %3596 = vpow2.f32 %v2502_v4 }
 0x2e9   : > { %v5837_v47 = vsub.f32 %v6118_v54, %v2325_v6  ;;  %v5840_v15 = vsub.f32 %v6120_v56, %v2325_v6  ;;  %v5843_v50 = vsub.f32 %v6122_v39, %v2325_v6  ;;  %v5846_v16 = vsub.f32 %v6123_v30, %v2325_v6 }
 0x2eb   : > { %6119 = vst [vmem:[#allocation10_spill] sm:$0xff] %v5837_v47  ;;  %v3591_v58 = vpop.eup %3590  ;;  %v2504_v49 = vmul.f32 1.442695, %v5837_v47  ;;  %v2506_v34 = vmul.f32 1.442695, %v5840_v15 }
 0x2ec   : > { %6121 = vst [vmem:[#allocation11_spill] sm:$0xff] %v5840_v15  ;;  %v3593_v18 = vpop.eup %3592  ;;  %v2508_v27 = vmul.f32 1.442695, %v5843_v50  ;;  %v2510_v56 = vmul.f32 1.442695, %v5846_v16 }
 0x2ed   : > { %3598 = vpow2.f32 %v2504_v49  ;;  %v2588_v8 = vadd.f32 %v3593_v18, %v3591_v58  ;;  %v3595_v54 = vpop.eup %3594 }
 0x2ee   : > { %3600 = vpow2.f32 %v2506_v34  ;;  %v3597_v28 = vpop.eup %3596  ;;  %v6124_v34 = vld [vmem:[#allocation18_spill] sm:$0xff] }
 0x2ef   : > { %v2589_v39 = vadd.f32 %v3595_v54, %v2588_v8  ;;  %3602 = vpow2.f32 %v2508_v27 }
 0x2f0   : > { %3604 = vpow2.f32 %v2510_v56 }
 0x2f1   : > { %v2590_v4 = vadd.f32 %v3597_v28, %v2589_v39 }
 0x2f3   : > { %v3599_v6 = vpop.eup %3598  ;;  %2591 = vadd.xlane.f32.xlu1 %v2590_v4 }
 0x2f4   : > { %v3601_v30 = vpop.eup %3600 }
 0x2f5   : > { %v2593_v47 = vadd.f32 %v3601_v30, %v3599_v6  ;;  %v3603_v3 = vpop.eup %3602 }
 0x2f6   : > { %v3605_v46 = vpop.eup %3604 }
 0x2f7   : > { %v2594_v15 = vadd.f32 %v3603_v3, %v2593_v47 }
 0x2f9   : > { %v2595_v60 = vadd.f32 %v3605_v46, %v2594_v15 }
 0x2fb   : > { %2596 = vadd.xlane.f32.xlu2 %v2595_v60 }
 0x2fc   : > { %v2330_v49 = vpop.xlane.xlu2 %2329 }
 0x2fd   : > { %v5853_v58 = vsub.f32 %v5612_v44, %v2330_v49  ;;  %v5856_v18 = vsub.f32 %v6124_v34, %v2330_v49  ;;  %v5859_v27 = vsub.f32 %v5630_v36, %v2330_v49  ;;  %v5862_v28 = vsub.f32 %v5640_v51, %v2330_v49 }
 0x2ff   : > { %v2512_v8 = vmul.f32 1.442695, %v5853_v58  ;;  %v2514_v3 = vmul.f32 1.442695, %v5856_v18  ;;  %v2516_v60 = vmul.f32 1.442695, %v5859_v27  ;;  %v2532_v46 = vpop.xlane.xlu1 %2531 }
 0x300   : > { %v2518_v44 = vmul.f32 1.442695, %v5862_v28 }
 0x301   : > { %3606 = vpow2.f32 %v2512_v8 }
 0x302   : > { %3608 = vpow2.f32 %v2514_v3 }
 0x303   : > { %3610 = vpow2.f32 %v2516_v60 }
 0x304   : > { %v2335_v47 = vpop.xlane.xlu0 %2334  ;;  %3612 = vlog2.f32 %v2532_v46 }
 0x305   : > { %v5869_v36 = vsub.f32 %v5643_v63, %v2335_v47  ;;  %v5872_v51 = vsub.f32 %v5646_v45, %v2335_v47  ;;  %v5875_v15 = vsub.f32 %v5662_v38, %v2335_v47  ;;  %3614 = vpow2.f32 %v2518_v44  ;;  %v6128_v44 = vld [vmem:[#allocation14_spill] sm:$0xff] }
 0x306   : > { %v5878_v54 = vsub.f32 %v5672_v42, %v2335_v47  ;;  %v6129_v47 = vld [vmem:[#allocation15_spill] sm:$0xff] }
 0x307   : > { %6125 = vst [vmem:[#allocation12_spill] sm:$0xff] %v5872_v51  ;;  %v3607_v56 = vpop.eup %3606  ;;  %v2520_v39 = vmul.f32 1.442695, %v5869_v36  ;;  %v2522_v4 = vmul.f32 1.442695, %v5872_v51  ;;  %v2537_v49 = vpop.xlane.xlu2 %2536  ;;  %v6131_v51 = vld [vmem:[#allocation17_spill] sm:$0xff] }
 0x308   : > { %6126 = vst [vmem:[#allocation13_spill] sm:$0xff] %v5875_v15  ;;  %v3609_v6 = vpop.eup %3608  ;;  %v2524_v63 = vmul.f32 1.442695, %v5875_v15  ;;  %v2526_v38 = vmul.f32 1.442695, %v5878_v54 }
 0x309   : > { %6127 = vst [vmem:[#allocation18_spill] sm:$0xff] %v5878_v54  ;;  %3616 = vpow2.f32 %v2520_v39  ;;  %v2598_v30 = vadd.f32 %v3609_v6, %v3607_v56  ;;  %v3611_v45 = vpop.eup %3610  ;;  %v6130_v39 = vld [vmem:[#allocation16_spill] sm:$0xff] }
 0x30a   : > { %3618 = vpow2.f32 %v2522_v4  ;;  %v3613_v42 = vpop.eup %3612 }
 0x30b   : > { %v2599_v34 = vadd.f32 %v3611_v45, %v2598_v30  ;;  %v3615_v8 = vpop.eup %3614  ;;  %v2609_v3 = vmul.f32 0.6931472, %v3613_v42  ;;  %3620 = vpow2.f32 %v2524_v63 }
 0x30c   : > { %3622 = vlog2.f32 %v2537_v49 }
 0x30d   : > { %v2600_v60 = vadd.f32 %v3615_v8, %v2599_v34  ;;  %v2640_v46 = vsub.f32 %v6128_v44, %v2609_v3  ;;  %v2641_v15 = vsub.f32 %v6129_v47, %v2609_v3  ;;  %v2642_v56 = vsub.f32 %v6130_v39, %v2609_v3  ;;  %v6132_v8 = vld [vmem:[#allocation19_spill] sm:$0xff] }
 0x30e   : > { %3624 = vpow2.f32 %v2526_v38  ;;  %v2643_v4 = vsub.f32 %v6131_v51, %v2609_v3 }
 0x30f   : > { %v3617_v6 = vpop.eup %3616  ;;  %2601 = vadd.xlane.f32.xlu0 %v2600_v60  ;;  %2704 = vst [vmem:[%s5891_s5] sm:$0xff] %v2640_v46  ;;  %v2542_v63 = vpop.xlane.xlu0 %2541  ;;  %v6133_v60 = vld [vmem:[#allocation20_spill] sm:$0xff]  ;;  %v6134_v46 = vld [vmem:[#allocation21_spill] sm:$0xff] }
 0x310   : > { %v3619_v54 = vpop.eup %3618  ;;  %2705 = vst [vmem:[%s5891_s5 + $0x8] sm:$0xff] %v2641_v15  ;;  %3626 = vlog2.f32 %v2542_v63  ;;  %v6135_v63 = vld [vmem:[#allocation22_spill] sm:$0xff] }
 0x311   : > { %v2603_v30 = vadd.f32 %v3619_v54, %v3617_v6  ;;  %v3621_v45 = vpop.eup %3620  ;;  %2706 = vst [vmem:[%s5891_s5 + $0x10] sm:$0xff] %v2642_v56 }
 0x312   : > { %v3623_v38 = vpop.eup %3622  ;;  %2707 = vst [vmem:[%s5891_s5 + $0x18] sm:$0xff] %v2643_v4 }
 0x313   : > { %v2604_v51 = vadd.f32 %v3621_v45, %v2603_v30  ;;  %v2611_v42 = vmul.f32 0.6931472, %v3623_v38 }
 0x314   : > { %v3625_v49 = vpop.eup %3624 }
 0x315   : > { %v2605_v34 = vadd.f32 %v3625_v49, %v2604_v51  ;;  %v2644_v3 = vsub.f32 %v6132_v8, %v2611_v42  ;;  %v2645_v44 = vsub.f32 %v6133_v60, %v2611_v42  ;;  %v2646_v15 = vsub.f32 %v6134_v46, %v2611_v42 }
 0x316   : > { %v3627_v54 = vpop.eup %3626  ;;  %v2647_v47 = vsub.f32 %v5633_v61, %v2611_v42 }
 0x317   : > { %2606 = vadd.xlane.f32.xlu1 %v2605_v34  ;;  %2708 = vst [vmem:[%s5891_s5 + $0x20] sm:$0xff] %v2644_v3  ;;  %v2613_v39 = vmul.f32 0.6931472, %v3627_v54  ;;  %v2547_v56 = vpop.xlane.xlu1 %2546 }
 0x318   : > { %2709 = vst [vmem:[%s5891_s5 + $0x28] sm:$0xff] %v2645_v44  ;;  %3628 = vlog2.f32 %v2547_v56 }
 0x319   : > { %2710 = vst [vmem:[%s5891_s5 + $0x30] sm:$0xff] %v2646_v15  ;;  %v2648_v6 = vsub.f32 %v5651_v5, %v2613_v39  ;;  %v2649_v4 = vsub.f32 %v5654_v23, %v2613_v39  ;;  %v2650_v30 = vsub.f32 %v6135_v63, %v2613_v39  ;;  %v2651_v61 = vsub.f32 %v5665_v26, %v2613_v39 }
 0x31a   : > { %2711 = vst [vmem:[%s5891_s5 + $0x38] sm:$0xff] %v2647_v47 }
 0x31b   : > { %2712 = vst [vmem:[%s5891_s5 + $0x40] sm:$0xff] %v2648_v6 }
 0x31c   : > { %2713 = vst [vmem:[%s5891_s5 + $0x48] sm:$0xff] %v2649_v4 }
 0x31d   : > { %2714 = vst [vmem:[%s5891_s5 + $0x50] sm:$0xff] %v2650_v30 }
 0x31e   : > { %v3629_v45 = vpop.eup %3628  ;;  %2715 = vst [vmem:[%s5891_s5 + $0x58] sm:$0xff] %v2651_v61 }
 0x31f   : > { %v2615_v38 = vmul.f32 0.6931472, %v3629_v45  ;;  %v2552_v51 = vpop.xlane.xlu2 %2551 }
 0x320   : > { %3630 = vlog2.f32 %v2552_v51 }
 0x321   : > { %v2652_v5 = vsub.f32 %v5677_v7, %v2615_v38  ;;  %v2653_v23 = vsub.f32 %v5680_v0, %v2615_v38  ;;  %v2654_v49 = vsub.f32 %v5683_v31, %v2615_v38  ;;  %v2655_v26 = vsub.f32 %v5686_v11, %v2615_v38 }
 0x323   : > { %2716 = vst [vmem:[%s5891_s5 + $0x60] sm:$0xff] %v2652_v5 }
 0x324   : > { %2717 = vst [vmem:[%s5891_s5 + $0x68] sm:$0xff] %v2653_v23 }
 0x325   : > { %2718 = vst [vmem:[%s5891_s5 + $0x70] sm:$0xff] %v2654_v49 }
 0x326   : > { %v3631_v42 = vpop.eup %3630  ;;  %2719 = vst [vmem:[%s5891_s5 + $0x78] sm:$0xff] %v2655_v26  ;;  %v6136_v26 = vld [vmem:[#allocation23_spill] sm:$0xff] }
 0x327   : > { %v2617_v34 = vmul.f32 0.6931472, %v3631_v42  ;;  %v2557_v8 = vpop.xlane.xlu0 %2556 }
 0x328   : > { %3632 = vlog2.f32 %v2557_v8 }
 0x329   : > { %v2656_v7 = vsub.f32 %v5693_v1, %v2617_v34  ;;  %v2657_v0 = vsub.f32 %v5696_v13, %v2617_v34  ;;  %v2658_v31 = vsub.f32 %v5699_v55, %v2617_v34  ;;  %v2659_v11 = vsub.f32 %v5702_v48, %v2617_v34  ;;  %v6137_v34 = vld [vmem:[#allocation24_spill] sm:$0xff] }
 0x32b   : > { %2720 = vst [vmem:[%s5891_s5 + $0x80] sm:$0xff] %v2656_v7  ;;  %v6138_v7 = vld [vmem:[#allocation5_spill] sm:$0xff] }
 0x32c   : > { %2721 = vst [vmem:[%s5891_s5 + $0x88] sm:$0xff] %v2657_v0 }
 0x32d   : > { %2722 = vst [vmem:[%s5891_s5 + $0x90] sm:$0xff] %v2658_v31 }
 0x32e   : > { %v3633_v3 = vpop.eup %3632  ;;  %2723 = vst [vmem:[%s5891_s5 + $0x98] sm:$0xff] %v2659_v11  ;;  %v6139_v11 = vld [vmem:[#allocation6_spill] sm:$0xff] }
 0x32f   : > { %v2619_v60 = vmul.f32 0.6931472, %v3633_v3  ;;  %v2562_v44 = vpop.xlane.xlu1 %2561 }
 0x330   : > { %3634 = vlog2.f32 %v2562_v44  ;;  %v6141_v44 = vld [vmem:[#allocation8_spill] sm:$0xff] }
 0x331   : > { %v2660_v1 = vsub.f32 %v5709_v33, %v2619_v60  ;;  %v2661_v13 = vsub.f32 %v5712_v57, %v2619_v60  ;;  %v2662_v55 = vsub.f32 %v5715_v19, %v2619_v60  ;;  %v2663_v48 = vsub.f32 %v5718_v21, %v2619_v60  ;;  %v6140_v60 = vld [vmem:[#allocation7_spill] sm:$0xff] }
 0x333   : > { %2724 = vst [vmem:[%s5891_s5 + $0xa0] sm:$0xff] %v2660_v1 }
 0x334   : > { %2725 = vst [vmem:[%s5891_s5 + $0xa8] sm:$0xff] %v2661_v13  ;;  %v6142_v13 = vld [vmem:[#allocation9_spill] sm:$0xff] }
 0x335   : > { %2726 = vst [vmem:[%s5891_s5 + $0xb0] sm:$0xff] %v2662_v55 }
 0x336   : > { %v3635_v46 = vpop.eup %3634  ;;  %2727 = vst [vmem:[%s5891_s5 + $0xb8] sm:$0xff] %v2663_v48 }
 0x337   : > { %v2621_v15 = vmul.f32 0.6931472, %v3635_v46  ;;  %v2567_v54 = vpop.xlane.xlu2 %2566 }
 0x338   : > { %3636 = vlog2.f32 %v2567_v54 }
 0x339   : > { %v2664_v33 = vsub.f32 %v5725_v9, %v2621_v15  ;;  %v2665_v57 = vsub.f32 %v5728_v40, %v2621_v15  ;;  %v2666_v19 = vsub.f32 %v5731_v37, %v2621_v15  ;;  %v2667_v21 = vsub.f32 %v5734_v62, %v2621_v15  ;;  %v6143_v15 = vld [vmem:[#allocation10_spill] sm:$0xff] }
 0x33b   : > { %2728 = vst [vmem:[%s5891_s5 + $0xc0] sm:$0xff] %v2664_v33  ;;  %v6144_v33 = vld [vmem:[#allocation11_spill] sm:$0xff] }
 0x33c   : > { %2729 = vst [vmem:[%s5891_s5 + $0xc8] sm:$0xff] %v2665_v57 }
 0x33d   : > { %2730 = vst [vmem:[%s5891_s5 + $0xd0] sm:$0xff] %v2666_v19 }
 0x33e   : > { %v3637_v47 = vpop.eup %3636  ;;  %2731 = vst [vmem:[%s5891_s5 + $0xd8] sm:$0xff] %v2667_v21 }
 0x33f   : > { %v2623_v39 = vmul.f32 0.6931472, %v3637_v47 }
 0x340   : > { %v2572_v56 = vpop.xlane.xlu0 %2571 }
 0x341   : > { %3638 = vlog2.f32 %v2572_v56  ;;  %v2668_v9 = vsub.f32 %v5741_v17, %v2623_v39  ;;  %v2669_v40 = vsub.f32 %v5744_v10, %v2623_v39  ;;  %v2670_v37 = vsub.f32 %v5747_v53, %v2623_v39 }
 0x342   : > { %v2671_v62 = vsub.f32 %v5750_v24, %v2623_v39 }
 0x343   : > { %2732 = vst [vmem:[%s5891_s5 + $0xe0] sm:$0xff] %v2668_v9 }
 0x344   : > { %2733 = vst [vmem:[%s5891_s5 + $0xe8] sm:$0xff] %v2669_v40 }
 0x345   : > { %2734 = vst [vmem:[%s5891_s5 + $0xf0] sm:$0xff] %v2670_v37 }
 0x346   : > { %2735 = vst [vmem:[%s5891_s5 + $0xf8] sm:$0xff] %v2671_v62 }
 0x347   : > { %v3639_v6 = vpop.eup %3638 }
 0x348   : > { %v2625_v4 = vmul.f32 0.6931472, %v3639_v6  ;;  %v2577_v63 = vpop.xlane.xlu1 %2576  ;;  %v6146_v6 = vld [vmem:[#allocation13_spill] sm:$0xff] }
 0x349   : > { %3640 = vlog2.f32 %v2577_v63  ;;  %v6147_v63 = vld [vmem:[#allocation18_spill] sm:$0xff] }
 0x34a   : > { %v2672_v17 = vsub.f32 %v5757_v22, %v2625_v4  ;;  %v2673_v10 = vsub.f32 %v5760_v41, %v2625_v4  ;;  %v2674_v53 = vsub.f32 %v5763_v2, %v2625_v4  ;;  %v2675_v30 = vsub.f32 %v5766_v43, %v2625_v4 }
 0x34c   : > { %2736 = vst [vmem:[%s5891_s5 + $0x100] sm:$0xff] %v2672_v17 }
 0x34d   : > { %2737 = vst [vmem:[%s5891_s5 + $0x108] sm:$0xff] %v2673_v10 }
 0x34e   : > { %2738 = vst [vmem:[%s5891_s5 + $0x110] sm:$0xff] %v2674_v53 }
 0x34f   : > { %v3641_v24 = vpop.eup %3640  ;;  %2739 = vst [vmem:[%s5891_s5 + $0x118] sm:$0xff] %v2675_v30  ;;  %v2582_v61 = vpop.xlane.xlu2 %2581 }
 0x350   : > { %v2627_v45 = vmul.f32 0.6931472, %v3641_v24  ;;  %3642 = vlog2.f32 %v2582_v61 }
 0x352   : > { %v2676_v22 = vsub.f32 %v5773_v35, %v2627_v45  ;;  %v2677_v41 = vsub.f32 %v5776_v52, %v2627_v45  ;;  %v2678_v2 = vsub.f32 %v5779_v59, %v2627_v45  ;;  %v2679_v43 = vsub.f32 %v5782_v32, %v2627_v45 }
 0x354   : > { %2740 = vst [vmem:[%s5891_s5 + $0x120] sm:$0xff] %v2676_v22 }
 0x355   : > { %2741 = vst [vmem:[%s5891_s5 + $0x128] sm:$0xff] %v2677_v41 }
 0x356   : > { %v3643_v38 = vpop.eup %3642  ;;  %2742 = vst [vmem:[%s5891_s5 + $0x130] sm:$0xff] %v2678_v2 }
 0x357   : > { %2743 = vst [vmem:[%s5891_s5 + $0x138] sm:$0xff] %v2679_v43  ;;  %v2629_v51 = vmul.f32 0.6931472, %v3643_v38  ;;  %v2587_v5 = vpop.xlane.xlu0 %2586 }
 0x358   : > { %3644 = vlog2.f32 %v2587_v5 }
 0x359   : > { %v2680_v35 = vsub.f32 %v5789_v29, %v2629_v51  ;;  %v2681_v52 = vsub.f32 %v5792_v14, %v2629_v51  ;;  %v2682_v59 = vsub.f32 %v5795_v20, %v2629_v51  ;;  %v2683_v32 = vsub.f32 %v5798_v12, %v2629_v51 }
 0x35b   : > { %2744 = vst [vmem:[%s5891_s5 + $0x140] sm:$0xff] %v2680_v35 }
 0x35c   : > { %2745 = vst [vmem:[%s5891_s5 + $0x148] sm:$0xff] %v2681_v52 }
 0x35d   : > { %2746 = vst [vmem:[%s5891_s5 + $0x150] sm:$0xff] %v2682_v59 }
 0x35e   : > { %v3645_v23 = vpop.eup %3644  ;;  %2747 = vst [vmem:[%s5891_s5 + $0x158] sm:$0xff] %v2683_v32 }
 0x35f   : > { %v2631_v49 = vmul.f32 0.6931472, %v3645_v23 }
 0x361   : > { %v2684_v42 = vsub.f32 %v6136_v26, %v2631_v49  ;;  %v2685_v8 = vsub.f32 %v6137_v34, %v2631_v49  ;;  %v2686_v29 = vsub.f32 %v6138_v7, %v2631_v49  ;;  %v2687_v14 = vsub.f32 %v5814_v25, %v2631_v49 }
 0x363   : > { %2748 = vst [vmem:[%s5891_s5 + $0x160] sm:$0xff] %v2684_v42 }
 0x364   : > { %2749 = vst [vmem:[%s5891_s5 + $0x168] sm:$0xff] %v2685_v8 }
 0x365   : > { %2750 = vst [vmem:[%s5891_s5 + $0x170] sm:$0xff] %v2686_v29 }
 0x366   : > { %2751 = vst [vmem:[%s5891_s5 + $0x178] sm:$0xff] %v2687_v14  ;;  %v2592_v20 = vpop.xlane.xlu1 %2591 }
 0x367   : > { %3646 = vlog2.f32 %v2592_v20 }
 0x36d   : > { %v3647_v12 = vpop.eup %3646 }
 0x36e   : > { %v2633_v0 = vmul.f32 0.6931472, %v3647_v12  ;;  %v2597_v31 = vpop.xlane.xlu2 %2596 }
 0x36f   : > { %3648 = vlog2.f32 %v2597_v31 }
 0x370   : > { %v2688_v3 = vsub.f32 %v6139_v11, %v2633_v0  ;;  %v2689_v25 = vsub.f32 %v6140_v60, %v2633_v0  ;;  %v2690_v1 = vsub.f32 %v6141_v44, %v2633_v0  ;;  %v2691_v55 = vsub.f32 %v6142_v13, %v2633_v0 }
 0x372   : > { %2752 = vst [vmem:[%s5891_s5 + $0x180] sm:$0xff] %v2688_v3 }
 0x373   : > { %2753 = vst [vmem:[%s5891_s5 + $0x188] sm:$0xff] %v2689_v25 }
 0x374   : > { %2754 = vst [vmem:[%s5891_s5 + $0x190] sm:$0xff] %v2690_v1 }
 0x375   : > { %v3649_v48 = vpop.eup %3648  ;;  %2755 = vst [vmem:[%s5891_s5 + $0x198] sm:$0xff] %v2691_v55 }
 0x376   : > { %v2635_v46 = vmul.f32 0.6931472, %v3649_v48 }
 0x378   : > { %v2692_v54 = vsub.f32 %v6143_v15, %v2635_v46  ;;  %v2693_v57 = vsub.f32 %v6144_v33, %v2635_v46  ;;  %v2694_v19 = vsub.f32 %v5843_v50, %v2635_v46  ;;  %v2695_v21 = vsub.f32 %v5846_v16, %v2635_v46 }
 0x37a   : > { %2756 = vst [vmem:[%s5891_s5 + $0x1a0] sm:$0xff] %v2692_v54 }
 0x37b   : > { %2757 = vst [vmem:[%s5891_s5 + $0x1a8] sm:$0xff] %v2693_v57 }
 0x37c   : > { %2758 = vst [vmem:[%s5891_s5 + $0x1b0] sm:$0xff] %v2694_v19 }
 0x37d   : > { %2759 = vst [vmem:[%s5891_s5 + $0x1b8] sm:$0xff] %v2695_v21 }
 0x382   : > { %v2602_v47 = vpop.xlane.xlu0 %2601 }
 0x383   : > { %3650 = vlog2.f32 %v2602_v47 }
 0x389   : > { %v3651_v39 = vpop.eup %3650 }
 0x38a   : > { %v2637_v56 = vmul.f32 0.6931472, %v3651_v39  ;;  %v2607_v9 = vpop.xlane.xlu1 %2606 }
 0x38b   : > { %3652 = vlog2.f32 %v2607_v9 }
 0x38c   : > { %v2696_v50 = vsub.f32 %v5853_v58, %v2637_v56  ;;  %v2697_v40 = vsub.f32 %v5856_v18, %v2637_v56  ;;  %v2698_v16 = vsub.f32 %v5859_v27, %v2637_v56  ;;  %v2699_v37 = vsub.f32 %v5862_v28, %v2637_v56  ;;  %v6145_v28 = vld [vmem:[#allocation12_spill] sm:$0xff] }
 0x38e   : > { %2760 = vst [vmem:[%s5891_s5 + $0x1c0] sm:$0xff] %v2696_v50 }
 0x38f   : > { %2761 = vst [vmem:[%s5891_s5 + $0x1c8] sm:$0xff] %v2697_v40 }
 0x390   : > { %2762 = vst [vmem:[%s5891_s5 + $0x1d0] sm:$0xff] %v2698_v16 }
 0x391   : > { %v3653_v58 = vpop.eup %3652  ;;  %2763 = vst [vmem:[%s5891_s5 + $0x1d8] sm:$0xff] %v2699_v37 }
 0x392   : > { %v2639_v18 = vmul.f32 0.6931472, %v3653_v58 }
 0x394   : > { %v2700_v27 = vsub.f32 %v5869_v36, %v2639_v18  ;;  %v2701_v62 = vsub.f32 %v6145_v28, %v2639_v18  ;;  %v2702_v4 = vsub.f32 %v6146_v6, %v2639_v18  ;;  %v2703_v17 = vsub.f32 %v6147_v63, %v2639_v18 }
 0x396   : > { %2764 = vst [vmem:[%s5891_s5 + $0x1e0] sm:$0xff] %v2700_v27 }
 0x397   : > { %2765 = vst [vmem:[%s5891_s5 + $0x1e8] sm:$0xff] %v2701_v62 }
 0x398   : > { %2766 = vst [vmem:[%s5891_s5 + $0x1f0] sm:$0xff] %v2702_v4 }
 0x399   : > { %2767 = vst [vmem:[%s5891_s5 + $0x1f8] sm:$0xff] %v2703_v17 }
 0x39a   : > { %3681 = shalt.err (!%p3678_p3)
}
 0x39b   : > { %s3723_s28 = smov 512   ;;  %s3724_s29 = smov 32  }
 0x39c   : > { %3390 = dma.vmem_to_hbm [thread:$0]  (%p3788_p5), %s2783_s10, 8192, %s2785_s11, %s2769_s19, %s3723_s28, %s3723_s28, %s3724_s29  }
 0x39d PF: > { %p3396_p4 = scmp.ge.s32.totalorder %s3716_s18, 2  ;;  %s2799_s30 = sand.u32 1, %s3704_s15  }
 0x39e   : > { %s2800_s5 = scalar_lea.sflag [#allocation3], %s2799_s30 }
 0x39f   : > { %p3393_p7 = pnand %p3396_p4, %p3792_p6 }
 0x3a1   : > { %p3394_p8 = pneg %p3393_p7 }
 0x3a3   : > { %3699 = dma.done.wait (%p3394_p8), %s2800_s5, 8192  }
 0x3a4   : > { %3701 = vsyncadd (%p3394_p8), %s2800_s5, 4294959104  ;;  %p14_p9 = scmp.ge.s32.totalorder %s3775_s21, 4   ;;  %s6148_s15 = smov %s3708_s16 }
 0x3a5   : > { %s6149_s16 = smov %s3712_s17  ;;  %s6150_s17 = smov %s3786_s24 }
 0x3a6   : > { %s6151_s18 = smov %s3775_s21  ;;  %16 = sbr.rel (!%p14_p9) target bundleno = 3 (0x3), region = 71 }
 0x3ab   :  { %2806 = vsyncpa [#allocation3], 1 }
 0x3ac   :  { %2808 = vsyncpa [#allocation3 + $0x1], 1 }

</bundles_post_ra>
